<compile_context>
chip_gen: v7x
topology: tpu7x:2x2x1
jax: 0.10.0
libtpu: 0.0.40
codegen_flags: <defaults>
</compile_context>

<pallas_src>
import functools
import math

import jax
import jax.numpy as jnp
import numpy as np
from jax.experimental import pallas as pl
from jax.experimental.pallas import tpu as pltpu

# slots into the original stacked (12, D, D) weight tensor (stored as (in, out))
E2E_MUL, E2E_ADD = 0, 1
Y2E_ADD, Y2E_MUL = 2, 3
E2X_ADD, E2X_MUL = 4, 5
Y2X_ADD, Y2X_MUL = 6, 7
X_OUT, E_OUT = 8, 9
YO1, YO2 = 10, 11
# slots into the stacked (2, 4D, D) PNA head weights
X2Y, E2Y = 0, 1
# slots into the stacked (3, D) layernorm params
NORM_X, NORM_E, NORM_Y = 0, 1, 2
# slots into the fused (4, Dp, Dp) "output projection" stack used in-kernel
S_X_OUT, S_E_OUT, S_YO1, S_YO2 = 0, 1, 2, 3

LN_EPS = 1e-5
LANE = 128


def _pna_xey_kernel(x_ref, e_ref, y_ref, deg_ref, xm_ref,
                    w_ee_ref, b_ee_ref, w_y_ref, b_y_ref,
                    w_ex_ref, b_ex_ref, w_out_ref, b_out_ref,
                    w4_ref, b4_ref, gam_ref, bet_ref,
                    xo_ref, eo_ref, yo_ref,
                    yl_sc, xmm_sc, shift_sc, exs_sc, esum_sc, esq_sc,
                    emin_sc, emax_sc, *, d_true):
    n = x_ref.shape[1]            # nodes per graph
    dp = x_ref.shape[2]           # padded (lane-dense) channel width
    tr = e_ref.shape[1]           # edge rows in this tile (= tile_i * n)
    ti = tr // n                  # node-i rows covered by this edge tile
    n_pad = float(dp - d_true)    # number of zero-padded channels
    inv_d = 1.0 / float(d_true)
    inv_sqrt_d = 1.0 / math.sqrt(d_true)

    k = pl.program_id(1)
    nk = pl.num_programs(1)

    X = x_ref[0]                  # (n, dp)   pad channels are exactly zero
    y = y_ref[0]                  # (1, dp)
    xmask = xm_ref[0]             # (n, 1)
    E_t = e_ref[0]                # (tr, dp)  rows [k*tr, (k+1)*tr) of E

    def lin(v, slot):
        return (jnp.dot(v, w_out_ref[slot], preferred_element_type=jnp.float32)
                + b_out_ref[slot][None, :])

    def layernorm(v, slot):
        # mean / variance over the *true* D channels: pad channels of v are
        # exactly zero, so sum(v) is already the true sum and the pad
        # contribution to sum((v-mu)^2) is n_pad*mu^2, which is subtracted.
        mu = jnp.sum(v, axis=-1, keepdims=True) * inv_d
        diff = v - mu
        s2 = jnp.sum(diff * diff, axis=-1, keepdims=True)
        var = (s2 - n_pad * mu * mu) * inv_d
        return (diff * jax.lax.rsqrt(var + LN_EPS)
                * gam_ref[slot][None, :] + bet_ref[slot][None, :])

    # ---- per-graph init at the first edge tile: hoist once-per-graph work
    #      and zero the streamed-reduction accumulators ----
    @pl.when(k == 0)
    def _init():
        yl_sc[...] = (jnp.dot(y, w_y_ref[...],
                              preferred_element_type=jnp.float32)
                      + b_y_ref[...])                        # (1, 4*dp)
        xmm_sc[...] = X * xmask                              # hoisted X*mask
        # per-channel shift for the one-pass E variance (first-tile mean)
        shift_sc[...] = jnp.sum(E_t, axis=0, keepdims=True) * (1.0 / float(tr))
        exs_sc[...] = jnp.zeros_like(exs_sc)
        esum_sc[...] = jnp.zeros_like(esum_sc)
        esq_sc[...] = jnp.zeros_like(esq_sc)
        emin_sc[...] = jnp.full((1, dp), jnp.inf, jnp.float32)
        emax_sc[...] = jnp.full((1, dp), -jnp.inf, jnp.float32)

    # ---- streamed per-graph reductions over E ----
    c = shift_sc[...]                                        # (1, dp)
    ex_part = jnp.sum(E_t.reshape(ti, n, dp), axis=0)        # (n, dp)
    exs_sc[...] += ex_part
    esum_sc[...] += jnp.sum(ex_part, axis=0, keepdims=True)
    d_shift = E_t - c
    esq_sc[...] += jnp.sum(d_shift * d_shift, axis=0, keepdims=True)
    emin_sc[...] = jnp.minimum(emin_sc[...], jnp.min(E_t, axis=0, keepdims=True))
    emax_sc[...] = jnp.maximum(emax_sc[...], jnp.max(E_t, axis=0, keepdims=True))

    # ---- edge-output path for this tile ----
    i0 = pl.multiple_of(k * ti, ti)                          # ti is 8-aligned
    mi = xm_ref[0, pl.ds(i0, ti), :]                         # (ti, 1)
    Xi = xmm_sc[pl.ds(i0, ti), :] * inv_sqrt_d               # (ti, dp)
    Xm = xmm_sc[...]                                         # (n, dp)
    Y = (Xi[:, None, :] * Xm[None, :, :]).reshape(tr, dp)
    em = (mi[:, None, :] * xmask[None, :, :]).reshape(tr, 1)

    # fused E2E_mul ++ E2E_add projection: one (tr,dp)@(dp,2dp) MXU pass, the
    # 128-aligned lane split of the result is free.
    EE = (jnp.dot(E_t, w_ee_ref[...], preferred_element_type=jnp.float32)
          + b_ee_ref[...])
    E1 = EE[:, :dp]
    E2 = EE[:, dp:]
    Yn = Y * (E1 + 1.0) + E2
    ye_add = yl_sc[:, 0:dp]
    ye_mul = yl_sc[:, dp:2 * dp]
    E_output = (ye_add + (ye_mul + 1.0) * Yn) * em
    E_res = E_t + lin(E_output, S_E_OUT)
    eo_ref[0] = (layernorm(E_res, NORM_E) * em).astype(eo_ref.dtype)

    # ---- finalize node & global paths at the last edge tile ----
    @pl.when(k == nk - 1)
    def _finalize():
        deg = deg_ref[0]                                     # (n, 1)
        ex = exs_sc[...] / deg    # matches reference: no zero-degree guard
        EX = (jnp.dot(ex, w_ex_ref[...], preferred_element_type=jnp.float32)
              + b_ex_ref[...])
        ex1 = EX[:, :dp]          # E2X_add
        ex2 = EX[:, dp:]          # E2X_mul
        yx_add = yl_sc[:, 2 * dp:3 * dp]
        yx_mul = yl_sc[:, 3 * dp:4 * dp]
        X_o = (ex1 + (ex2 + 1.0) * X) * xmask
        X_o = (yx_add + (yx_mul + 1.0) * X_o) * xmask
        xo_ref[0] = (layernorm(X + lin(X_o, S_X_OUT), NORM_X)
                     * xmask).astype(xo_ref.dtype)

        # PNA aggregations over X (resident, unmasked as in the reference;
        # torch.std is unbiased).
        Xmean = jnp.mean(X, axis=0, keepdims=True)
        Xmin = jnp.min(X, axis=0, keepdims=True)
        Xmax = jnp.max(X, axis=0, keepdims=True)
        Xstd = jnp.sqrt(jnp.sum((X - Xmean) ** 2, axis=0, keepdims=True)
                        / (n - 1))

        # PNA aggregations over E, from the streamed (shifted) accumulators.
        n2 = float(n * n)
        Emean = esum_sc[...] * (1.0 / n2)
        dm = Emean - shift_sc[...]
        Evar = (esq_sc[...] - n2 * dm * dm) / (n2 - 1.0)
        Estd = jnp.sqrt(jnp.maximum(Evar, 0.0))

        # single fused (1,4dp)@(4dp,dp) matmul per PNA head (128-aligned concat)
        zx = jnp.concatenate([Xmean, Xmin, Xmax, Xstd], axis=-1)
        ze = jnp.concatenate([Emean, emin_sc[...], emax_sc[...], Estd], axis=-1)
        y_output = (y
                    + jnp.dot(zx, w4_ref[X2Y],
                              preferred_element_type=jnp.float32)
                    + b4_ref[X2Y][None, :]
                    + jnp.dot(ze, w4_ref[E2Y],
                              preferred_element_type=jnp.float32)
                    + b4_ref[E2Y][None, :])
        h = jax.nn.relu(lin(y_output, S_YO1))
        yo_ref[0] = layernorm(y + lin(h, S_YO2), NORM_Y).astype(yo_ref.dtype)


def _default_vmem_limit():
    """Generation-aware VMEM request: ~3/4 of physical, capped with headroom."""
    cap = 128 * 1024 * 1024
    try:
        cap = int(pltpu.get_tpu_info().vmem_capacity_bytes)
    except Exception:
        pass
    return max(32 * 1024 * 1024, min((cap * 3) // 4, 100 * 1024 * 1024))


def _pick_tile_i(n, dp, itemsize, budget_bytes):
    """Largest 8-aligned tile_i dividing n whose (tile_i*n, dp) slab fits."""
    cands = [c for c in range(1, n + 1)
             if n % c == 0 and (c % 8 == 0 or c == n)]
    if not cands:  # tiny graphs: fall back to sublane-friendly edge tiles
        cands = [c for c in range(1, n + 1)
                 if n % c == 0 and ((c * n) % 8 == 0 or c == n)]
    under = [c for c in cands if c * n * dp * itemsize <= budget_bytes]
    return max(under) if under else min(cands)


def pna_xey_forward(X, E, y, X_degree, node_mask, params, *, tile_i=None,
                    vmem_limit_bytes=None, tile_budget_bytes=8 * 1024 * 1024):
    B, N, D = X.shape
    NN = N * N
    Dp = ((D + LANE - 1) // LANE) * LANE       # lane-dense channel width
    f32 = jnp.float32

    if vmem_limit_bytes is None:
        vmem_limit_bytes = _default_vmem_limit()
    if tile_i is None:
        budget = min(tile_budget_bytes, vmem_limit_bytes // 8)
        tile_i = _pick_tile_i(N, Dp, 4, budget)
    assert N % tile_i == 0, "tile_i must divide the node count"
    TR = tile_i * N
    assert TR % 8 == 0 or TR == NN, "edge tile rows must be sublane friendly"
    NT = NN // TR

    def pad_ch(a):
        a = a.astype(f32)
        if a.shape[-1] == Dp:
            return a
        widths = [(0, 0)] * (a.ndim - 1) + [(0, Dp - a.shape[-1])]
        return jnp.pad(a, widths)

    # lane-dense (zero-padded) activations; E flattened to (B, N*N, Dp) so the
    # kernel only ever sees 2-D (rows, Dp) slabs and the N*N axis is tiled.
    Xp = pad_ch(X)
    Ep = pad_ch(E.reshape(B, NN, D))
    yp = pad_ch(y.reshape(B, 1, D))
    xm = node_mask.reshape(B, N, 1).astype(f32)
    deg = X_degree.reshape(B, N, 1).astype(f32)

    Wdd = params["Wdd"].astype(f32)
    bdd = params["bdd"].astype(f32)
    W4 = params["W4"].astype(f32)
    b4 = params["b4"].astype(f32)
    gam = params["gamma"].astype(f32)
    bet = params["beta"].astype(f32)

    def pad_mat(w):          # (D, D) -> (Dp, Dp), zero-padded rows & cols
        return jnp.pad(w, ((0, Dp - D), (0, Dp - D)))

    def pad_row(b):          # (D,) -> (1, Dp)
        return jnp.pad(b, (0, Dp - D))[None, :]

    # Fused / padded weights (would be precomputed once in a real pipeline).
    w_ee = jnp.concatenate([pad_mat(Wdd[E2E_MUL]), pad_mat(Wdd[E2E_ADD])], 1)
    b_ee = jnp.concatenate([pad_row(bdd[E2E_MUL]), pad_row(bdd[E2E_ADD])], 1)
    y_slots = (Y2E_ADD, Y2E_MUL, Y2X_ADD, Y2X_MUL)
    w_y = jnp.concatenate([pad_mat(Wdd[s]) for s in y_slots], 1)
    b_y = jnp.concatenate([pad_row(bdd[s]) for s in y_slots], 1)
    w_ex = jnp.concatenate([pad_mat(Wdd[E2X_ADD]), pad_mat(Wdd[E2X_MUL])], 1)
    b_ex = jnp.concatenate([pad_row(bdd[E2X_ADD]), pad_row(bdd[E2X_MUL])], 1)
    out_slots = (X_OUT, E_OUT, YO1, YO2)
    w_out = jnp.stack([pad_mat(Wdd[s]) for s in out_slots])
    b_out = jnp.stack([jnp.pad(bdd[s], (0, Dp - D)) for s in out_slots])
    # PNA heads: each original DxD chunk lands at row offset i*Dp of the fused
    # (4Dp, Dp) matrix so it lines up with the padded stat concat.
    w4p = jnp.zeros((2, 4 * Dp, Dp), f32)
    for h in range(2):
        for i in range(4):
            w4p = w4p.at[h, i * Dp:i * Dp + D, :D].set(
                W4[h, i * D:(i + 1) * D, :])
    b4p = jnp.stack([jnp.pad(b4[h], (0, Dp - D)) for h in range(2)])
    # gamma/beta zero in the pad so padded output channels come out zero.
    gamp = jnp.pad(gam, ((0, 0), (0, Dp - D)))
    betp = jnp.pad(bet, ((0, 0), (0, Dp - D)))

    def full_spec(a):
        rank = a.ndim
        return pl.BlockSpec(a.shape, lambda b, k, _r=rank: (0,) * _r)

    out_shapes = (
        jax.ShapeDtypeStruct((B, N, Dp), f32),
        jax.ShapeDtypeStruct((B, NN, Dp), f32),
        jax.ShapeDtypeStruct((B, 1, Dp), f32),
    )

    grid_spec = pltpu.PrefetchScalarGridSpec(
        num_scalar_prefetch=0,
        grid=(B, NT),
        in_specs=[
            pl.BlockSpec((1, N, Dp), lambda b, k: (b, 0, 0)),    # X (resident)
            pl.BlockSpec((1, TR, Dp), lambda b, k: (b, k, 0)),   # E (streamed)
            pl.BlockSpec((1, 1, Dp), lambda b, k: (b, 0, 0)),    # y (resident)
            pl.BlockSpec((1, N, 1), lambda b, k: (b, 0, 0)),     # X_degree
            pl.BlockSpec((1, N, 1), lambda b, k: (b, 0, 0)),     # node_mask
            full_spec(w_ee), full_spec(b_ee),
            full_spec(w_y), full_spec(b_y),
            full_spec(w_ex), full_spec(b_ex),
            full_spec(w_out), full_spec(b_out),
            full_spec(w4p), full_spec(b4p),
            full_spec(gamp), full_spec(betp),
        ],
        out_specs=[
            pl.BlockSpec((1, N, Dp), lambda b, k: (b, 0, 0)),    # X_new (last k)
            pl.BlockSpec((1, TR, Dp), lambda b, k: (b, k, 0)),   # E_new (tiled)
            pl.BlockSpec((1, 1, Dp), lambda b, k: (b, 0, 0)),    # y_new (last k)
        ],
        scratch_shapes=[
            pltpu.VMEM((1, 4 * Dp), f32),   # fused y->{E,X} projections
            pltpu.VMEM((N, Dp), f32),       # hoisted X*mask
            pltpu.VMEM((1, Dp), f32),       # variance shift (tile-0 E mean)
            pltpu.VMEM((N, Dp), f32),       # accum: sum_i E[i, :, :]
            pltpu.VMEM((1, Dp), f32),       # accum: sum(E)
            pltpu.VMEM((1, Dp), f32),       # accum: sum((E - shift)^2)
            pltpu.VMEM((1, Dp), f32),       # accum: min(E)
            pltpu.VMEM((1, Dp), f32),       # accum: max(E)
        ],
    )

    kern = functools.partial(_pna_xey_kernel, d_true=D)
    Xn, En, yn = pl.pallas_call(
        kern,
        out_shape=out_shapes,
        grid_spec=grid_spec,
        compiler_params=pltpu.CompilerParams(
            dimension_semantics=("parallel", "arbitrary"),
            vmem_limit_bytes=int(vmem_limit_bytes)),
    )(Xp, Ep, yp, deg, xm, w_ee, b_ee, w_y, b_y, w_ex, b_ex,
      w_out, b_out, w4p, b4p, gamp, betp)

    Xn = Xn[:, :, :D].astype(X.dtype)
    En = En.reshape(B, N, N, Dp)[..., :D].astype(E.dtype)
    yn = yn.reshape(B, Dp)[:, :D].astype(y.dtype)
    return Xn, En, yn


def init_params(key, d):
    ks = jax.random.split(key, 6)
    return dict(
        Wdd=0.1 * jax.random.normal(ks[0], (12, d, d), jnp.float32),
        bdd=0.05 * jax.random.normal(ks[1], (12, d), jnp.float32),
        W4=0.1 * jax.random.normal(ks[2], (2, 4 * d, d), jnp.float32),
        b4=0.05 * jax.random.normal(ks[3], (2, d), jnp.float32),
        gamma=1.0 + 0.1 * jax.random.normal(ks[4], (3, d), jnp.float32),
        beta=0.05 * jax.random.normal(ks[5], (3, d), jnp.float32),
    )


def forward_ref(X, E, y, X_degree, node_mask, p):
    """Pure-JAX reference mirroring the PyTorch forward (for validation)."""
    B, N, D = X.shape
    Wdd, bdd, W4, b4, gam, bet = (p["Wdd"], p["bdd"], p["W4"], p["b4"],
                                  p["gamma"], p["beta"])

    def lin(x, k):
        return x @ Wdd[k] + bdd[k]

    def lin4(z, k):
        return z @ W4[k] + b4[k]

    def ln(x, k):
        mu = x.mean(-1, keepdims=True)
        var = ((x - mu) ** 2).mean(-1, keepdims=True)
        return (x - mu) / jnp.sqrt(var + LN_EPS) * gam[k] + bet[k]

    x_mask = node_mask[..., None].astype(X.dtype)
    e_mask1 = x_mask[:, :, None, :]
    e_mask2 = x_mask[:, None, :, :]
    X1 = (X * x_mask)[:, None, :, :]
    X2 = (X * x_mask)[:, :, None, :]
    Y = X1 * X2 / math.sqrt(D)
    E1 = lin(E, E2E_MUL) * e_mask1 * e_mask2
    E2 = lin(E, E2E_ADD) * e_mask1 * e_mask2
    Y = Y * (E1 + 1) + E2
    ye1 = lin(y, Y2E_ADD)[:, None, None, :]
    ye2 = lin(y, Y2E_MUL)[:, None, None, :]
    E_output = (ye1 + (ye2 + 1) * Y) * e_mask1 * e_mask2
    ex = E.sum(axis=1) / X_degree
    ex1 = lin(ex, E2X_ADD) * x_mask
    ex2 = lin(ex, E2X_MUL) * x_mask
    X_output = (ex1 + (ex2 + 1) * X) * x_mask
    yx1 = lin(y, Y2X_ADD)[:, None, :]
    yx2 = lin(y, Y2X_MUL)[:, None, :]
    X_output = (yx1 + (yx2 + 1) * X_output) * x_mask
    # PNA aggregations (torch.std defaults to unbiased)
    m, mi, ma = X.mean(1), X.min(1), X.max(1)
    std = jnp.sqrt(((X - X.mean(1, keepdims=True)) ** 2).sum(1) / (N - 1))
    x2y = lin4(jnp.concatenate([m, mi, ma, std], -1), X2Y)
    Ef = E.reshape(B, N * N, D)
    me, mie, mae = Ef.mean(1), Ef.min(1), Ef.max(1)
    stde = jnp.sqrt(((Ef - Ef.mean(1, keepdims=True)) ** 2).sum(1) / (N * N - 1))
    e2y = lin4(jnp.concatenate([me, mie, mae, stde], -1), E2Y)
    y_output = y + x2y + e2y
    Xn = ln(X + lin(X_output, X_OUT), NORM_X) * x_mask
    En = ln(E + lin(E_output, E_OUT), NORM_E) * e_mask1 * e_mask2
    yn = ln(y + lin(jax.nn.relu(lin(y_output, YO1)), YO2), NORM_Y)
    return Xn, En, yn


if __name__ == "__main__":
    B, N, D = 2, 16, 32
    key = jax.random.PRNGKey(0)
    k_x, k_e, k_y, k_deg, k_p = jax.random.split(key, 5)

    X = jax.random.normal(k_x, (B, N, D), jnp.float32)
    E = jax.random.normal(k_e, (B, N, N, D), jnp.float32)
    y = jax.random.normal(k_y, (B, D), jnp.float32)
    X_degree = jax.random.uniform(k_deg, (B, N, 1), jnp.float32,
                                  minval=1.0, maxval=float(N))
    node_mask = jnp.ones((B, N), jnp.float32)
    node_mask = node_mask.at[1, -3:].set(0.0)   # mask three nodes in batch 1

    params = init_params(k_p, D)

    Xr, Er, yr = forward_ref(X, E, y, X_degree, node_mask, params)

    # multi-tile path: two edge tiles of 8 node-rows per graph
    Xn, En, yn = pna_xey_forward(X, E, y, X_degree, node_mask, params, tile_i=8)
    jax.block_until_ready((Xn, En, yn))
    np.testing.assert_allclose(np.asarray(Xn), np.asarray(Xr), rtol=1e-4, atol=1e-4)
    np.testing.assert_allclose(np.asarray(En), np.asarray(Er), rtol=1e-4, atol=1e-4)
    np.testing.assert_allclose(np.asarray(yn), np.asarray(yr), rtol=1e-4, atol=1e-4)

    # auto-picked tile (whole graph's edges in one slab for this small N)
    Xn1, En1, yn1 = pna_xey_forward(X, E, y, X_degree, node_mask, params)
    jax.block_until_ready((Xn1, En1, yn1))
    np.testing.assert_allclose(np.asarray(Xn1), np.asarray(Xr), rtol=1e-4, atol=1e-4)
    np.testing.assert_allclose(np.asarray(En1), np.asarray(Er), rtol=1e-4, atol=1e-4)
    np.testing.assert_allclose(np.asarray(yn1), np.asarray(yr), rtol=1e-4, atol=1e-4)

    print("KERNEL_OK")
</pallas_src>

<mosaic_0001>
module attributes {stable_mosaic.version = 11 : i64} {
  func.func @_pna_xey_kernel(%arg0: i32, %arg1: i32, %arg2: memref<1x16x128xf32, #tpu.memory_space<vmem>>, %arg3: memref<1x128x128xf32, #tpu.memory_space<vmem>>, %arg4: memref<1x1x128xf32, #tpu.memory_space<vmem>>, %arg5: memref<1x16x1xf32, #tpu.memory_space<vmem>>, %arg6: memref<1x16x1xf32, #tpu.memory_space<vmem>>, %arg7: memref<128x256xf32, #tpu.memory_space<vmem>>, %arg8: memref<1x256xf32, #tpu.memory_space<vmem>>, %arg9: memref<128x512xf32, #tpu.memory_space<vmem>>, %arg10: memref<1x512xf32, #tpu.memory_space<vmem>>, %arg11: memref<128x256xf32, #tpu.memory_space<vmem>>, %arg12: memref<1x256xf32, #tpu.memory_space<vmem>>, %arg13: memref<4x128x128xf32, #tpu.memory_space<vmem>>, %arg14: memref<4x128xf32, #tpu.memory_space<vmem>>, %arg15: memref<2x512x128xf32, #tpu.memory_space<vmem>>, %arg16: memref<2x128xf32, #tpu.memory_space<vmem>>, %arg17: memref<3x128xf32, #tpu.memory_space<vmem>>, %arg18: memref<3x128xf32, #tpu.memory_space<vmem>>, %arg19: memref<1x16x128xf32, #tpu.memory_space<vmem>>, %arg20: memref<1x128x128xf32, #tpu.memory_space<vmem>>, %arg21: memref<1x1x128xf32, #tpu.memory_space<vmem>>, %arg22: memref<1x512xf32, #tpu.memory_space<vmem>>, %arg23: memref<16x128xf32, #tpu.memory_space<vmem>>, %arg24: memref<1x128xf32, #tpu.memory_space<vmem>>, %arg25: memref<16x128xf32, #tpu.memory_space<vmem>>, %arg26: memref<1x128xf32, #tpu.memory_space<vmem>>, %arg27: memref<1x128xf32, #tpu.memory_space<vmem>>, %arg28: memref<1x128xf32, #tpu.memory_space<vmem>>, %arg29: memref<1x128xf32, #tpu.memory_space<vmem>>) attributes {dimension_semantics = [#tpu.dimension_semantics<parallel>, #tpu.dimension_semantics<arbitrary>], iteration_bounds = array<i64: 2, 2>, scalar_prefetch = 0 : i64, scratch_operands = 8 : i64, tpu.core_type = #tpu.core_type<tc>, window_params = [{transform_indices = @transform_0, window_bounds = array<i64: 1, 16, 128>}, {transform_indices = @transform_1, window_bounds = array<i64: 1, 128, 128>}, {transform_indices = @transform_2, window_bounds = array<i64: 1, 1, 128>}, {transform_indices = @transform_3, window_bounds = array<i64: 1, 16, 1>}, {transform_indices = @transform_4, window_bounds = array<i64: 1, 16, 1>}, {pipeline_mode = #tpu.pipeline_mode<synchronous>, transform_indices = @transform_5, window_bounds = array<i64: 128, 256>}, {pipeline_mode = #tpu.pipeline_mode<synchronous>, transform_indices = @transform_6, window_bounds = array<i64: 1, 256>}, {pipeline_mode = #tpu.pipeline_mode<synchronous>, transform_indices = @transform_7, window_bounds = array<i64: 128, 512>}, {pipeline_mode = #tpu.pipeline_mode<synchronous>, transform_indices = @transform_8, window_bounds = array<i64: 1, 512>}, {pipeline_mode = #tpu.pipeline_mode<synchronous>, transform_indices = @transform_9, window_bounds = array<i64: 128, 256>}, {pipeline_mode = #tpu.pipeline_mode<synchronous>, transform_indices = @transform_10, window_bounds = array<i64: 1, 256>}, {pipeline_mode = #tpu.pipeline_mode<synchronous>, transform_indices = @transform_11, window_bounds = array<i64: 4, 128, 128>}, {pipeline_mode = #tpu.pipeline_mode<synchronous>, transform_indices = @transform_12, window_bounds = array<i64: 4, 128>}, {pipeline_mode = #tpu.pipeline_mode<synchronous>, transform_indices = @transform_13, window_bounds = array<i64: 2, 512, 128>}, {pipeline_mode = #tpu.pipeline_mode<synchronous>, transform_indices = @transform_14, window_bounds = array<i64: 2, 128>}, {pipeline_mode = #tpu.pipeline_mode<synchronous>, transform_indices = @transform_15, window_bounds = array<i64: 3, 128>}, {pipeline_mode = #tpu.pipeline_mode<synchronous>, transform_indices = @transform_16, window_bounds = array<i64: 3, 128>}, {transform_indices = @transform_17, window_bounds = array<i64: 1, 16, 128>}, {transform_indices = @transform_18, window_bounds = array<i64: 1, 128, 128>}, {transform_indices = @transform_19, window_bounds = array<i64: 1, 1, 128>}]} {
    %c0 = arith.constant 0 : index
    %c0_0 = arith.constant 0 : index
    %c0_1 = arith.constant 0 : index
    %0 = vector.load %arg2[%c0, %c0_0, %c0_1] : memref<1x16x128xf32, #tpu.memory_space<vmem>>, vector<1x16x128xf32>
    %1 = vector.shape_cast %0 : vector<1x16x128xf32> to vector<16x128xf32>
    %c0_2 = arith.constant 0 : index
    %c0_3 = arith.constant 0 : index
    %c0_4 = arith.constant 0 : index
    %2 = vector.load %arg4[%c0_2, %c0_3, %c0_4] : memref<1x1x128xf32, #tpu.memory_space<vmem>>, vector<1x1x128xf32>
    %3 = vector.shape_cast %2 : vector<1x1x128xf32> to vector<1x128xf32>
    %c0_5 = arith.constant 0 : index
    %c0_6 = arith.constant 0 : index
    %c0_7 = arith.constant 0 : index
    %4 = vector.load %arg6[%c0_5, %c0_6, %c0_7] : memref<1x16x1xf32, #tpu.memory_space<vmem>>, vector<1x16x1xf32>
    %5 = vector.shape_cast %4 : vector<1x16x1xf32> to vector<16x1xf32>
    %c0_8 = arith.constant 0 : index
    %c0_9 = arith.constant 0 : index
    %c0_10 = arith.constant 0 : index
    %6 = vector.load %arg3[%c0_8, %c0_9, %c0_10] : memref<1x128x128xf32, #tpu.memory_space<vmem>>, vector<1x128x128xf32>
    %7 = vector.shape_cast %6 : vector<1x128x128xf32> to vector<128x128xf32>
    %c0_i32 = arith.constant 0 : i32
    %8 = arith.cmpi eq, %arg1, %c0_i32 : i32
    %9 = arith.extui %8 : i1 to i32
    %c0_i32_11 = arith.constant 0 : i32
    %10 = arith.cmpi ne, %9, %c0_i32_11 : i32
    scf.if %10 {
      %c0_73 = arith.constant 0 : index
      %c0_74 = arith.constant 0 : index
      %130 = vector.load %arg9[%c0_73, %c0_74] : memref<128x512xf32, #tpu.memory_space<vmem>>, vector<128x512xf32>
      %cst_75 = arith.constant dense<0.000000e+00> : vector<1x512xf32>
      %131 = tpu.matmul %3, %130, %cst_75 {dimension_numbers = #tpu.dot_dimension_numbers<[1], [0], [0], [1], [0, 0, 1, 1], [], []>} : vector<1x128xf32>, vector<128x512xf32>, vector<1x512xf32> -> vector<1x512xf32>
      %c0_76 = arith.constant 0 : index
      %c0_77 = arith.constant 0 : index
      %132 = vector.load %arg10[%c0_76, %c0_77] : memref<1x512xf32, #tpu.memory_space<vmem>>, vector<1x512xf32>
      %133 = arith.addf %131, %132 : vector<1x512xf32>
      %c0_78 = arith.constant 0 : index
      %c0_79 = arith.constant 0 : index
      %134 = vector.load %arg22[%c0_78, %c0_79] : memref<1x512xf32, #tpu.memory_space<vmem>>, vector<1x512xf32>
      tpu.vector_store %arg22[%c0_78, %c0_79], %133 {strides = array<i32>} : memref<1x512xf32, #tpu.memory_space<vmem>>, vector<1x512xf32>,
      %135 = vector.broadcast %5 : vector<16x1xf32> to vector<16x128xf32>
      %136 = arith.mulf %1, %135 : vector<16x128xf32>
      %c0_80 = arith.constant 0 : index
      %c0_81 = arith.constant 0 : index
      %137 = vector.load %arg23[%c0_80, %c0_81] : memref<16x128xf32, #tpu.memory_space<vmem>>, vector<16x128xf32>
      tpu.vector_store %arg23[%c0_80, %c0_81], %136 {strides = array<i32>} : memref<16x128xf32, #tpu.memory_space<vmem>>, vector<16x128xf32>,
      %cst_82 = arith.constant dense<0.000000e+00> : vector<128xf32>
      %138 = vector.multi_reduction <add>, %7, %cst_82 [0] : vector<128x128xf32> to vector<128xf32>
      %139 = vector.shape_cast %138 : vector<128xf32> to vector<1x128xf32>
      %cst_83 = arith.constant 7.812500e-03 : f32
      %140 = vector.broadcast %cst_83 : f32 to vector<1x128xf32>
      %141 = arith.mulf %139, %140 : vector<1x128xf32>
      %c0_84 = arith.constant 0 : index
      %c0_85 = arith.constant 0 : index
      %142 = vector.load %arg24[%c0_84, %c0_85] : memref<1x128xf32, #tpu.memory_space<vmem>>, vector<1x128xf32>
      tpu.vector_store %arg24[%c0_84, %c0_85], %141 {strides = array<i32>} : memref<1x128xf32, #tpu.memory_space<vmem>>, vector<1x128xf32>,
      %cst_86 = arith.constant 0.000000e+00 : f32
      %143 = vector.broadcast %cst_86 : f32 to vector<16x128xf32>
      %c0_87 = arith.constant 0 : index
      %c0_88 = arith.constant 0 : index
      %144 = vector.load %arg25[%c0_87, %c0_88] : memref<16x128xf32, #tpu.memory_space<vmem>>, vector<16x128xf32>
      tpu.vector_store %arg25[%c0_87, %c0_88], %143 {strides = array<i32>} : memref<16x128xf32, #tpu.memory_space<vmem>>, vector<16x128xf32>,
      %cst_89 = arith.constant 0.000000e+00 : f32
      %145 = vector.broadcast %cst_89 : f32 to vector<1x128xf32>
      %c0_90 = arith.constant 0 : index
      %c0_91 = arith.constant 0 : index
      %146 = vector.load %arg26[%c0_90, %c0_91] : memref<1x128xf32, #tpu.memory_space<vmem>>, vector<1x128xf32>
      tpu.vector_store %arg26[%c0_90, %c0_91], %145 {strides = array<i32>} : memref<1x128xf32, #tpu.memory_space<vmem>>, vector<1x128xf32>,
      %cst_92 = arith.constant 0.000000e+00 : f32
      %147 = vector.broadcast %cst_92 : f32 to vector<1x128xf32>
      %c0_93 = arith.constant 0 : index
      %c0_94 = arith.constant 0 : index
      %148 = vector.load %arg27[%c0_93, %c0_94] : memref<1x128xf32, #tpu.memory_space<vmem>>, vector<1x128xf32>
      tpu.vector_store %arg27[%c0_93, %c0_94], %147 {strides = array<i32>} : memref<1x128xf32, #tpu.memory_space<vmem>>, vector<1x128xf32>,
      %cst_95 = arith.constant 0x7F800000 : f32
      %149 = vector.broadcast %cst_95 : f32 to vector<1x128xf32>
      %c0_96 = arith.constant 0 : index
      %c0_97 = arith.constant 0 : index
      %150 = vector.load %arg28[%c0_96, %c0_97] : memref<1x128xf32, #tpu.memory_space<vmem>>, vector<1x128xf32>
      tpu.vector_store %arg28[%c0_96, %c0_97], %149 {strides = array<i32>} : memref<1x128xf32, #tpu.memory_space<vmem>>, vector<1x128xf32>,
      %cst_98 = arith.constant 0xFF800000 : f32
      %151 = vector.broadcast %cst_98 : f32 to vector<1x128xf32>
      %c0_99 = arith.constant 0 : index
      %c0_100 = arith.constant 0 : index
      %152 = vector.load %arg29[%c0_99, %c0_100] : memref<1x128xf32, #tpu.memory_space<vmem>>, vector<1x128xf32>
      tpu.vector_store %arg29[%c0_99, %c0_100], %151 {strides = array<i32>} : memref<1x128xf32, #tpu.memory_space<vmem>>, vector<1x128xf32>,
    } else {
    }
    %c0_12 = arith.constant 0 : index
    %c0_13 = arith.constant 0 : index
    %11 = vector.load %arg24[%c0_12, %c0_13] : memref<1x128xf32, #tpu.memory_space<vmem>>, vector<1x128xf32>
    %12 = vector.shape_cast %7 : vector<128x128xf32> to vector<8x16x128xf32>
    %cst = arith.constant dense<0.000000e+00> : vector<16x128xf32>
    %13 = vector.multi_reduction <add>, %12, %cst [0] : vector<8x16x128xf32> to vector<16x128xf32>
    %c0_14 = arith.constant 0 : index
    %c0_15 = arith.constant 0 : index
    %14 = vector.load %arg25[%c0_14, %c0_15] : memref<16x128xf32, #tpu.memory_space<vmem>>, vector<16x128xf32>
    %15 = arith.addf %14, %13 : vector<16x128xf32>
    %c0_16 = arith.constant 0 : index
    %c0_17 = arith.constant 0 : index
    %16 = vector.load %arg25[%c0_16, %c0_17] : memref<16x128xf32, #tpu.memory_space<vmem>>, vector<16x128xf32>
    tpu.vector_store %arg25[%c0_16, %c0_17], %15 {strides = array<i32>} : memref<16x128xf32, #tpu.memory_space<vmem>>, vector<16x128xf32>,
    %c0_18 = arith.constant 0 : index
    %c0_19 = arith.constant 0 : index
    %17 = vector.load %arg26[%c0_18, %c0_19] : memref<1x128xf32, #tpu.memory_space<vmem>>, vector<1x128xf32>
    %cst_20 = arith.constant dense<0.000000e+00> : vector<128xf32>
    %18 = vector.multi_reduction <add>, %13, %cst_20 [0] : vector<16x128xf32> to vector<128xf32>
    %19 = vector.shape_cast %18 : vector<128xf32> to vector<1x128xf32>
    %20 = arith.addf %17, %19 : vector<1x128xf32>
    %c0_21 = arith.constant 0 : index
    %c0_22 = arith.constant 0 : index
    %21 = vector.load %arg26[%c0_21, %c0_22] : memref<1x128xf32, #tpu.memory_space<vmem>>, vector<1x128xf32>
    tpu.vector_store %arg26[%c0_21, %c0_22], %20 {strides = array<i32>} : memref<1x128xf32, #tpu.memory_space<vmem>>, vector<1x128xf32>,
    %22 = vector.broadcast %11 : vector<1x128xf32> to vector<128x128xf32>
    %23 = arith.subf %7, %22 : vector<128x128xf32>
    %c0_23 = arith.constant 0 : index
    %c0_24 = arith.constant 0 : index
    %24 = vector.load %arg27[%c0_23, %c0_24] : memref<1x128xf32, #tpu.memory_space<vmem>>, vector<1x128xf32>
    %25 = arith.mulf %23, %23 : vector<128x128xf32>
    %cst_25 = arith.constant dense<0.000000e+00> : vector<128xf32>
    %26 = vector.multi_reduction <add>, %25, %cst_25 [0] : vector<128x128xf32> to vector<128xf32>
    %27 = vector.shape_cast %26 : vector<128xf32> to vector<1x128xf32>
    %28 = arith.addf %24, %27 : vector<1x128xf32>
    %c0_26 = arith.constant 0 : index
    %c0_27 = arith.constant 0 : index
    %29 = vector.load %arg27[%c0_26, %c0_27] : memref<1x128xf32, #tpu.memory_space<vmem>>, vector<1x128xf32>
    tpu.vector_store %arg27[%c0_26, %c0_27], %28 {strides = array<i32>} : memref<1x128xf32, #tpu.memory_space<vmem>>, vector<1x128xf32>,
    %c0_28 = arith.constant 0 : index
    %c0_29 = arith.constant 0 : index
    %30 = vector.load %arg28[%c0_28, %c0_29] : memref<1x128xf32, #tpu.memory_space<vmem>>, vector<1x128xf32>
    %cst_30 = arith.constant dense<0x7F800000> : vector<128xf32>
    %31 = vector.multi_reduction <minimumf>, %7, %cst_30 [0] : vector<128x128xf32> to vector<128xf32>
    %32 = vector.shape_cast %31 : vector<128xf32> to vector<1x128xf32>
    %33 = arith.minimumf %30, %32 : vector<1x128xf32>
    %c0_31 = arith.constant 0 : index
    %c0_32 = arith.constant 0 : index
    %34 = vector.load %arg28[%c0_31, %c0_32] : memref<1x128xf32, #tpu.memory_space<vmem>>, vector<1x128xf32>
    tpu.vector_store %arg28[%c0_31, %c0_32], %33 {strides = array<i32>} : memref<1x128xf32, #tpu.memory_space<vmem>>, vector<1x128xf32>,
    %c0_33 = arith.constant 0 : index
    %c0_34 = arith.constant 0 : index
    %35 = vector.load %arg29[%c0_33, %c0_34] : memref<1x128xf32, #tpu.memory_space<vmem>>, vector<1x128xf32>
    %cst_35 = arith.constant dense<0xFF800000> : vector<128xf32>
    %36 = vector.multi_reduction <maximumf>, %7, %cst_35 [0] : vector<128x128xf32> to vector<128xf32>
    %37 = vector.shape_cast %36 : vector<128xf32> to vector<1x128xf32>
    %38 = arith.maximumf %35, %37 : vector<1x128xf32>
    %c0_36 = arith.constant 0 : index
    %c0_37 = arith.constant 0 : index
    %39 = vector.load %arg29[%c0_36, %c0_37] : memref<1x128xf32, #tpu.memory_space<vmem>>, vector<1x128xf32>
    tpu.vector_store %arg29[%c0_36, %c0_37], %38 {strides = array<i32>} : memref<1x128xf32, #tpu.memory_space<vmem>>, vector<1x128xf32>,
    %c8_i32 = arith.constant 8 : i32
    %40 = arith.muli %arg1, %c8_i32 : i32
    %41 = tpu.assume_multiple %40, 8 : i32
    %c0_38 = arith.constant 0 : index
    %42 = arith.index_cast %41 : i32 to index
    %c0_39 = arith.constant 0 : index
    %43 = vector.load %arg6[%c0_38, %42, %c0_39] : memref<1x16x1xf32, #tpu.memory_space<vmem>>, vector<1x8x1xf32>
    %44 = vector.shape_cast %43 : vector<1x8x1xf32> to vector<8x1xf32>
    %45 = arith.index_cast %41 : i32 to index
    %c0_40 = arith.constant 0 : index
    %46 = vector.load %arg23[%45, %c0_40] : memref<16x128xf32, #tpu.memory_space<vmem>>, vector<8x128xf32>
    %cst_41 = arith.constant 0.176776692 : f32
    %47 = vector.broadcast %cst_41 : f32 to vector<8x128xf32>
    %48 = arith.mulf %46, %47 : vector<8x128xf32>
    %c0_42 = arith.constant 0 : index
    %c0_43 = arith.constant 0 : index
    %49 = vector.load %arg23[%c0_42, %c0_43] : memref<16x128xf32, #tpu.memory_space<vmem>>, vector<16x128xf32>
    %50 = vector.shape_cast %48 : vector<8x128xf32> to vector<8x1x128xf32>
    %51 = vector.shape_cast %49 : vector<16x128xf32> to vector<1x16x128xf32>
    %52 = vector.broadcast %50 : vector<8x1x128xf32> to vector<8x16x128xf32>
    %53 = vector.broadcast %51 : vector<1x16x128xf32> to vector<8x16x128xf32>
    %54 = arith.mulf %52, %53 : vector<8x16x128xf32>
    %55 = vector.shape_cast %54 : vector<8x16x128xf32> to vector<128x128xf32>
    %56 = vector.shape_cast %44 : vector<8x1xf32> to vector<8x1x1xf32>
    %57 = vector.shape_cast %5 : vector<16x1xf32> to vector<1x16x1xf32>
    %58 = vector.broadcast %56 : vector<8x1x1xf32> to vector<8x16x1xf32>
    %59 = vector.broadcast %57 : vector<1x16x1xf32> to vector<8x16x1xf32>
    %60 = arith.mulf %58, %59 : vector<8x16x1xf32>
    %61 = vector.shape_cast %60 : vector<8x16x1xf32> to vector<128x1xf32>
    %c0_44 = arith.constant 0 : index
    %c0_45 = arith.constant 0 : index
    %62 = vector.load %arg7[%c0_44, %c0_45] : memref<128x256xf32, #tpu.memory_space<vmem>>, vector<128x256xf32>
    %cst_46 = arith.constant dense<0.000000e+00> : vector<128x256xf32>
    %63 = tpu.matmul %7, %62, %cst_46 {dimension_numbers = #tpu.dot_dimension_numbers<[1], [0], [0], [1], [0, 0, 1, 1], [], []>} : vector<128x128xf32>, vector<128x256xf32>, vector<128x256xf32> -> vector<128x256xf32>
    %c0_47 = arith.constant 0 : index
    %c0_48 = arith.constant 0 : index
    %64 = vector.load %arg8[%c0_47, %c0_48] : memref<1x256xf32, #tpu.memory_space<vmem>>, vector<1x256xf32>
    %65 = vector.broadcast %64 : vector<1x256xf32> to vector<128x256xf32>
    %66 = arith.addf %63, %65 : vector<128x256xf32>
    %67 = vector.extract_strided_slice %66 {offsets = [0, 0], sizes = [128, 128], strides = [1, 1]} : vector<128x256xf32> to vector<128x128xf32>
    %68 = vector.extract_strided_slice %66 {offsets = [0, 128], sizes = [128, 128], strides = [1, 1]} : vector<128x256xf32> to vector<128x128xf32>
    %cst_49 = arith.constant 1.000000e+00 : f32
    %69 = vector.broadcast %cst_49 : f32 to vector<128x128xf32>
    %70 = arith.addf %67, %69 : vector<128x128xf32>
    %71 = arith.mulf %55, %70 : vector<128x128xf32>
    %72 = arith.addf %71, %68 : vector<128x128xf32>
    %c0_50 = arith.constant 0 : index
    %c0_51 = arith.constant 0 : index
    %73 = vector.load %arg22[%c0_50, %c0_51] : memref<1x512xf32, #tpu.memory_space<vmem>>, vector<1x128xf32>
    %c0_52 = arith.constant 0 : index
    %c128 = arith.constant 128 : index
    %74 = vector.load %arg22[%c0_52, %c128] : memref<1x512xf32, #tpu.memory_space<vmem>>, vector<1x128xf32>
    %cst_53 = arith.constant 1.000000e+00 : f32
    %75 = vector.broadcast %cst_53 : f32 to vector<1x128xf32>
    %76 = arith.addf %74, %75 : vector<1x128xf32>
    %77 = vector.broadcast %76 : vector<1x128xf32> to vector<128x128xf32>
    %78 = arith.mulf %77, %72 : vector<128x128xf32>
    %79 = vector.broadcast %73 : vector<1x128xf32> to vector<128x128xf32>
    %80 = arith.addf %79, %78 : vector<128x128xf32>
    %81 = vector.broadcast %61 : vector<128x1xf32> to vector<128x128xf32>
    %82 = arith.mulf %80, %81 : vector<128x128xf32>
    %c1 = arith.constant 1 : index
    %c0_54 = arith.constant 0 : index
    %c0_55 = arith.constant 0 : index
    %83 = vector.load %arg13[%c1, %c0_54, %c0_55] : memref<4x128x128xf32, #tpu.memory_space<vmem>>, vector<1x128x128xf32>
    %84 = vector.shape_cast %83 : vector<1x128x128xf32> to vector<128x128xf32>
    %cst_56 = arith.constant dense<0.000000e+00> : vector<128x128xf32>
    %85 = tpu.matmul %82, %84, %cst_56 {dimension_numbers = #tpu.dot_dimension_numbers<[1], [0], [0], [1], [0, 0, 1, 1], [], []>} : vector<128x128xf32>, vector<128x128xf32>, vector<128x128xf32> -> vector<128x128xf32>
    %c1_57 = arith.constant 1 : index
    %c0_58 = arith.constant 0 : index
    %86 = vector.load %arg14[%c1_57, %c0_58] : memref<4x128xf32, #tpu.memory_space<vmem>>, vector<1x128xf32>
    %87 = vector.shape_cast %86 : vector<1x128xf32> to vector<128xf32>
    %88 = vector.shape_cast %87 : vector<128xf32> to vector<1x128xf32>
    %89 = vector.broadcast %88 : vector<1x128xf32> to vector<128x128xf32>
    %90 = arith.addf %85, %89 : vector<128x128xf32>
    %91 = arith.addf %7, %90 : vector<128x128xf32>
    %cst_59 = arith.constant dense<0.000000e+00> : vector<128xf32>
    %92 = vector.multi_reduction <add>, %91, %cst_59 [1] : vector<128x128xf32> to vector<128xf32>
    %93 = vector.shape_cast %92 : vector<128xf32> to vector<128x1xf32>
    %cst_60 = arith.constant 3.125000e-02 : f32
    %94 = vector.broadcast %cst_60 : f32 to vector<128x1xf32>
    %95 = arith.mulf %93, %94 : vector<128x1xf32>
    %96 = vector.broadcast %95 : vector<128x1xf32> to vector<128x128xf32>
    %97 = arith.subf %91, %96 : vector<128x128xf32>
    %98 = arith.mulf %97, %97 : vector<128x128xf32>
    %cst_61 = arith.constant dense<0.000000e+00> : vector<128xf32>
    %99 = vector.multi_reduction <add>, %98, %cst_61 [1] : vector<128x128xf32> to vector<128xf32>
    %100 = vector.shape_cast %99 : vector<128xf32> to vector<128x1xf32>
    %cst_62 = arith.constant 9.600000e+01 : f32
    %101 = vector.broadcast %cst_62 : f32 to vector<128x1xf32>
    %102 = arith.mulf %101, %95 : vector<128x1xf32>
    %103 = arith.mulf %102, %95 : vector<128x1xf32>
    %104 = arith.subf %100, %103 : vector<128x1xf32>
    %cst_63 = arith.constant 3.125000e-02 : f32
    %105 = vector.broadcast %cst_63 : f32 to vector<128x1xf32>
    %106 = arith.mulf %104, %105 : vector<128x1xf32>
    %cst_64 = arith.constant 9.99999974E-6 : f32
    %107 = vector.broadcast %cst_64 : f32 to vector<128x1xf32>
    %108 = arith.addf %106, %107 : vector<128x1xf32>
    %109 = math.rsqrt %108 : vector<128x1xf32>
    %110 = vector.broadcast %109 : vector<128x1xf32> to vector<128x128xf32>
    %111 = arith.mulf %97, %110 : vector<128x128xf32>
    %c1_65 = arith.constant 1 : index
    %c0_66 = arith.constant 0 : index
    %112 = vector.load %arg17[%c1_65, %c0_66] : memref<3x128xf32, #tpu.memory_space<vmem>>, vector<1x128xf32>
    %113 = vector.shape_cast %112 : vector<1x128xf32> to vector<128xf32>
    %114 = vector.shape_cast %113 : vector<128xf32> to vector<1x128xf32>
    %115 = vector.broadcast %114 : vector<1x128xf32> to vector<128x128xf32>
    %116 = arith.mulf %111, %115 : vector<128x128xf32>
    %c1_67 = arith.constant 1 : index
    %c0_68 = arith.constant 0 : index
    %117 = vector.load %arg18[%c1_67, %c0_68] : memref<3x128xf32, #tpu.memory_space<vmem>>, vector<1x128xf32>
    %118 = vector.shape_cast %117 : vector<1x128xf32> to vector<128xf32>
    %119 = vector.shape_cast %118 : vector<128xf32> to vector<1x128xf32>
    %120 = vector.broadcast %119 : vector<1x128xf32> to vector<128x128xf32>
    %121 = arith.addf %116, %120 : vector<128x128xf32>
    %122 = vector.broadcast %61 : vector<128x1xf32> to vector<128x128xf32>
    %123 = arith.mulf %121, %122 : vector<128x128xf32>
    %c0_69 = arith.constant 0 : index
    %c0_70 = arith.constant 0 : index
    %c0_71 = arith.constant 0 : index
    %124 = vector.load %arg20[%c0_69, %c0_70, %c0_71] : memref<1x128x128xf32, #tpu.memory_space<vmem>>, vector<1x128x128xf32>
    %125 = vector.shape_cast %124 : vector<1x128x128xf32> to vector<128x128xf32>
    %126 = vector.shape_cast %123 : vector<128x128xf32> to vector<1x128x128xf32>
    tpu.vector_store %arg20[%c0_69, %c0_70, %c0_71], %126 {strides = array<i32>} : memref<1x128x128xf32, #tpu.memory_space<vmem>>, vector<1x128x128xf32>,
    %c1_i32 = arith.constant 1 : i32
    %127 = arith.cmpi eq, %arg1, %c1_i32 : i32
    %128 = arith.extui %127 : i1 to i32
    %c0_i32_72 = arith.constant 0 : i32
    %129 = arith.cmpi ne, %128, %c0_i32_72 : i32
    scf.if %129 {
      %c0_73 = arith.constant 0 : index
      %c0_74 = arith.constant 0 : index
      %c0_75 = arith.constant 0 : index
      %130 = vector.load %arg5[%c0_73, %c0_74, %c0_75] : memref<1x16x1xf32, #tpu.memory_space<vmem>>, vector<1x16x1xf32>
      %131 = vector.shape_cast %130 : vector<1x16x1xf32> to vector<16x1xf32>
      %c0_76 = arith.constant 0 : index
      %c0_77 = arith.constant 0 : index
      %132 = vector.load %arg25[%c0_76, %c0_77] : memref<16x128xf32, #tpu.memory_space<vmem>>, vector<16x128xf32>
      %133 = vector.broadcast %131 : vector<16x1xf32> to vector<16x128xf32>
      %134 = arith.divf %132, %133 : vector<16x128xf32>
      %c0_78 = arith.constant 0 : index
      %c0_79 = arith.constant 0 : index
      %135 = vector.load %arg11[%c0_78, %c0_79] : memref<128x256xf32, #tpu.memory_space<vmem>>, vector<128x256xf32>
      %cst_80 = arith.constant dense<0.000000e+00> : vector<16x256xf32>
      %136 = tpu.matmul %134, %135, %cst_80 {dimension_numbers = #tpu.dot_dimension_numbers<[1], [0], [0], [1], [0, 0, 1, 1], [], []>} : vector<16x128xf32>, vector<128x256xf32>, vector<16x256xf32> -> vector<16x256xf32>
      %c0_81 = arith.constant 0 : index
      %c0_82 = arith.constant 0 : index
      %137 = vector.load %arg12[%c0_81, %c0_82] : memref<1x256xf32, #tpu.memory_space<vmem>>, vector<1x256xf32>
      %138 = vector.broadcast %137 : vector<1x256xf32> to vector<16x256xf32>
      %139 = arith.addf %136, %138 : vector<16x256xf32>
      %140 = vector.extract_strided_slice %139 {offsets = [0, 0], sizes = [16, 128], strides = [1, 1]} : vector<16x256xf32> to vector<16x128xf32>
      %141 = vector.extract_strided_slice %139 {offsets = [0, 128], sizes = [16, 128], strides = [1, 1]} : vector<16x256xf32> to vector<16x128xf32>
      %c0_83 = arith.constant 0 : index
      %c256 = arith.constant 256 : index
      %142 = vector.load %arg22[%c0_83, %c256] : memref<1x512xf32, #tpu.memory_space<vmem>>, vector<1x128xf32>
      %c0_84 = arith.constant 0 : index
      %c384 = arith.constant 384 : index
      %143 = vector.load %arg22[%c0_84, %c384] : memref<1x512xf32, #tpu.memory_space<vmem>>, vector<1x128xf32>
      %cst_85 = arith.constant 1.000000e+00 : f32
      %144 = vector.broadcast %cst_85 : f32 to vector<16x128xf32>
      %145 = arith.addf %141, %144 : vector<16x128xf32>
      %146 = arith.mulf %145, %1 : vector<16x128xf32>
      %147 = arith.addf %140, %146 : vector<16x128xf32>
      %148 = vector.broadcast %5 : vector<16x1xf32> to vector<16x128xf32>
      %149 = arith.mulf %147, %148 : vector<16x128xf32>
      %cst_86 = arith.constant 1.000000e+00 : f32
      %150 = vector.broadcast %cst_86 : f32 to vector<1x128xf32>
      %151 = arith.addf %143, %150 : vector<1x128xf32>
      %152 = vector.broadcast %151 : vector<1x128xf32> to vector<16x128xf32>
      %153 = arith.mulf %152, %149 : vector<16x128xf32>
      %154 = vector.broadcast %142 : vector<1x128xf32> to vector<16x128xf32>
      %155 = arith.addf %154, %153 : vector<16x128xf32>
      %156 = vector.broadcast %5 : vector<16x1xf32> to vector<16x128xf32>
      %157 = arith.mulf %155, %156 : vector<16x128xf32>
      %c0_87 = arith.constant 0 : index
      %c0_88 = arith.constant 0 : index
      %c0_89 = arith.constant 0 : index
      %158 = vector.load %arg13[%c0_87, %c0_88, %c0_89] : memref<4x128x128xf32, #tpu.memory_space<vmem>>, vector<1x128x128xf32>
      %159 = vector.shape_cast %158 : vector<1x128x128xf32> to vector<128x128xf32>
      %cst_90 = arith.constant dense<0.000000e+00> : vector<16x128xf32>
      %160 = tpu.matmul %157, %159, %cst_90 {dimension_numbers = #tpu.dot_dimension_numbers<[1], [0], [0], [1], [0, 0, 1, 1], [], []>} : vector<16x128xf32>, vector<128x128xf32>, vector<16x128xf32> -> vector<16x128xf32>
      %c0_91 = arith.constant 0 : index
      %c0_92 = arith.constant 0 : index
      %161 = vector.load %arg14[%c0_91, %c0_92] : memref<4x128xf32, #tpu.memory_space<vmem>>, vector<1x128xf32>
      %162 = vector.shape_cast %161 : vector<1x128xf32> to vector<128xf32>
      %163 = vector.shape_cast %162 : vector<128xf32> to vector<1x128xf32>
      %164 = vector.broadcast %163 : vector<1x128xf32> to vector<16x128xf32>
      %165 = arith.addf %160, %164 : vector<16x128xf32>
      %166 = arith.addf %1, %165 : vector<16x128xf32>
      %cst_93 = arith.constant dense<0.000000e+00> : vector<16xf32>
      %167 = vector.multi_reduction <add>, %166, %cst_93 [1] : vector<16x128xf32> to vector<16xf32>
      %168 = vector.shape_cast %167 : vector<16xf32> to vector<16x1xf32>
      %cst_94 = arith.constant 3.125000e-02 : f32
      %169 = vector.broadcast %cst_94 : f32 to vector<16x1xf32>
      %170 = arith.mulf %168, %169 : vector<16x1xf32>
      %171 = vector.broadcast %170 : vector<16x1xf32> to vector<16x128xf32>
      %172 = arith.subf %166, %171 : vector<16x128xf32>
      %173 = arith.mulf %172, %172 : vector<16x128xf32>
      %cst_95 = arith.constant dense<0.000000e+00> : vector<16xf32>
      %174 = vector.multi_reduction <add>, %173, %cst_95 [1] : vector<16x128xf32> to vector<16xf32>
      %175 = vector.shape_cast %174 : vector<16xf32> to vector<16x1xf32>
      %cst_96 = arith.constant 9.600000e+01 : f32
      %176 = vector.broadcast %cst_96 : f32 to vector<16x1xf32>
      %177 = arith.mulf %176, %170 : vector<16x1xf32>
      %178 = arith.mulf %177, %170 : vector<16x1xf32>
      %179 = arith.subf %175, %178 : vector<16x1xf32>
      %cst_97 = arith.constant 3.125000e-02 : f32
      %180 = vector.broadcast %cst_97 : f32 to vector<16x1xf32>
      %181 = arith.mulf %179, %180 : vector<16x1xf32>
      %cst_98 = arith.constant 9.99999974E-6 : f32
      %182 = vector.broadcast %cst_98 : f32 to vector<16x1xf32>
      %183 = arith.addf %181, %182 : vector<16x1xf32>
      %184 = math.rsqrt %183 : vector<16x1xf32>
      %185 = vector.broadcast %184 : vector<16x1xf32> to vector<16x128xf32>
      %186 = arith.mulf %172, %185 : vector<16x128xf32>
      %c0_99 = arith.constant 0 : index
      %c0_100 = arith.constant 0 : index
      %187 = vector.load %arg17[%c0_99, %c0_100] : memref<3x128xf32, #tpu.memory_space<vmem>>, vector<1x128xf32>
      %188 = vector.shape_cast %187 : vector<1x128xf32> to vector<128xf32>
      %189 = vector.shape_cast %188 : vector<128xf32> to vector<1x128xf32>
      %190 = vector.broadcast %189 : vector<1x128xf32> to vector<16x128xf32>
      %191 = arith.mulf %186, %190 : vector<16x128xf32>
      %c0_101 = arith.constant 0 : index
      %c0_102 = arith.constant 0 : index
      %192 = vector.load %arg18[%c0_101, %c0_102] : memref<3x128xf32, #tpu.memory_space<vmem>>, vector<1x128xf32>
      %193 = vector.shape_cast %192 : vector<1x128xf32> to vector<128xf32>
      %194 = vector.shape_cast %193 : vector<128xf32> to vector<1x128xf32>
      %195 = vector.broadcast %194 : vector<1x128xf32> to vector<16x128xf32>
      %196 = arith.addf %191, %195 : vector<16x128xf32>
      %197 = vector.broadcast %5 : vector<16x1xf32> to vector<16x128xf32>
      %198 = arith.mulf %196, %197 : vector<16x128xf32>
      %c0_103 = arith.constant 0 : index
      %c0_104 = arith.constant 0 : index
      %c0_105 = arith.constant 0 : index
      %199 = vector.load %arg19[%c0_103, %c0_104, %c0_105] : memref<1x16x128xf32, #tpu.memory_space<vmem>>, vector<1x16x128xf32>
      %200 = vector.shape_cast %199 : vector<1x16x128xf32> to vector<16x128xf32>
      %201 = vector.shape_cast %198 : vector<16x128xf32> to vector<1x16x128xf32>
      tpu.vector_store %arg19[%c0_103, %c0_104, %c0_105], %201 {strides = array<i32>} : memref<1x16x128xf32, #tpu.memory_space<vmem>>, vector<1x16x128xf32>,
      %cst_106 = arith.constant dense<0.000000e+00> : vector<128xf32>
      %202 = vector.multi_reduction <add>, %1, %cst_106 [0] : vector<16x128xf32> to vector<128xf32>
      %203 = vector.shape_cast %202 : vector<128xf32> to vector<1x128xf32>
      %cst_107 = arith.constant 1.600000e+01 : f32
      %204 = vector.broadcast %cst_107 : f32 to vector<1x128xf32>
      %205 = arith.divf %203, %204 : vector<1x128xf32>
      %cst_108 = arith.constant dense<0x7F800000> : vector<128xf32>
      %206 = vector.multi_reduction <minimumf>, %1, %cst_108 [0] : vector<16x128xf32> to vector<128xf32>
      %207 = vector.shape_cast %206 : vector<128xf32> to vector<1x128xf32>
      %cst_109 = arith.constant dense<0xFF800000> : vector<128xf32>
      %208 = vector.multi_reduction <maximumf>, %1, %cst_109 [0] : vector<16x128xf32> to vector<128xf32>
      %209 = vector.shape_cast %208 : vector<128xf32> to vector<1x128xf32>
      %210 = vector.broadcast %205 : vector<1x128xf32> to vector<16x128xf32>
      %211 = arith.subf %1, %210 : vector<16x128xf32>
      %212 = arith.mulf %211, %211 : vector<16x128xf32>
      %cst_110 = arith.constant dense<0.000000e+00> : vector<128xf32>
      %213 = vector.multi_reduction <add>, %212, %cst_110 [0] : vector<16x128xf32> to vector<128xf32>
      %214 = vector.shape_cast %213 : vector<128xf32> to vector<1x128xf32>
      %cst_111 = arith.constant 1.500000e+01 : f32
      %215 = vector.broadcast %cst_111 : f32 to vector<1x128xf32>
      %216 = arith.divf %214, %215 : vector<1x128xf32>
      %217 = math.sqrt %216 : vector<1x128xf32>
      %c0_112 = arith.constant 0 : index
      %c0_113 = arith.constant 0 : index
      %218 = vector.load %arg26[%c0_112, %c0_113] : memref<1x128xf32, #tpu.memory_space<vmem>>, vector<1x128xf32>
      %cst_114 = arith.constant 3.906250e-03 : f32
      %219 = vector.broadcast %cst_114 : f32 to vector<1x128xf32>
      %220 = arith.mulf %218, %219 : vector<1x128xf32>
      %c0_115 = arith.constant 0 : index
      %c0_116 = arith.constant 0 : index
      %221 = vector.load %arg24[%c0_115, %c0_116] : memref<1x128xf32, #tpu.memory_space<vmem>>, vector<1x128xf32>
      %222 = arith.subf %220, %221 : vector<1x128xf32>
      %c0_117 = arith.constant 0 : index
      %c0_118 = arith.constant 0 : index
      %223 = vector.load %arg27[%c0_117, %c0_118] : memref<1x128xf32, #tpu.memory_space<vmem>>, vector<1x128xf32>
      %cst_119 = arith.constant 2.560000e+02 : f32
      %224 = vector.broadcast %cst_119 : f32 to vector<1x128xf32>
      %225 = arith.mulf %224, %222 : vector<1x128xf32>
      %226 = arith.mulf %225, %222 : vector<1x128xf32>
      %227 = arith.subf %223, %226 : vector<1x128xf32>
      %cst_120 = arith.constant 2.550000e+02 : f32
      %228 = vector.broadcast %cst_120 : f32 to vector<1x128xf32>
      %229 = arith.divf %227, %228 : vector<1x128xf32>
      %cst_121 = arith.constant 0.000000e+00 : f32
      %230 = vector.broadcast %cst_121 : f32 to vector<1x128xf32>
      %231 = arith.maximumf %229, %230 : vector<1x128xf32>
      %232 = math.sqrt %231 : vector<1x128xf32>
      %233 = tpu.concatenate %205, %207, %209, %217 in 1 : vector<1x128xf32>, vector<1x128xf32>, vector<1x128xf32>, vector<1x128xf32> -> vector<1x512xf32>
      %c0_122 = arith.constant 0 : index
      %c0_123 = arith.constant 0 : index
      %234 = vector.load %arg28[%c0_122, %c0_123] : memref<1x128xf32, #tpu.memory_space<vmem>>, vector<1x128xf32>
      %c0_124 = arith.constant 0 : index
      %c0_125 = arith.constant 0 : index
      %235 = vector.load %arg29[%c0_124, %c0_125] : memref<1x128xf32, #tpu.memory_space<vmem>>, vector<1x128xf32>
      %236 = tpu.concatenate %220, %234, %235, %232 in 1 : vector<1x128xf32>, vector<1x128xf32>, vector<1x128xf32>, vector<1x128xf32> -> vector<1x512xf32>
      %c0_126 = arith.constant 0 : index
      %c0_127 = arith.constant 0 : index
      %c0_128 = arith.constant 0 : index
      %237 = vector.load %arg15[%c0_126, %c0_127, %c0_128] : memref<2x512x128xf32, #tpu.memory_space<vmem>>, vector<1x512x128xf32>
      %238 = vector.shape_cast %237 : vector<1x512x128xf32> to vector<512x128xf32>
      %cst_129 = arith.constant dense<0.000000e+00> : vector<1x128xf32>
      %239 = tpu.matmul %233, %238, %cst_129 {dimension_numbers = #tpu.dot_dimension_numbers<[1], [0], [0], [1], [0, 0, 1, 1], [], []>} : vector<1x512xf32>, vector<512x128xf32>, vector<1x128xf32> -> vector<1x128xf32>
      %240 = arith.addf %3, %239 : vector<1x128xf32>
      %c0_130 = arith.constant 0 : index
      %c0_131 = arith.constant 0 : index
      %241 = vector.load %arg16[%c0_130, %c0_131] : memref<2x128xf32, #tpu.memory_space<vmem>>, vector<1x128xf32>
      %242 = vector.shape_cast %241 : vector<1x128xf32> to vector<128xf32>
      %243 = vector.shape_cast %242 : vector<128xf32> to vector<1x128xf32>
      %244 = arith.addf %240, %243 : vector<1x128xf32>
      %c1_132 = arith.constant 1 : index
      %c0_133 = arith.constant 0 : index
      %c0_134 = arith.constant 0 : index
      %245 = vector.load %arg15[%c1_132, %c0_133, %c0_134] : memref<2x512x128xf32, #tpu.memory_space<vmem>>, vector<1x512x128xf32>
      %246 = vector.shape_cast %245 : vector<1x512x128xf32> to vector<512x128xf32>
      %cst_135 = arith.constant dense<0.000000e+00> : vector<1x128xf32>
      %247 = tpu.matmul %236, %246, %cst_135 {dimension_numbers = #tpu.dot_dimension_numbers<[1], [0], [0], [1], [0, 0, 1, 1], [], []>} : vector<1x512xf32>, vector<512x128xf32>, vector<1x128xf32> -> vector<1x128xf32>
      %248 = arith.addf %244, %247 : vector<1x128xf32>
      %c1_136 = arith.constant 1 : index
      %c0_137 = arith.constant 0 : index
      %249 = vector.load %arg16[%c1_136, %c0_137] : memref<2x128xf32, #tpu.memory_space<vmem>>, vector<1x128xf32>
      %250 = vector.shape_cast %249 : vector<1x128xf32> to vector<128xf32>
      %251 = vector.shape_cast %250 : vector<128xf32> to vector<1x128xf32>
      %252 = arith.addf %248, %251 : vector<1x128xf32>
      %c2 = arith.constant 2 : index
      %c0_138 = arith.constant 0 : index
      %c0_139 = arith.constant 0 : index
      %253 = vector.load %arg13[%c2, %c0_138, %c0_139] : memref<4x128x128xf32, #tpu.memory_space<vmem>>, vector<1x128x128xf32>
      %254 = vector.shape_cast %253 : vector<1x128x128xf32> to vector<128x128xf32>
      %cst_140 = arith.constant dense<0.000000e+00> : vector<1x128xf32>
      %255 = tpu.matmul %252, %254, %cst_140 {dimension_numbers = #tpu.dot_dimension_numbers<[1], [0], [0], [1], [0, 0, 1, 1], [], []>} : vector<1x128xf32>, vector<128x128xf32>, vector<1x128xf32> -> vector<1x128xf32>
      %c2_141 = arith.constant 2 : index
      %c0_142 = arith.constant 0 : index
      %256 = vector.load %arg14[%c2_141, %c0_142] : memref<4x128xf32, #tpu.memory_space<vmem>>, vector<1x128xf32>
      %257 = vector.shape_cast %256 : vector<1x128xf32> to vector<128xf32>
      %258 = vector.shape_cast %257 : vector<128xf32> to vector<1x128xf32>
      %259 = arith.addf %255, %258 : vector<1x128xf32>
      %cst_143 = arith.constant 0.000000e+00 : f32
      %260 = vector.broadcast %cst_143 : f32 to vector<1x128xf32>
      %261 = arith.maximumf %259, %260 : vector<1x128xf32>
      %c3 = arith.constant 3 : index
      %c0_144 = arith.constant 0 : index
      %c0_145 = arith.constant 0 : index
      %262 = vector.load %arg13[%c3, %c0_144, %c0_145] : memref<4x128x128xf32, #tpu.memory_space<vmem>>, vector<1x128x128xf32>
      %263 = vector.shape_cast %262 : vector<1x128x128xf32> to vector<128x128xf32>
      %cst_146 = arith.constant dense<0.000000e+00> : vector<1x128xf32>
      %264 = tpu.matmul %261, %263, %cst_146 {dimension_numbers = #tpu.dot_dimension_numbers<[1], [0], [0], [1], [0, 0, 1, 1], [], []>} : vector<1x128xf32>, vector<128x128xf32>, vector<1x128xf32> -> vector<1x128xf32>
      %c3_147 = arith.constant 3 : index
      %c0_148 = arith.constant 0 : index
      %265 = vector.load %arg14[%c3_147, %c0_148] : memref<4x128xf32, #tpu.memory_space<vmem>>, vector<1x128xf32>
      %266 = vector.shape_cast %265 : vector<1x128xf32> to vector<128xf32>
      %267 = vector.shape_cast %266 : vector<128xf32> to vector<1x128xf32>
      %268 = arith.addf %264, %267 : vector<1x128xf32>
      %269 = arith.addf %3, %268 : vector<1x128xf32>
      %cst_149 = arith.constant dense<0.000000e+00> : vector<1xf32>
      %270 = vector.multi_reduction <add>, %269, %cst_149 [1] : vector<1x128xf32> to vector<1xf32>
      %271 = vector.shape_cast %270 : vector<1xf32> to vector<1x1xf32>
      %cst_150 = arith.constant 3.125000e-02 : f32
      %272 = vector.broadcast %cst_150 : f32 to vector<1x1xf32>
      %273 = arith.mulf %271, %272 : vector<1x1xf32>
      %274 = vector.broadcast %273 : vector<1x1xf32> to vector<1x128xf32>
      %275 = arith.subf %269, %274 : vector<1x128xf32>
      %276 = arith.mulf %275, %275 : vector<1x128xf32>
      %cst_151 = arith.constant dense<0.000000e+00> : vector<1xf32>
      %277 = vector.multi_reduction <add>, %276, %cst_151 [1] : vector<1x128xf32> to vector<1xf32>
      %278 = vector.shape_cast %277 : vector<1xf32> to vector<1x1xf32>
      %cst_152 = arith.constant 9.600000e+01 : f32
      %279 = vector.broadcast %cst_152 : f32 to vector<1x1xf32>
      %280 = arith.mulf %279, %273 : vector<1x1xf32>
      %281 = arith.mulf %280, %273 : vector<1x1xf32>
      %282 = arith.subf %278, %281 : vector<1x1xf32>
      %cst_153 = arith.constant 3.125000e-02 : f32
      %283 = vector.broadcast %cst_153 : f32 to vector<1x1xf32>
      %284 = arith.mulf %282, %283 : vector<1x1xf32>
      %cst_154 = arith.constant 9.99999974E-6 : f32
      %285 = vector.broadcast %cst_154 : f32 to vector<1x1xf32>
      %286 = arith.addf %284, %285 : vector<1x1xf32>
      %287 = math.rsqrt %286 : vector<1x1xf32>
      %288 = vector.broadcast %287 : vector<1x1xf32> to vector<1x128xf32>
      %289 = arith.mulf %275, %288 : vector<1x128xf32>
      %c2_155 = arith.constant 2 : index
      %c0_156 = arith.constant 0 : index
      %290 = vector.load %arg17[%c2_155, %c0_156] : memref<3x128xf32, #tpu.memory_space<vmem>>, vector<1x128xf32>
      %291 = vector.shape_cast %290 : vector<1x128xf32> to vector<128xf32>
      %292 = vector.shape_cast %291 : vector<128xf32> to vector<1x128xf32>
      %293 = arith.mulf %289, %292 : vector<1x128xf32>
      %c2_157 = arith.constant 2 : index
      %c0_158 = arith.constant 0 : index
      %294 = vector.load %arg18[%c2_157, %c0_158] : memref<3x128xf32, #tpu.memory_space<vmem>>, vector<1x128xf32>
      %295 = vector.shape_cast %294 : vector<1x128xf32> to vector<128xf32>
      %296 = vector.shape_cast %295 : vector<128xf32> to vector<1x128xf32>
      %297 = arith.addf %293, %296 : vector<1x128xf32>
      %c0_159 = arith.constant 0 : index
      %c0_160 = arith.constant 0 : index
      %c0_161 = arith.constant 0 : index
      %298 = vector.load %arg21[%c0_159, %c0_160, %c0_161] : memref<1x1x128xf32, #tpu.memory_space<vmem>>, vector<1x1x128xf32>
      %299 = vector.shape_cast %298 : vector<1x1x128xf32> to vector<1x128xf32>
      %300 = vector.shape_cast %297 : vector<1x128xf32> to vector<1x1x128xf32>
      tpu.vector_store %arg21[%c0_159, %c0_160, %c0_161], %300 {strides = array<i32>} : memref<1x1x128xf32, #tpu.memory_space<vmem>>, vector<1x1x128xf32>,
    } else {
    }
    return
  }
  func.func @transform_0(%arg0: i32, %arg1: i32) -> (i32, i32, i32) {
    %c0_i32 = arith.constant 0 : i32
    %c0_i32_0 = arith.constant 0 : i32
    %c0_i32_1 = arith.constant 0 : i32
    return %arg0, %c0_i32, %c0_i32_0 : i32, i32, i32
  }
  func.func @transform_1(%arg0: i32, %arg1: i32) -> (i32, i32, i32) {
    %c0_i32 = arith.constant 0 : i32
    %c0_i32_0 = arith.constant 0 : i32
    return %arg0, %arg1, %c0_i32 : i32, i32, i32
  }
  func.func @transform_2(%arg0: i32, %arg1: i32) -> (i32, i32, i32) {
    %c0_i32 = arith.constant 0 : i32
    %c0_i32_0 = arith.constant 0 : i32
    %c0_i32_1 = arith.constant 0 : i32
    return %arg0, %c0_i32, %c0_i32_0 : i32, i32, i32
  }
  func.func @transform_3(%arg0: i32, %arg1: i32) -> (i32, i32, i32) {
    %c0_i32 = arith.constant 0 : i32
    %c0_i32_0 = arith.constant 0 : i32
    %c0_i32_1 = arith.constant 0 : i32
    return %arg0, %c0_i32, %c0_i32_0 : i32, i32, i32
  }
  func.func @transform_4(%arg0: i32, %arg1: i32) -> (i32, i32, i32) {
    %c0_i32 = arith.constant 0 : i32
    %c0_i32_0 = arith.constant 0 : i32
    %c0_i32_1 = arith.constant 0 : i32
    return %arg0, %c0_i32, %c0_i32_0 : i32, i32, i32
  }
  func.func @transform_5(%arg0: i32, %arg1: i32) -> (i32, i32) {
    %c0_i32 = arith.constant 0 : i32
    %c0_i32_0 = arith.constant 0 : i32
    %c0_i32_1 = arith.constant 0 : i32
    return %c0_i32, %c0_i32_0 : i32, i32
  }
  func.func @transform_6(%arg0: i32, %arg1: i32) -> (i32, i32) {
    %c0_i32 = arith.constant 0 : i32
    %c0_i32_0 = arith.constant 0 : i32
    %c0_i32_1 = arith.constant 0 : i32
    return %c0_i32, %c0_i32_0 : i32, i32
  }
  func.func @transform_7(%arg0: i32, %arg1: i32) -> (i32, i32) {
    %c0_i32 = arith.constant 0 : i32
    %c0_i32_0 = arith.constant 0 : i32
    %c0_i32_1 = arith.constant 0 : i32
    return %c0_i32, %c0_i32_0 : i32, i32
  }
  func.func @transform_8(%arg0: i32, %arg1: i32) -> (i32, i32) {
    %c0_i32 = arith.constant 0 : i32
    %c0_i32_0 = arith.constant 0 : i32
    %c0_i32_1 = arith.constant 0 : i32
    return %c0_i32, %c0_i32_0 : i32, i32
  }
  func.func @transform_9(%arg0: i32, %arg1: i32) -> (i32, i32) {
    %c0_i32 = arith.constant 0 : i32
    %c0_i32_0 = arith.constant 0 : i32
    %c0_i32_1 = arith.constant 0 : i32
    return %c0_i32, %c0_i32_0 : i32, i32
  }
  func.func @transform_10(%arg0: i32, %arg1: i32) -> (i32, i32) {
    %c0_i32 = arith.constant 0 : i32
    %c0_i32_0 = arith.constant 0 : i32
    %c0_i32_1 = arith.constant 0 : i32
    return %c0_i32, %c0_i32_0 : i32, i32
  }
  func.func @transform_11(%arg0: i32, %arg1: i32) -> (i32, i32, i32) {
    %c0_i32 = arith.constant 0 : i32
    %c0_i32_0 = arith.constant 0 : i32
    %c0_i32_1 = arith.constant 0 : i32
    %c0_i32_2 = arith.constant 0 : i32
    return %c0_i32, %c0_i32_0, %c0_i32_1 : i32, i32, i32
  }
  func.func @transform_12(%arg0: i32, %arg1: i32) -> (i32, i32) {
    %c0_i32 = arith.constant 0 : i32
    %c0_i32_0 = arith.constant 0 : i32
    %c0_i32_1 = arith.constant 0 : i32
    return %c0_i32, %c0_i32_0 : i32, i32
  }
  func.func @transform_13(%arg0: i32, %arg1: i32) -> (i32, i32, i32) {
    %c0_i32 = arith.constant 0 : i32
    %c0_i32_0 = arith.constant 0 : i32
    %c0_i32_1 = arith.constant 0 : i32
    %c0_i32_2 = arith.constant 0 : i32
    return %c0_i32, %c0_i32_0, %c0_i32_1 : i32, i32, i32
  }
  func.func @transform_14(%arg0: i32, %arg1: i32) -> (i32, i32) {
    %c0_i32 = arith.constant 0 : i32
    %c0_i32_0 = arith.constant 0 : i32
    %c0_i32_1 = arith.constant 0 : i32
    return %c0_i32, %c0_i32_0 : i32, i32
  }
  func.func @transform_15(%arg0: i32, %arg1: i32) -> (i32, i32) {
    %c0_i32 = arith.constant 0 : i32
    %c0_i32_0 = arith.constant 0 : i32
    %c0_i32_1 = arith.constant 0 : i32
    return %c0_i32, %c0_i32_0 : i32, i32
  }
  func.func @transform_16(%arg0: i32, %arg1: i32) -> (i32, i32) {
    %c0_i32 = arith.constant 0 : i32
    %c0_i32_0 = arith.constant 0 : i32
    %c0_i32_1 = arith.constant 0 : i32
    return %c0_i32, %c0_i32_0 : i32, i32
  }
  func.func @transform_17(%arg0: i32, %arg1: i32) -> (i32, i32, i32) {
    %c0_i32 = arith.constant 0 : i32
    %c0_i32_0 = arith.constant 0 : i32
    %c0_i32_1 = arith.constant 0 : i32
    return %arg0, %c0_i32, %c0_i32_0 : i32, i32, i32
  }
  func.func @transform_18(%arg0: i32, %arg1: i32) -> (i32, i32, i32) {
    %c0_i32 = arith.constant 0 : i32
    %c0_i32_0 = arith.constant 0 : i32
    return %arg0, %arg1, %c0_i32 : i32, i32, i32
  }
  func.func @transform_19(%arg0: i32, %arg1: i32) -> (i32, i32, i32) {
    %c0_i32 = arith.constant 0 : i32
    %c0_i32_0 = arith.constant 0 : i32
    %c0_i32_1 = arith.constant 0 : i32
    return %arg0, %c0_i32, %c0_i32_0 : i32, i32, i32
  }
}

</mosaic_0001>

<bundles_post_ra>
// kernel: tpu_custom_call.1
= control target key start
LH: loop header
LB: loop body
LE: loop exit
PB: predicated region body
PF: predicated region fallthrough
CT: control target
= control target key end

     0   :  { %s7604_s0 = inlined_call_operand.hbm [shape: f32[2,16,128], index: 0, kind: input, shape index: {}]   ;;  %s7605_s1 = inlined_call_operand.hbm [shape: f32[2,256,128], index: 1, kind: input, shape index: {}]   ;;  %s7606_s2 = inlined_call_operand.hbm [shape: f32[2,1,128], index: 2, kind: input, shape index: {}]   ;;  %s7607_s3 = inlined_call_operand.hbm [shape: f32[2,16,1], index: 3, kind: input, shape index: {}]   ;;  %s7608_s4 = inlined_call_operand.hbm [shape: f32[2,16,1], index: 4, kind: input, shape index: {}]   ;;  %s7609_s5 = inlined_call_operand.hbm [shape: f32[128,256], index: 5, kind: input, shape index: {}]   ;;  %s7610_s6 = inlined_call_operand.hbm [shape: f32[1,256], index: 6, kind: input, shape index: {}]   ;;  %s7611_s7 = inlined_call_operand.hbm [shape: f32[128,512], index: 7, kind: input, shape index: {}]   ;;  %s7612_s8 = inlined_call_operand.hbm [shape: f32[1,512], index: 8, kind: input, shape index: {}]   ;;  %s7613_s9 = inlined_call_operand.hbm [shape: f32[128,256], index: 9, kind: input, shape index: {}]   ;;  %s7614_s10 = inlined_call_operand.hbm [shape: f32[1,256], index: 10, kind: input, shape index: {}]   ;;  %s7615_s11 = inlined_call_operand.hbm [shape: f32[4,128,128], index: 11, kind: input, shape index: {}]   ;;  %s7616_s12 = inlined_call_operand.hbm [shape: f32[4,128], index: 12, kind: input, shape index: {}]   ;;  %s7617_s13 = inlined_call_operand.hbm [shape: f32[2,512,128], index: 13, kind: input, shape index: {}]   ;;  %s7618_s14 = inlined_call_operand.hbm [shape: f32[2,128], index: 14, kind: input, shape index: {}]   ;;  %s7619_s15 = inlined_call_operand.hbm [shape: f32[3,128], index: 15, kind: input, shape index: {}]   ;;  %s7620_s16 = inlined_call_operand.hbm [shape: f32[3,128], index: 16, kind: input, shape index: {}]   ;;  %s7621_s17 = inlined_call_operand.hbm [shape: f32[2,16,128], index: 17, kind: output, shape index: {0}]   ;;  %s7622_s18 = inlined_call_operand.hbm [shape: f32[2,256,128], index: 18, kind: output, shape index: {1}]   ;;  %s7623_s19 = inlined_call_operand.hbm [shape: f32[2,1,128], index: 19, kind: output, shape index: {2}]  }
   0x1   :  { %7703 = sst [smem:[#allocation79_spill]] %s7604_s0 }
   0x2   :  { %7704 = sst [smem:[#allocation80_spill]] %s7605_s1 }
   0x3   :  { %7705 = sst [smem:[#allocation81_spill]] %s7606_s2 }
   0x4   :  { %7706 = sst [smem:[#allocation82_spill]] %s7607_s3 }
   0x5   :  { %7707 = sst [smem:[#allocation83_spill]] %s7608_s4 }
   0x6   :  { %7708 = sst [smem:[#allocation84_spill]] %s7609_s5 }
   0x7   :  { %7709 = sst [smem:[#allocation85_spill]] %s7610_s6 }
   0x8   :  { %7710 = sst [smem:[#allocation86_spill]] %s7611_s7 }
   0x9   :  { %7711 = sst [smem:[#allocation87_spill]] %s7612_s8 }
   0xa   :  { %7712 = sst [smem:[#allocation88_spill]] %s7613_s9 }
   0xb   :  { %7713 = sst [smem:[#allocation89_spill]] %s7614_s10 }
   0xc   :  { %7714 = sst [smem:[#allocation90_spill]] %s7615_s11 }
   0xd   :  { %7715 = sst [smem:[#allocation91_spill]] %s7616_s12 }
   0xe   :  { %7716 = sst [smem:[#allocation92_spill]] %s7617_s13 }
   0xf   :  { %7717 = sst [smem:[#allocation93_spill]] %s7618_s14 }
  0x10   :  { %7718 = sst [smem:[#allocation94_spill]] %s7619_s15 }
  0x11   :  { %7719 = sst [smem:[#allocation95_spill]] %s7620_s16 }
  0x12   :  { %7720 = sst [smem:[#allocation96_spill]] %s7621_s17 }
  0x13   :  { %7721 = sst [smem:[#allocation97_spill]] %s7622_s18 }
  0x14   :  { %7722 = sst [smem:[#allocation98_spill]] %s7623_s19 }
  0x15   :  { %25 = vsyncpa [#allocation11], 0 }
  0x16   :  { %27 = vsyncpa [#allocation11 + $0x1], 0 }
  0x17   :  { %28 = vsyncpa [#allocation14], 0 }
  0x18   :  { %30 = vsyncpa [#allocation14 + $0x1], 0 }
  0x19   :  { %31 = vsyncpa [#allocation17], 0 }
  0x1a   :  { %33 = vsyncpa [#allocation17 + $0x1], 0 }
  0x1b   :  { %34 = vsyncpa [#allocation20], 0 }
  0x1c   :  { %35 = vsyncpa [#allocation23], 0 }
  0x1d   :  { %36 = vsyncpa [#allocation26], 0 }
  0x1e   :  { %37 = vsyncpa [#allocation29], 0 }
  0x1f   :  { %38 = vsyncpa [#allocation32], 0 }
  0x20   :  { %39 = vsyncpa [#allocation35], 0 }
  0x21   :  { %40 = vsyncpa [#allocation12], 0 }
  0x22   :  { %42 = vsyncpa [#allocation12 + $0x1], 0 }
  0x23   :  { %43 = vsyncpa [#allocation39], 0 }
  0x24   :  { %45 = vsyncpa [#allocation39 + $0x1], 0  ;;  %s5943_s0 = smov 0   ;;  %s5945_s30 = smov 0  }
  0x25   :  { %s5947_s20 = smov 0   ;;  %s5949_s21 = smov 0  }
  0x26   :  { %s5951_s1 = smov 0   ;;  %s5953_s22 = smov 0  }
  0x27   :  { %s5955_s2 = smov 0   ;;  %s5957_s23 = smov 0  }
  0x28   :  { %s5959_s24 = smov 0   ;;  %s5961_s25 = smov 0  }
  0x29   :  { %s5963_s3 = smov 0  }
  0x2a LB: > { %7723 = sst [smem:[#allocation54_spill]] %s5765_s30  ;;  %s5999_s26 = sadd.s32 4294967295, %s5801_s3   ;;  %s5801_s3 = sphi %s5963_s3, %s51_s3   ;;  %s5797_s25 = sphi %s5961_s25, %s7856_s25   ;;  %s5793_s24 = sphi %s5959_s24, %s7850_s24   ;;  %s5789_s23 = sphi %s5957_s23, %s7855_s23   ;;  %s5785_s2 = sphi %s5955_s2, %s7849_s2   ;;  %s5781_s22 = sphi %s5953_s22, %s7854_s22   ;;  %s5777_s1 = sphi %s5951_s1, %s7853_s1   ;;  %s5773_s21 = sphi %s5949_s21, %s7852_s21   ;;  %s5769_s20 = sphi %s5947_s20, %s7846_s20   ;;  %s5765_s30 = sphi %s5945_s30, %s7845_s30   ;;  %s5761_s0 = sphi %s5943_s0, %s7844_s0  }
  0x2b   : > { %7724 = sst [smem:[#allocation55_spill]] %s5769_s20  ;;  %p3942_p0 = scmp.ge.s32.totalorder %s5801_s3, 1 }
  0x2c   : > { %7725 = sst [smem:[#allocation56_spill]] %s5773_s21  ;;  %p7637_p1 = scmp.eq.s32.totalorder %s5999_s26, 0 }
  0x2d   : > { %7726 = sst [smem:[#allocation57_spill]] %s5781_s22  ;;  %p532_p2 = scmp.lt.s32.totalorder %s5801_s3, 5 }
  0x2e   : > { %7727 = sst [smem:[#allocation58_spill]] %s5785_s2  ;;  %s5803_s28 = smov [#allocation19]  }
  0x2f   : > { %7728 = sst [smem:[#allocation59_spill]] %s5789_s23  ;;  %p6004_p3 = pnand %p3942_p0, %p532_p2 }
  0x30   : > { %7729 = sst [smem:[#allocation60_spill]] %s5793_s24  ;;  %s544_s29 = sshll.u32 %s5803_s28, 4  ;;  %s545_s29 = int_to_ptr.vmem [resolvable:$true] %s544_s29 }
  0x31   : > { %7730 = sst [smem:[#allocation61_spill]] %s5801_s3  ;;  %p4832_p4 = pneg %p6004_p3 }
  0x32   : > { %s7731_s27 = scalar_select %p6004_p3, 1, 0 }
  0x33   : > { %p6012_p5 = pnand %p4832_p4, %p7637_p1  ;;  %s5804_s17 = smov [#allocation22]  }
  0x34   : > { %7732 = sst [smem:[#allocation62_spill]] %s7731_s27  ;;  %s568_s18 = sshll.u32 %s5804_s17, 4  ;;  %s6016_s18 = int_to_ptr.vmem [resolvable:$true] %s568_s18 }
  0x35   : > { %s7733_s19 = scalar_select %p6012_p5, 1, 0 }
  0x36   : > { %s7734_s5 = sld [smem:[#allocation84_spill]]  ;;  %p6026_p7 = pneg %p6012_p5 }
  0x38   : > { %s7735_s28 = scalar_select %p6026_p7, 1, 0 }
  0x3c   : > { %s5093_s4 = scalar_lea.hbm %s7734_s5, 4096 }
  0x3d   : > { %p5094_p6 = scmp.ne.s32.totalorder %s7734_s5, %s5093_s4  ;;  %p5100_p10 = scmp.lt.u32.totalorder %s5093_s4, %s7734_s5 }
  0x3f   : > { %p5096_p8 = pnand %p6026_p7, %p5094_p6 }
  0x41   : > { %p5097_p9 = pneg %p5096_p8 }
  0x43   : > { %p5102_p11 = pnand %p5100_p10, %p5097_p9 }
  0x45   : > { %5105 = shalt.err (!%p5102_p11)
}
  0x46   : > { %s5106_s2 = scalar_lea.vmem %s545_s29, 4096  ;;  %p5114_p2 = scmp.lt.s32.totalorder %s545_s29, %s545_s29 }
  0x47   : > { %p5107_p12 = scmp.ne.s32.totalorder %s545_s29, %s5106_s2  ;;  %p5115_p4 = scmp.lt.s32.totalorder %s5106_s2, %s5106_s2 }
  0x49   : > { %p5109_p13 = pnand %p5107_p12, %p6026_p7  ;;  %p5116_p1 = por %p5115_p4, %p5114_p2 }
  0x4b   : > { %p5110_p0 = pneg %p5109_p13 }
  0x4d   : > { %p5117_p3 = pnand %p5116_p1, %p5110_p0 }
  0x4f   : > { %5120 = shalt.err (!%p5117_p3)
}
  0x50   : > { %s7643_s14 = smov 256   ;;  %s7644_s16 = smov 16  }
  0x51   : > { %4835 = dma.hbm_to_vmem [thread:$0]  (!%p6012_p5), %s7734_s5, 4096, %s545_s29, [#allocation20], %s7643_s14, %s7643_s14, %s7644_s16  }
  0x52   : > { %s7736_s7 = sld [smem:[#allocation86_spill]] }
  0x58   : > { %s5121_s12 = scalar_lea.hbm %s7736_s7, 8192 }
  0x59   : > { %p5122_p1 = scmp.ne.s32.totalorder %s7736_s7, %s5121_s12  ;;  %p5128_p8 = scmp.lt.u32.totalorder %s5121_s12, %s7736_s7 }
  0x5b   : > { %p5124_p3 = pnand %p5122_p1, %p6026_p7 }
  0x5d   : > { %p5125_p6 = pneg %p5124_p3 }
  0x5f   : > { %p5130_p9 = pnand %p5128_p8, %p5125_p6 }
  0x61   : > { %5133 = shalt.err (!%p5130_p9)
}
  0x62   : > { %s5134_s29 = scalar_lea.vmem %s6016_s18, 8192  ;;  %p5142_p13 = scmp.lt.s32.totalorder %s6016_s18, %s6016_s18 }
  0x63   : > { %p5135_p10 = scmp.ne.s32.totalorder %s6016_s18, %s5134_s29  ;;  %p5143_p0 = scmp.lt.s32.totalorder %s5134_s29, %s5134_s29 }
  0x65   : > { %p5137_p11 = pnand %p5135_p10, %p6026_p7  ;;  %p5144_p2 = por %p5143_p0, %p5142_p13 }
  0x67   : > { %p5138_p12 = pneg %p5137_p11 }
  0x69   : > { %p5145_p4 = pnand %p5144_p2, %p5138_p12 }
  0x6b   : > { %5148 = shalt.err (!%p5145_p4)
}
  0x6c   : > { %s5807_s10 = smov 512   ;;  %s5808_s6 = smov 32  }
  0x6d   : > { %4841 = dma.hbm_to_vmem [thread:$0]  (!%p6012_p5), %s7736_s7, 8192, %s6016_s18, [#allocation23], %s5807_s10, %s5807_s10, %s5808_s6  }
  0x6e   : > { %s5809_s4 = smov [#allocation25]   ;;  %s5810_s27 = smov [#allocation28]  }
  0x6f   : > { %s592_s23 = sshll.u32 %s5809_s4, 4  ;;  %s616_s17 = sshll.u32 %s5810_s27, 4  ;;  %s593_s23 = int_to_ptr.vmem [resolvable:$true] %s592_s23  ;;  %s6068_s17 = int_to_ptr.vmem [resolvable:$true] %s616_s17 }
  0x70   : > { %s7737_s9 = sld [smem:[#allocation88_spill]] }
  0x76   : > { %s5149_s14 = scalar_lea.hbm %s7737_s9, 4096 }
  0x77   : > { %p5150_p1 = scmp.ne.s32.totalorder %s7737_s9, %s5149_s14  ;;  %p5156_p8 = scmp.lt.u32.totalorder %s5149_s14, %s7737_s9 }
  0x79   : > { %p5152_p3 = pnand %p5150_p1, %p6026_p7 }
  0x7b   : > { %p5153_p6 = pneg %p5152_p3 }
  0x7d   : > { %p5158_p9 = pnand %p5156_p8, %p5153_p6 }
  0x7f   : > { %5161 = shalt.err (!%p5158_p9)
}
  0x80   : > { %s5162_s10 = scalar_lea.vmem %s593_s23, 4096  ;;  %p5170_p13 = scmp.lt.s32.totalorder %s593_s23, %s593_s23 }
  0x81   : > { %p5163_p10 = scmp.ne.s32.totalorder %s593_s23, %s5162_s10  ;;  %p5171_p0 = scmp.lt.s32.totalorder %s5162_s10, %s5162_s10 }
  0x83   : > { %p5165_p11 = pnand %p5163_p10, %p6026_p7  ;;  %p5172_p2 = por %p5171_p0, %p5170_p13 }
  0x85   : > { %p5166_p12 = pneg %p5165_p11 }
  0x87   : > { %p5173_p4 = pnand %p5172_p2, %p5166_p12 }
  0x89   : > { %5176 = shalt.err (!%p5173_p4)
}
  0x8a   : > { %s7738_s5 = smov 16   ;;  %s7739_s16 = smov 256  }
  0x8b   : > { %4847 = dma.hbm_to_vmem [thread:$0]  (!%p6012_p5), %s7737_s9, 4096, %s593_s23, [#allocation26], %s7739_s16, %s7739_s16, %s7738_s5  }
  0x8c   : > { %s7740_s11 = sld [smem:[#allocation90_spill]] }
  0x92   : > { %s5177_s27 = scalar_lea.hbm %s7740_s11, 8192 }
  0x93   : > { %p5178_p1 = scmp.ne.s32.totalorder %s7740_s11, %s5177_s27  ;;  %p5184_p8 = scmp.lt.u32.totalorder %s5177_s27, %s7740_s11 }
  0x95   : > { %p5180_p3 = pnand %p5178_p1, %p6026_p7 }
  0x97   : > { %p5181_p6 = pneg %p5180_p3 }
  0x99   : > { %p5186_p9 = pnand %p5184_p8, %p5181_p6 }
  0x9b   : > { %5189 = shalt.err (!%p5186_p9)
}
  0x9c   : > { %s5190_s23 = scalar_lea.vmem %s6068_s17, 8192  ;;  %p5198_p13 = scmp.lt.s32.totalorder %s6068_s17, %s6068_s17 }
  0x9d   : > { %p5191_p10 = scmp.ne.s32.totalorder %s6068_s17, %s5190_s23  ;;  %p5199_p0 = scmp.lt.s32.totalorder %s5190_s23, %s5190_s23 }
  0x9f   : > { %p5193_p11 = pnand %p5191_p10, %p6026_p7  ;;  %p5200_p2 = por %p5199_p0, %p5198_p13 }
  0xa1   : > { %p5194_p12 = pneg %p5193_p11 }
  0xa3   : > { %p5201_p4 = pnand %p5200_p2, %p5194_p12 }
  0xa5   : > { %5204 = shalt.err (!%p5201_p4)
}
  0xa6   : > { %s7646_s10 = smov 128   ;;  %s7648_s5 = smov 8  }
  0xa7   : > { %4853 = dma.hbm_to_vmem [thread:$0]  (!%p6012_p5), %s7740_s11, 8192, %s6068_s17, [#allocation29], %s7646_s10, %s7646_s10, %s7648_s5  }
  0xa8   : > { %s5813_s14 = smov [#allocation31]   ;;  %s5814_s4 = smov [#allocation34]  }
  0xa9   : > { %s640_s12 = sshll.u32 %s5813_s14, 4  ;;  %s665_s27 = sshll.u32 %s5814_s4, 4  ;;  %s641_s12 = int_to_ptr.vmem [resolvable:$true] %s640_s12  ;;  %s6117_s27 = int_to_ptr.vmem [resolvable:$true] %s665_s27 }
  0xaa   : > { %s7741_s13 = sld [smem:[#allocation92_spill]] }
  0xb0   : > { %s5205_s8 = scalar_lea.hbm %s7741_s13, 16384 }
  0xb1   : > { %p5206_p1 = scmp.ne.s32.totalorder %s7741_s13, %s5205_s8  ;;  %p5212_p8 = scmp.lt.u32.totalorder %s5205_s8, %s7741_s13 }
  0xb3   : > { %p5208_p3 = pnand %p5206_p1, %p6026_p7 }
  0xb5   : > { %p5209_p6 = pneg %p5208_p3 }
  0xb7   : > { %p5214_p9 = pnand %p5212_p8, %p5209_p6 }
  0xb9   : > { %5217 = shalt.err (!%p5214_p9)
}
  0xba   : > { %s5218_s6 = scalar_lea.vmem %s641_s12, 16384  ;;  %p5226_p13 = scmp.lt.s32.totalorder %s641_s12, %s641_s12 }
  0xbb   : > { %p5219_p10 = scmp.ne.s32.totalorder %s641_s12, %s5218_s6  ;;  %p5227_p0 = scmp.lt.s32.totalorder %s5218_s6, %s5218_s6 }
  0xbd   : > { %p5221_p11 = pnand %p5219_p10, %p6026_p7  ;;  %p5228_p2 = por %p5227_p0, %p5226_p13 }
  0xbf   : > { %p5222_p12 = pneg %p5221_p11 }
  0xc1   : > { %p5229_p4 = pnand %p5228_p2, %p5222_p12 }
  0xc3   : > { %5232 = shalt.err (!%p5229_p4)
}
  0xc4   : > { %4859 = dma.hbm_to_vmem [thread:$0]  (!%p6012_p5), %s7741_s13, 16384, %s641_s12, [#allocation32], %s7646_s10, %s7646_s10, %s7648_s5  }
  0xc5   : > { %s7742_s15 = sld [smem:[#allocation94_spill]] }
  0xcb   : > { %s5233_s8 = scalar_lea.hbm %s7742_s15, 64 }
  0xcc   : > { %p5234_p1 = scmp.ne.s32.totalorder %s7742_s15, %s5233_s8  ;;  %p5240_p8 = scmp.lt.u32.totalorder %s5233_s8, %s7742_s15 }
  0xce   : > { %p5236_p3 = pnand %p5234_p1, %p6026_p7 }
  0xd0   : > { %p5237_p6 = pneg %p5236_p3 }
  0xd2   : > { %p5242_p9 = pnand %p5240_p8, %p5237_p6 }
  0xd4   : > { %5245 = shalt.err (!%p5242_p9)
}
  0xd5   : > { %s5246_s12 = scalar_lea.vmem %s6117_s27, 64  ;;  %p5254_p13 = scmp.lt.s32.totalorder %s6117_s27, %s6117_s27 }
  0xd6   : > { %p5247_p10 = scmp.ne.s32.totalorder %s6117_s27, %s5246_s12  ;;  %p5255_p0 = scmp.lt.s32.totalorder %s5246_s12, %s5246_s12 }
  0xd8   : > { %p5249_p11 = pnand %p5247_p10, %p6026_p7  ;;  %p5256_p2 = por %p5255_p0, %p5254_p13 }
  0xda   : > { %p5250_p12 = pneg %p5249_p11 }
  0xdc   : > { %p5257_p4 = pnand %p5256_p2, %p5250_p12 }
  0xde   : > { %5260 = shalt.err (!%p5257_p4)
}
  0xdf   : > { %4865 = dma.hbm_to_vmem [thread:$0]  (!%p6012_p5), %s7742_s15, 64, %s6117_s27, [#allocation35]  }
  0xe0   : > { %s7645_s4 = sadd.s32 4294967294, %s5801_s3   ;;  %s60_s2 = sadd.s32 1, %s5793_s24 }
  0xe1   : > { %p61_p1 = scmp.ge.s32.totalorder %s60_s2, 2  ;;  %s63_s29 = sadd.s32 1, %s5797_s25 }
  0xe2   : > { %p7657_p3 = scmp.eq.s32.totalorder %s5801_s3, 0  ;;  %s98_s8 = sadd.s32 1, %s5769_s20 }
  0xe3   : > { %s7858_s2 = smov (%p61_p1, %s60_s2), 0  ;;  %s7860_s29 = smov (!%p61_p1, %s63_s29), %s5797_s25 }
  0xe4   : > { %7743 = sst [smem:[#allocation63_spill]] %s7858_s2  ;;  %s94_s18 = ssub.s32 %s5793_s24, %s7858_s2 }
  0xe5   : > { %p105_p6 = scmp.ne.s32.totalorder %s5769_s20, %s5765_s30  ;;  %p65_p8 = scmp.ge.s32.totalorder %s7860_s29, 2 }
  0xe6   : > { %p111_p9 = scmp.ne.s32.totalorder %s5765_s30, %s5761_s0  ;;  %p7656_p11 = scmp.eq.s32.totalorder %s5999_s26, 3 }
  0xe7   : > { %p6179_p10 = por %p105_p6, %p7657_p3  ;;  %s7862_s29 = smov (%p65_p8, %s7860_s29), 0 }
  0xe8   : > { %7745 = sst [smem:[#allocation64_spill]] %s7862_s29  ;;  %p7746_p12 = scmp.eq.s32.totalorder %s5999_s26, 0 }
  0xe9   : > { %p6194_p0 = scmp.eq.s32.totalorder %s7645_s4, 3  ;;  %s6200_s0 = ssub.s32 %s5797_s25, %s7862_s29 }
  0xea   : > { %p6188_p13 = por %p111_p9, %p7746_p12  ;;  %p6204_p2 = por %p7656_p11, %p105_p6 }
  0xeb   : > { %s95_s12 = sor.u32 %s94_s18, %s6200_s0  ;;  %p6212_p8 = por %p6194_p0, %p111_p9 }
  0xec   : > { %s7747_s23 = scalar_select %p6188_p13, 1, 0 }
  0xed   : > { %s7750_s17 = scalar_select %p6204_p2, 1, 0 }
  0xee   : > { %7748 = sst [smem:[#allocation65_spill]] %s7747_s23  ;;  %p96_p1 = scmp.eq.s32.totalorder %s95_s12, 0 }
  0xef   : > { %7751 = sst [smem:[#allocation66_spill]] %s7750_s17  ;;  %p7658_p12 = scmp.lt.s32.totalorder %s5801_s3, 4 }
  0xf0   : > { %s7752_s6 = scalar_select %p6212_p8, 1, 0 }
  0xf1   : > { %s7665_s14 = sand.u32 1, %s5801_s3   ;;  %s710_s10 = sand.u32 1, %s5769_s20  }
  0xf2   : > { %7753 = sst [smem:[#allocation67_spill]] %s7752_s6  ;;  %s3959_s5 = sshll.u32 %s710_s10, 7 }
  0xf3   : > { %s6219_s4 = scalar_select %p96_p1, %s5769_s20, %s98_s8  }
  0xf4   : > { %s3960_s7 = sshll.u32 %s5793_s24, 4  ;;  %s3961_s9 = sshll.u32 %s5797_s25, 5 }
  0xf5   : > { %7754 = sst [smem:[#allocation68_spill]] %s6219_s4  ;;  %s718_s11 = sadd.s32 %s3961_s9, %s3960_s7 }
  0xf6   : > { %s712_s13 = scalar_lea.vmem [#allocation13], %s3959_s5  ;;  %s3962_s15 = sshll.u32 %s718_s11, 7 }
  0xf7   : > { %s721_s18 = sshll.u32 %s712_s13, 4  ;;  %s7755_s2 = sld [smem:[#allocation80_spill]]  ;;  %s6224_s18 = int_to_ptr.vmem [resolvable:$true] %s721_s18 }
  0xf8   : > { %p6235_p6 = pnand %p7658_p12, %p6179_p10  ;;  %s6241_s7 = scalar_lea.sflag [#allocation14], %s7665_s14 }
  0xfa   : > { %p5263_p1 = pneg %p6235_p6 }
  0xfd   : > { %s7756_s17 = smov %s7755_s2  ;;  %s6229_s23 = scalar_lea.hbm %s7755_s2, %s3962_s15 }
  0xfe   : > { %s5261_s9 = scalar_lea.hbm %s6229_s23, 2048  ;;  %s5266_s15 = scalar_lea.hbm %s7756_s17, 8192 }
  0xff   : > { %p5262_p9 = scmp.ne.s32.totalorder %s6229_s23, %s5261_s9  ;;  %p5267_p10 = scmp.lt.u32.totalorder %s6229_s23, %s7756_s17 }
 0x100   : > { %p5268_p12 = scmp.lt.u32.totalorder %s5266_s15, %s5261_s9  ;;  %p5270_p8 = scmp.lt.u32.totalorder %s5261_s9, %s6229_s23 }
 0x101   : > { %p5264_p11 = pnand %p5263_p1, %p5262_p9 }
 0x102   : > { %p5269_p4 = por %p5268_p12, %p5267_p10 }
 0x103   : > { %p5265_p3 = pneg %p5264_p11 }
 0x104   : > { %p5271_p2 = por %p5270_p8, %p5269_p4 }
 0x106   : > { %p5272_p13 = pnand %p5271_p2, %p5265_p3 }
 0x108   : > { %5275 = shalt.err (!%p5272_p13)
}
 0x109   : > { %s5276_s29 = scalar_lea.vmem %s6224_s18, 2048  ;;  %s5815_s8 = smov [#allocation13]  }
 0x10a   : > { %p5277_p11 = scmp.ne.s32.totalorder %s6224_s18, %s5276_s29  ;;  %s5281_s27 = sshll.u32 %s5815_s8, 4  ;;  %s5282_s27 = int_to_ptr.vmem [resolvable:$false] %s5281_s27 }
 0x10b   : > { %s5283_s12 = scalar_lea.vmem %s5282_s27, 4096  ;;  %p5284_p7 = scmp.lt.s32.totalorder %s6224_s18, %s5282_s27 }
 0x10c   : > { %p5279_p9 = pnand %p5277_p11, %p5263_p1  ;;  %p5285_p12 = scmp.lt.s32.totalorder %s5283_s12, %s5276_s29 }
 0x10e   : > { %p5280_p5 = pneg %p5279_p9  ;;  %p5286_p10 = por %p5285_p12, %p5284_p7 }
 0x110   : > { %p5287_p4 = pnand %p5286_p10, %p5280_p5 }
 0x112   : > { %5290 = shalt.err (!%p5287_p4)
}
 0x113   : > { %s7758_s9 = smov 8   ;;  %s7759_s11 = smov 128  }
 0x114   : > { %4875 = dma.hbm_to_vmem [thread:$0]  (!%p6235_p6), %s6229_s23, 2048, %s6224_s18, %s6241_s7, %s7759_s11, %s7759_s11, %s7758_s9  }
 0x115   : > { %s70_s10 = sadd.s32 1, %s5781_s22  ;;  %p7760_p5 = scmp.eq.s32.totalorder %s6200_s0, 0 }
 0x116   : > { %p77_p7 = scmp.ne.s32.totalorder %s5781_s22, %s5777_s1  ;;  %p83_p3 = scmp.ne.s32.totalorder %s5777_s1, %s5773_s21 }
 0x117   : > { %s6276_s13 = scalar_select %p7760_p5, %s5781_s22, %s70_s10  }
 0x118   : > { %s6283_s15 = sand.u32 1, %s5781_s22   ;;  %s6286_s5 = sshll.u32 %s5797_s25, 8 }
 0x119   : > { %7761 = sst [smem:[#allocation69_spill]] %s6276_s13  ;;  %p7762_p13 = scmp.eq.s32.totalorder %s5801_s3, 0 }
 0x11a   : > { %p7763_p8 = scmp.eq.s32.totalorder %s5999_s26, 0  ;;  %p7765_p6 = scmp.eq.s32.totalorder %s5999_s26, 3 }
 0x11b   : > { %p79_p2 = por %p7762_p13, %p77_p7  ;;  %p6304_p9 = por %p6194_p0, %p83_p3 }
 0x11c   : > { %p6292_p1 = por %p7763_p8, %p83_p3  ;;  %p6298_p11 = por %p7765_p6, %p77_p7 }
 0x11d   : > { %s7768_s0 = scalar_select %p6304_p9, 1, 0 }
 0x11e   : > { %s7764_s2 = scalar_select %p6292_p1, 1, 0 }
 0x11f   : > { %s7766_s23 = scalar_select %p6298_p11, 1, 0 }
 0x120   : > { %7769 = sst [smem:[#allocation71_spill]] %s7768_s0  ;;  %s6309_s18 = sshll.u32 %s6283_s15, 4 }
 0x121   : > { %7767 = sst [smem:[#allocation70_spill]] %s7766_s23  ;;  %p7770_p12 = scmp.lt.s32.totalorder %s5801_s3, 4 }
 0x122   : > { %s7772_s12 = sld [smem:[#allocation82_spill]]  ;;  %s752_s16 = scalar_lea.vmem [#allocation16], %s6309_s18 }
 0x123   : > { %p6313_p10 = pnand %p7770_p12, %p79_p2  ;;  %s759_s14 = sshll.u32 %s752_s16, 4  ;;  %s6324_s14 = int_to_ptr.vmem [resolvable:$true] %s759_s14 }
 0x124   : > { %s5816_s17 = smov [#allocation21]   ;;  %s7773_s13 = sand.u32 1, %s5801_s3  }
 0x125   : > { %s7771_s29 = scalar_select %p6313_p10, 1, 0 }
 0x126   : > { %s6326_s24 = sshll.u32 %s5816_s17, 4  ;;  %s6330_s22 = scalar_lea.sflag [#allocation17], %s7773_s13  ;;  %s559_s24 = int_to_ptr.vmem [resolvable:$true] %s6326_s24 }
 0x127   : > { %p6336_p4 = pneg %p6313_p10 }
 0x128   : > { %s6321_s10 = scalar_lea.hbm %s7772_s12, %s6286_s5  ;;  %s5296_s20 = scalar_lea.hbm %s7772_s12, 512 }
 0x129   : > { %s5291_s4 = scalar_lea.hbm %s6321_s10, 256  ;;  %p5297_p3 = scmp.lt.u32.totalorder %s6321_s10, %s7772_s12 }
 0x12a   : > { %p5292_p0 = scmp.ne.s32.totalorder %s6321_s10, %s5291_s4  ;;  %p5298_p13 = scmp.lt.u32.totalorder %s5296_s20, %s5291_s4 }
 0x12b   : > { %s7774_s8 = scalar_select %p6336_p4, 1, 0 }
 0x12c   : > { %p5294_p5 = pnand %p6336_p4, %p5292_p0  ;;  %p5299_p2 = por %p5298_p13, %p5297_p3 }
 0x12d   : > { %p5300_p8 = scmp.lt.u32.totalorder %s5291_s4, %s6321_s10 }
 0x12e   : > { %p5295_p7 = pneg %p5294_p5 }
 0x12f   : > { %p5301_p6 = por %p5300_p8, %p5299_p2 }
 0x131   : > { %p5302_p12 = pnand %p5301_p6, %p5295_p7 }
 0x133   : > { %5305 = shalt.err (!%p5302_p12)
}
 0x134   : > { %s5306_s13 = scalar_lea.vmem %s6324_s14, 256  ;;  %s5817_s27 = smov [#allocation16]  }
 0x135   : > { %p5307_p0 = scmp.ne.s32.totalorder %s6324_s14, %s5306_s13  ;;  %s5311_s16 = sshll.u32 %s5817_s27, 4  ;;  %s5312_s16 = int_to_ptr.vmem [resolvable:$false] %s5311_s16 }
 0x136   : > { %s5313_s6 = scalar_lea.vmem %s5312_s16, 512  ;;  %p5314_p11 = scmp.lt.s32.totalorder %s6324_s14, %s5312_s16 }
 0x137   : > { %p5309_p5 = pnand %p5307_p0, %p6336_p4  ;;  %p5315_p1 = scmp.lt.s32.totalorder %s5313_s6, %s5306_s13 }
 0x139   : > { %p5310_p9 = pneg %p5309_p5  ;;  %p5316_p3 = por %p5315_p1, %p5314_p11 }
 0x13b   : > { %p5317_p13 = pnand %p5316_p3, %p5310_p9 }
 0x13d   : > { %5320 = shalt.err (!%p5317_p13)
}
 0x13e   : > { %4881 = dma.hbm_to_vmem [thread:$0]  (!%p6313_p10), %s6321_s10, 256, %s6324_s14, %s6330_s22, %s7759_s11, %s7759_s11, %s7758_s9  }
 0x13f   : > { %s7775_s17 = sld [smem:[#allocation85_spill]]  ;;  %p7776_p11 = scmp.ne.s32.totalorder %s7735_s28, 0 }
 0x145   : > { %s5321_s27 = scalar_lea.hbm %s7775_s17, 32 }
 0x146   : > { %p5322_p1 = scmp.ne.s32.totalorder %s7775_s17, %s5321_s27  ;;  %p5328_p2 = scmp.lt.u32.totalorder %s5321_s27, %s7775_s17 }
 0x148   : > { %p5324_p9 = pnand %p5322_p1, %p7776_p11 }
 0x14a   : > { %p5325_p7 = pneg %p5324_p9 }
 0x14c   : > { %p5330_p8 = pnand %p5328_p2, %p5325_p7 }
 0x14e   : > { %5333 = shalt.err (!%p5330_p8)
}
 0x14f   : > { %s5334_s0 = scalar_lea.vmem %s559_s24, 32  ;;  %p5342_p5 = scmp.lt.s32.totalorder %s559_s24, %s559_s24 }
 0x150   : > { %p5335_p6 = scmp.ne.s32.totalorder %s559_s24, %s5334_s0  ;;  %p5343_p3 = scmp.lt.s32.totalorder %s5334_s0, %s5334_s0 }
 0x152   : > { %p5337_p12 = pnand %p5335_p6, %p7776_p11  ;;  %p5344_p13 = por %p5343_p3, %p5342_p5 }
 0x154   : > { %p5338_p0 = pneg %p5337_p12 }
 0x156   : > { %p5345_p10 = pnand %p5344_p13, %p5338_p0 }
 0x158   : > { %5348 = shalt.err (!%p5345_p10)
}
 0x159   : > { %p7777_p1 = scmp.ne.s32.totalorder %s7733_s19, 0  ;;  %s5818_s12 = smov [#allocation24]  }
 0x15a   : > { %s582_s20 = sshll.u32 %s5818_s12, 4  ;;  %s5819_s4 = smov [#allocation27]   ;;  %s583_s20 = int_to_ptr.vmem [resolvable:$true] %s582_s20 }
 0x15b   : > { %4838 = dma.hbm_to_vmem [thread:$0]  (!%p7777_p1), %s7775_s17, 32, %s559_s24, [#allocation20]  }
 0x15c   : > { %s606_s27 = sshll.u32 %s5819_s4, 4  ;;  %s7778_s6 = sld [smem:[#allocation87_spill]]  ;;  %s607_s27 = int_to_ptr.vmem [resolvable:$true] %s606_s27 }
 0x162   : > { %s5349_s21 = scalar_lea.hbm %s7778_s6, 64 }
 0x163   : > { %p5350_p10 = scmp.ne.s32.totalorder %s7778_s6, %s5349_s21  ;;  %p5356_p2 = scmp.lt.u32.totalorder %s5349_s21, %s7778_s6 }
 0x165   : > { %p5352_p9 = pnand %p5350_p10, %p7776_p11 }
 0x167   : > { %p5353_p7 = pneg %p5352_p9 }
 0x169   : > { %p5358_p8 = pnand %p5356_p2, %p5353_p7 }
 0x16b   : > { %5361 = shalt.err (!%p5358_p8)
}
 0x16c   : > { %s5362_s24 = scalar_lea.vmem %s583_s20, 64  ;;  %p5370_p5 = scmp.lt.s32.totalorder %s583_s20, %s583_s20 }
 0x16d   : > { %p5363_p6 = scmp.ne.s32.totalorder %s583_s20, %s5362_s24  ;;  %p5371_p3 = scmp.lt.s32.totalorder %s5362_s24, %s5362_s24 }
 0x16f   : > { %p5365_p12 = pnand %p5363_p6, %p7776_p11  ;;  %p5372_p13 = por %p5371_p3, %p5370_p5 }
 0x171   : > { %p5366_p0 = pneg %p5365_p12 }
 0x173   : > { %p5373_p4 = pnand %p5372_p13, %p5366_p0 }
 0x175   : > { %5376 = shalt.err (!%p5373_p4)
}
 0x176   : > { %4844 = dma.hbm_to_vmem [thread:$0]  (!%p7777_p1), %s7778_s6, 64, %s583_s20, [#allocation23]  }
 0x177   : > { %s7779_s12 = sld [smem:[#allocation89_spill]] }
 0x17d   : > { %s5377_s4 = scalar_lea.hbm %s7779_s12, 32 }
 0x17e   : > { %p5378_p10 = scmp.ne.s32.totalorder %s7779_s12, %s5377_s4  ;;  %p5384_p4 = scmp.lt.u32.totalorder %s5377_s4, %s7779_s12 }
 0x180   : > { %p5380_p9 = pnand %p5378_p10, %p7776_p11 }
 0x182   : > { %p5381_p7 = pneg %p5380_p9 }
 0x184   : > { %p5386_p2 = pnand %p5384_p4, %p5381_p7 }
 0x186   : > { %5389 = shalt.err (!%p5386_p2)
}
 0x187   : > { %s5390_s24 = scalar_lea.vmem %s607_s27, 32  ;;  %p5398_p0 = scmp.lt.s32.totalorder %s607_s27, %s607_s27 }
 0x188   : > { %p5391_p8 = scmp.ne.s32.totalorder %s607_s27, %s5390_s24  ;;  %p5399_p5 = scmp.lt.s32.totalorder %s5390_s24, %s5390_s24 }
 0x18a   : > { %p5393_p6 = pnand %p5391_p8, %p7776_p11  ;;  %p5400_p3 = por %p5399_p5, %p5398_p0 }
 0x18c   : > { %p5394_p12 = pneg %p5393_p6 }
 0x18e   : > { %p5401_p13 = pnand %p5400_p3, %p5394_p12 }
 0x190   : > { %5404 = shalt.err (!%p5401_p13)
}
 0x191   : > { %4850 = dma.hbm_to_vmem [thread:$0]  (!%p7777_p1), %s7779_s12, 32, %s607_s27, [#allocation26]  }
 0x192   : > { %s5820_s10 = smov [#allocation30]   ;;  %s5821_s23 = smov [#allocation33]  }
 0x193   : > { %s630_s21 = sshll.u32 %s5820_s10, 4  ;;  %s654_s4 = sshll.u32 %s5821_s23, 4  ;;  %s631_s21 = int_to_ptr.vmem [resolvable:$true] %s630_s21  ;;  %s655_s4 = int_to_ptr.vmem [resolvable:$true] %s654_s4 }
 0x194   : > { %s7780_s0 = sld [smem:[#allocation91_spill]] }
 0x19a   : > { %s7781_s14 = smov %s7780_s0  ;;  %s5405_s6 = scalar_lea.hbm %s7780_s0, 64 }
 0x19b   : > { %p5406_p10 = scmp.ne.s32.totalorder %s7781_s14, %s5405_s6  ;;  %p5412_p4 = scmp.lt.u32.totalorder %s5405_s6, %s7781_s14 }
 0x19d   : > { %p5408_p9 = pnand %p5406_p10, %p7776_p11 }
 0x19f   : > { %p5409_p7 = pneg %p5408_p9 }
 0x1a1   : > { %p5414_p2 = pnand %p5412_p4, %p5409_p7 }
 0x1a3   : > { %5417 = shalt.err (!%p5414_p2)
}
 0x1a4   : > { %s5418_s27 = scalar_lea.vmem %s631_s21, 64  ;;  %p5426_p0 = scmp.lt.s32.totalorder %s631_s21, %s631_s21 }
 0x1a5   : > { %p5419_p8 = scmp.ne.s32.totalorder %s631_s21, %s5418_s27  ;;  %p5427_p5 = scmp.lt.s32.totalorder %s5418_s27, %s5418_s27 }
 0x1a7   : > { %p5421_p6 = pnand %p5419_p8, %p7776_p11  ;;  %p5428_p3 = por %p5427_p5, %p5426_p0 }
 0x1a9   : > { %p5422_p12 = pneg %p5421_p6 }
 0x1ab   : > { %p5429_p13 = pnand %p5428_p3, %p5422_p12 }
 0x1ad   : > { %5432 = shalt.err (!%p5429_p13)
}
 0x1ae   : > { %4856 = dma.hbm_to_vmem [thread:$0]  (!%p7777_p1), %s7781_s14, 64, %s631_s21, [#allocation29]  }
 0x1af   : > { %s7782_s10 = sld [smem:[#allocation93_spill]] }
 0x1b5   : > { %s5433_s23 = scalar_lea.hbm %s7782_s10, 32 }
 0x1b6   : > { %p5434_p10 = scmp.ne.s32.totalorder %s7782_s10, %s5433_s23  ;;  %p5440_p4 = scmp.lt.u32.totalorder %s5433_s23, %s7782_s10 }
 0x1b8   : > { %p5436_p9 = pnand %p5434_p10, %p7776_p11 }
 0x1ba   : > { %p5437_p7 = pneg %p5436_p9 }
 0x1bc   : > { %p5442_p2 = pnand %p5440_p4, %p5437_p7 }
 0x1be   : > { %5445 = shalt.err (!%p5442_p2)
}
 0x1bf   : > { %s5446_s20 = scalar_lea.vmem %s655_s4, 32  ;;  %p5454_p0 = scmp.lt.s32.totalorder %s655_s4, %s655_s4 }
 0x1c0   : > { %p5447_p8 = scmp.ne.s32.totalorder %s655_s4, %s5446_s20  ;;  %p5455_p5 = scmp.lt.s32.totalorder %s5446_s20, %s5446_s20 }
 0x1c2   : > { %p5449_p6 = pnand %p5447_p8, %p7776_p11  ;;  %p5456_p3 = por %p5455_p5, %p5454_p0 }
 0x1c4   : > { %p5450_p12 = pneg %p5449_p6 }
 0x1c6   : > { %p5457_p13 = pnand %p5456_p3, %p5450_p12 }
 0x1c8   : > { %5460 = shalt.err (!%p5457_p13)
}
 0x1c9   : > { %4862 = dma.hbm_to_vmem [thread:$0]  (!%p7777_p1), %s7782_s10, 32, %s655_s4, [#allocation32]  }
 0x1ca   : > { %s5822_s17 = smov [#allocation36]   ;;  %s7783_s23 = sld [smem:[#allocation95_spill]] }
 0x1cb   : > { %s676_s3 = sshll.u32 %s5822_s17, 4  ;;  %s677_s3 = int_to_ptr.vmem [resolvable:$true] %s676_s3 }
 0x1d0   : > { %s7784_s13 = smov %s7783_s23  ;;  %s5461_s16 = scalar_lea.hbm %s7783_s23, 64 }
 0x1d1   : > { %p5462_p10 = scmp.ne.s32.totalorder %s7784_s13, %s5461_s16  ;;  %p5468_p4 = scmp.lt.u32.totalorder %s5461_s16, %s7784_s13 }
 0x1d3   : > { %p5464_p9 = pnand %p5462_p10, %p7776_p11 }
 0x1d5   : > { %p5465_p7 = pneg %p5464_p9 }
 0x1d7   : > { %p5470_p2 = pnand %p5468_p4, %p5465_p7 }
 0x1d9   : > { %5473 = shalt.err (!%p5470_p2)
}
 0x1da   : > { %s5474_s4 = scalar_lea.vmem %s677_s3, 64  ;;  %p5482_p0 = scmp.lt.s32.totalorder %s677_s3, %s677_s3 }
 0x1db   : > { %p5475_p8 = scmp.ne.s32.totalorder %s677_s3, %s5474_s4  ;;  %p5483_p5 = scmp.lt.s32.totalorder %s5474_s4, %s5474_s4 }
 0x1dd   : > { %p5477_p6 = pnand %p5475_p8, %p7776_p11  ;;  %p5484_p3 = por %p5483_p5, %p5482_p0 }
 0x1df   : > { %p5478_p12 = pneg %p5477_p6 }
 0x1e1   : > { %p5485_p13 = pnand %p5484_p3, %p5478_p12 }
 0x1e3   : > { %5488 = shalt.err (!%p5485_p13)
}
 0x1e4   : > { %4868 = dma.hbm_to_vmem [thread:$0]  (!%p7777_p1), %s7784_s13, 64, %s677_s3, [#allocation35]  }
 0x1e5   : > { %s7785_s28 = sld [smem:[#allocation79_spill]]  ;;  %s691_s6 = scalar_lea.vmem [#allocation10], %s6309_s18 }
 0x1e6   : > { %s698_s23 = sshll.u32 %s691_s6, 4  ;;  %s688_s19 = scalar_lea.sflag [#allocation11], %s6283_s15  ;;  %s6479_s23 = int_to_ptr.vmem [resolvable:$true] %s698_s23 }
 0x1e7   : > { %p7786_p10 = scmp.ne.s32.totalorder %s7774_s8, 0 }
 0x1eb   : > { %s6476_s30 = scalar_lea.hbm %s7785_s28, %s6286_s5  ;;  %s5494_s24 = scalar_lea.hbm %s7785_s28, 512 }
 0x1ec   : > { %s5489_s16 = scalar_lea.hbm %s6476_s30, 256  ;;  %p5495_p1 = scmp.lt.u32.totalorder %s6476_s30, %s7785_s28 }
 0x1ed   : > { %p5490_p11 = scmp.ne.s32.totalorder %s6476_s30, %s5489_s16  ;;  %p5496_p4 = scmp.lt.u32.totalorder %s5494_s24, %s5489_s16 }
 0x1ee   : > { %p5498_p8 = scmp.lt.u32.totalorder %s5489_s16, %s6476_s30 }
 0x1ef   : > { %p5492_p9 = pnand %p5490_p11, %p7786_p10  ;;  %p5497_p2 = por %p5496_p4, %p5495_p1 }
 0x1f1   : > { %p5493_p7 = pneg %p5492_p9  ;;  %p5499_p6 = por %p5498_p8, %p5497_p2 }
 0x1f3   : > { %p5500_p12 = pnand %p5499_p6, %p5493_p7 }
 0x1f5   : > { %5503 = shalt.err (!%p5500_p12)
}
 0x1f6   : > { %s5504_s21 = scalar_lea.vmem %s6479_s23, 256  ;;  %s5823_s27 = smov [#allocation10]  }
 0x1f7   : > { %p5505_p0 = scmp.ne.s32.totalorder %s6479_s23, %s5504_s21  ;;  %s5509_s12 = sshll.u32 %s5823_s27, 4  ;;  %s5510_s12 = int_to_ptr.vmem [resolvable:$false] %s5509_s12 }
 0x1f8   : > { %s5511_s17 = scalar_lea.vmem %s5510_s12, 512  ;;  %p5512_p13 = scmp.lt.s32.totalorder %s6479_s23, %s5510_s12 }
 0x1f9   : > { %p5507_p5 = pnand %p5505_p0, %p7786_p10  ;;  %p5513_p11 = scmp.lt.s32.totalorder %s5511_s17, %s5504_s21 }
 0x1fb   : > { %p5508_p3 = pneg %p5507_p5  ;;  %p5514_p9 = por %p5513_p11, %p5512_p13 }
 0x1fd   : > { %p5515_p1 = pnand %p5514_p9, %p5508_p3 }
 0x1ff   : > { %5518 = shalt.err (!%p5515_p1)
}
 0x200   : > { %p7787_p7 = scmp.ne.s32.totalorder %s7771_s29, 0  ;;  %s3963_s6 = sshll.u32 %s5797_s25, 4 }
 0x201   : > { %s734_s16 = scalar_lea.vmem [#allocation15], %s6283_s15  ;;  %s7788_s20 = sld [smem:[#allocation81_spill]] }
 0x202   : > { %4872 = dma.hbm_to_vmem [thread:$0]  (!%p7787_p7), %s6476_s30, 256, %s6479_s23, %s688_s19, %s7759_s11, %s7759_s11, %s7758_s9  }
 0x203   : > { %s741_s3 = sshll.u32 %s734_s16, 4  ;;  %s742_s3 = int_to_ptr.vmem [resolvable:$true] %s741_s3 }
 0x207   : > { %s7789_s4 = smov %s7788_s20  ;;  %s739_s21 = scalar_lea.hbm %s7788_s20, %s3963_s6 }
 0x208   : > { %s5519_s27 = scalar_lea.hbm %s739_s21, 16  ;;  %s5524_s10 = scalar_lea.hbm %s7789_s4, 32 }
 0x209   : > { %p5520_p4 = scmp.ne.s32.totalorder %s739_s21, %s5519_s27  ;;  %p5525_p6 = scmp.lt.u32.totalorder %s739_s21, %s7789_s4 }
 0x20a   : > { %p5526_p12 = scmp.lt.u32.totalorder %s5524_s10, %s5519_s27  ;;  %p5528_p5 = scmp.lt.u32.totalorder %s5519_s27, %s739_s21 }
 0x20b   : > { %p5522_p2 = pnand %p5520_p4, %p7786_p10 }
 0x20c   : > { %p5527_p0 = por %p5526_p12, %p5525_p6 }
 0x20d   : > { %p5523_p8 = pneg %p5522_p2 }
 0x20e   : > { %p5529_p3 = por %p5528_p5, %p5527_p0 }
 0x210   : > { %p5530_p13 = pnand %p5529_p3, %p5523_p8 }
 0x212   : > { %5533 = shalt.err (!%p5530_p13)
}
 0x213   : > { %s5534_s15 = scalar_lea.vmem %s742_s3, 16  ;;  %s5824_s30 = smov [#allocation15]  }
 0x214   : > { %p5535_p11 = scmp.ne.s32.totalorder %s742_s3, %s5534_s15  ;;  %s5539_s23 = sshll.u32 %s5824_s30, 4  ;;  %s5540_s23 = int_to_ptr.vmem [resolvable:$false] %s5539_s23 }
 0x215   : > { %s5541_s19 = scalar_lea.vmem %s5540_s23, 32  ;;  %p5542_p4 = scmp.lt.s32.totalorder %s742_s3, %s5540_s23 }
 0x216   : > { %p5537_p9 = pnand %p5535_p11, %p7786_p10  ;;  %p5543_p2 = scmp.lt.s32.totalorder %s5541_s19, %s5534_s15 }
 0x218   : > { %p5538_p1 = pneg %p5537_p9  ;;  %p5544_p7 = por %p5543_p2, %p5542_p4 }
 0x21a   : > { %p5545_p6 = pnand %p5544_p7, %p5538_p1 }
 0x21c   : > { %5548 = shalt.err (!%p5545_p6)
}
 0x21d   : > { %p7790_p12 = scmp.ne.s32.totalorder %s7771_s29, 0  ;;  %s7791_s13 = sld [smem:[#allocation83_spill]] }
 0x21e   : > { %s773_s16 = scalar_lea.vmem [#allocation18], %s6309_s18 }
 0x21f   : > { %4878 = dma.hbm_to_vmem [thread:$0]  (!%p7790_p12), %s739_s21, 16, %s742_s3, %s6241_s7  }
 0x220   : > { %s780_s0 = sshll.u32 %s773_s16, 4  ;;  %s6533_s0 = int_to_ptr.vmem [resolvable:$true] %s780_s0 }
 0x223   : > { %s6530_s6 = scalar_lea.hbm %s7791_s13, %s6286_s5  ;;  %s5554_s3 = scalar_lea.hbm %s7791_s13, 512 }
 0x224   : > { %s5549_s24 = scalar_lea.hbm %s6530_s6, 256  ;;  %p5555_p5 = scmp.lt.u32.totalorder %s6530_s6, %s7791_s13 }
 0x225   : > { %p5550_p7 = scmp.ne.s32.totalorder %s6530_s6, %s5549_s24  ;;  %p5556_p3 = scmp.lt.u32.totalorder %s5554_s3, %s5549_s24 }
 0x226   : > { %p5558_p11 = scmp.lt.u32.totalorder %s5549_s24, %s6530_s6 }
 0x227   : > { %p5552_p8 = pnand %p5550_p7, %p7786_p10  ;;  %p5557_p13 = por %p5556_p3, %p5555_p5 }
 0x229   : > { %p5553_p0 = pneg %p5552_p8  ;;  %p5559_p9 = por %p5558_p11, %p5557_p13 }
 0x22b   : > { %p5560_p1 = pnand %p5559_p9, %p5553_p0 }
 0x22d   : > { %5563 = shalt.err (!%p5560_p1)
}
 0x22e   : > { %s5564_s18 = scalar_lea.vmem %s6533_s0, 256  ;;  %s5825_s27 = smov [#allocation18]  }
 0x22f   : > { %p5565_p4 = scmp.ne.s32.totalorder %s6533_s0, %s5564_s18  ;;  %s5569_s12 = sshll.u32 %s5825_s27, 4  ;;  %s5570_s12 = int_to_ptr.vmem [resolvable:$false] %s5569_s12 }
 0x230   : > { %s5571_s17 = scalar_lea.vmem %s5570_s12, 512  ;;  %p5572_p7 = scmp.lt.s32.totalorder %s6533_s0, %s5570_s12 }
 0x231   : > { %p5567_p2 = pnand %p5565_p4, %p7786_p10  ;;  %p5573_p8 = scmp.lt.s32.totalorder %s5571_s17, %s5564_s18 }
 0x233   : > { %p5568_p6 = pneg %p5567_p2  ;;  %p5574_p5 = por %p5573_p8, %p5572_p7 }
 0x235   : > { %p5575_p3 = pnand %p5574_p5, %p5568_p6 }
 0x237   : > { %5578 = shalt.err (!%p5575_p3)
}
 0x238   : > { %4884 = dma.hbm_to_vmem [thread:$0]  (!%p7790_p12), %s6530_s6, 256, %s6533_s0, %s6330_s22, %s7759_s11, %s7759_s11, %s7758_s9  }
 0x239   : > { %s7792_s8 = sld [smem:[#allocation62_spill]] }
 0x23f   : > { %p7793_p10 = scmp.ne.s32.totalorder %s7792_s8, 0 }
 0x241   : > { %792 = sbr.rel (%p7793_p10) target bundleno = 3242 (0xcaa), region = 88 }
 0x248   : > { %s6563_s15 = sand.u32 1, %s5777_s1   ;;  %p7794_p0 = scmp.ne.s32.totalorder %s7764_s2, 0 }
 0x249   : > { %s6566_s30 = sshll.u32 %s6563_s15, 4  ;;  %s795_s29 = scalar_lea.sflag [#allocation11], %s6563_s15 }
 0x24a   : > { %s798_s23 = scalar_lea.vmem [#allocation10], %s6566_s30 }
 0x24b   : > { %5708 = dma.done.wait (%p7794_p0), %s795_s29, 256  }
 0x24c   : > { %5710 = vsyncadd (%p7794_p0), %s795_s29, 4294967040  ;;  %s7795_s22 = sld [smem:[#allocation54_spill]]  ;;  %s7796_s9 = sld [smem:[#allocation65_spill]] }
 0x24d   : > { %s6575_s11 = sand.u32 1, %s5999_s26  }
 0x24e   : > { %s804_s10 = scalar_lea.sflag [#allocation14], %s6575_s11 }
 0x252   : > { %s805_s19 = sand.u32 1, %s7795_s22   ;;  %p7797_p12 = scmp.ne.s32.totalorder %s7796_s9, 0 }
 0x253   : > { %s6578_s14 = sshll.u32 %s805_s19, 7 }
 0x254   : > { %s6582_s6 = scalar_lea.vmem [#allocation13], %s6578_s14 }
 0x255   : > { %5712 = dma.done.wait (%p7797_p12), %s804_s10, 2048  }
 0x256   : > { %5714 = vsyncadd (%p7797_p12), %s804_s10, 4294965248  ;;  %s815_s16 = scalar_lea.vmem [#allocation15], %s6563_s15 }
 0x257   : > { %5716 = dma.done.wait (%p7794_p0), %s804_s10, 16  }
 0x258   : > { %5718 = vsyncadd (%p7794_p0), %s804_s10, 4294967280  ;;  %s821_s0 = scalar_lea.sflag [#allocation17], %s6575_s11  ;;  %s824_s24 = scalar_lea.vmem [#allocation16], %s6566_s30 }
 0x259   : > { %5720 = dma.done.wait (%p7794_p0), %s821_s0, 512  }
 0x25a   : > { %5722 = vsyncadd (%p7794_p0), %s821_s0, 4294966784  ;;  %s6600_s20 = scalar_lea.vmem [#allocation18], %s6566_s30  ;;  %p7798_p13 = scmp.eq.s32.totalorder %s5999_s26, 0 }
 0x25c   : > { %5724 = dma.done.wait (%p7798_p13), [#allocation20], 4128   ;;  %p7799_p11 = pmov %p7798_p13 }
 0x25e   : > { %5726 = vsyncadd (%p7799_p11), [#allocation20], 4294963168  ;;  %p7800_p9 = pmov %p7799_p11 }
 0x260   : > { %5728 = dma.done.wait (%p7800_p9), [#allocation23], 8256   ;;  %p7801_p1 = pmov %p7800_p9 }
 0x262   : > { %5730 = vsyncadd (%p7801_p1), [#allocation23], 4294959040  ;;  %p7802_p4 = pmov %p7801_p1 }
 0x263   : > { %p7803_p2 = pmov %p7801_p1 }
 0x264   : > { %5732 = dma.done.wait (%p7802_p4), [#allocation26], 4128  }
 0x265   : > { %5734 = vsyncadd (%p7803_p2), [#allocation26], 4294963168  ;;  %p7804_p6 = pmov %p7801_p1 }
 0x266   : > { %p7805_p7 = pmov %p7801_p1 }
 0x267   : > { %5736 = dma.done.wait (%p7804_p6), [#allocation29], 8256  }
 0x268   : > { %5738 = vsyncadd (%p7805_p7), [#allocation29], 4294959040  ;;  %p7806_p8 = pmov %p7801_p1 }
 0x269   : > { %p7807_p5 = pmov %p7801_p1 }
 0x26a   : > { %5740 = dma.done.wait (%p7806_p8), [#allocation32], 16416  }
 0x26b   : > { %5742 = vsyncadd (%p7807_p5), [#allocation32], 4294950880  ;;  %p7808_p3 = pmov %p7801_p1 }
 0x26c   : > { %p7809_p10 = pmov %p7801_p1 }
 0x26d   : > { %5744 = dma.done.wait (%p7808_p3), [#allocation35], 128  }
 0x26e   : > { %5746 = vsyncadd (%p7809_p10), [#allocation35], 4294967168  ;;  %v6628_v0 = vld [vmem:[%s798_s23] sm:$0xff]  ;;  %v6632_v1 = vld [vmem:[%s798_s23 + $0x8] sm:$0xff]  ;;  %s6691_s26 = scalar_lea.vmem [#allocation37], %s6566_s30  ;;  %s6694_s2 = scalar_lea.vmem [#allocation38], %s6578_s14 }
 0x26f   : > { %7810 = vst [vmem:[#allocation72_spill] sm:$0xff] %v6628_v0  ;;  %7811 = vst [vmem:[#allocation73_spill] sm:$0xff] %v6632_v1  ;;  %v6634_v2 = vld [vmem:[%s815_s16] sm:$0x1]  ;;  %v6640_v4 = vld [vmem:[%s6600_s20 + $0x8] sm:$0xff]  ;;  %s963_s7 = scalar_lea.vmem [#allocation40], %s6563_s15 }
 0x270   : > { %7812 = vst [vmem:[#allocation74_spill] sm:$0xff] %v6634_v2  ;;  %v6637_v3 = vld [vmem:[%s6600_s20] sm:$0xff]  ;;  %7814 = vst [vmem:[#allocation76_spill] sm:$0xff] %v6640_v4  ;;  %s7815_s3 = sld [smem:[#allocation58_spill]] }
 0x271   : > { %7813 = vst [vmem:[#allocation75_spill] sm:$0xff] %v6637_v3  ;;  %v6643_v5 = vld [vmem:[%s6582_s6] sm:$0xff]  ;;  %v6646_v6 = vld [vmem:[%s6582_s6 + $0x8] sm:$0xff]  ;;  %v6649_v7 = vld [vmem:[%s6582_s6 + $0x10] sm:$0xff] }
 0x272   : > { %v6652_v8 = vld [vmem:[%s6582_s6 + $0x18] sm:$0xff]  ;;  %v6655_v9 = vld [vmem:[%s6582_s6 + $0x20] sm:$0xff]  ;;  %v6658_v10 = vld [vmem:[%s6582_s6 + $0x28] sm:$0xff] }
 0x273   : > { %v6661_v11 = vld [vmem:[%s6582_s6 + $0x30] sm:$0xff]  ;;  %v6664_v12 = vld [vmem:[%s6582_s6 + $0x38] sm:$0xff]  ;;  %v6667_v13 = vld [vmem:[%s6582_s6 + $0x40] sm:$0xff] }
 0x274   : > { %v6670_v14 = vld [vmem:[%s6582_s6 + $0x48] sm:$0xff]  ;;  %v6673_v15 = vld [vmem:[%s6582_s6 + $0x50] sm:$0xff]  ;;  %v6676_v16 = vld [vmem:[%s6582_s6 + $0x58] sm:$0xff] }
 0x275   : > { %v6679_v17 = vld [vmem:[%s6582_s6 + $0x60] sm:$0xff]  ;;  %v6682_v18 = vld [vmem:[%s6582_s6 + $0x68] sm:$0xff]  ;;  %v6685_v19 = vld [vmem:[%s6582_s6 + $0x70] sm:$0xff] }
 0x276   : > { %v6688_v20 = vld [vmem:[%s6582_s6 + $0x78] sm:$0xff]  ;;  %p3989_p0 = scmp.ne.s32.totalorder %s7815_s3, 0 }
 0x277   : > { %v992_v21 = vld [vmem:[#allocation22 + $0x8] sm:$0xff] (!%p3989_p0)  ;;  %v994_v23 = vld [vmem:[#allocation22 + $0x18] sm:$0xff] (!%p3989_p0)  ;;  %v991_v26 = vld [vmem:[#allocation22] sm:$0xff] (!%p3989_p0)  ;;  %v5826_v28 = vmov (!%p3989_p0), 0.0   ;;  %v5827_v34 = vmov (!%p3989_p0), 0  }
 0x278   : > { %990 = sbr.rel (%p3989_p0) target bundleno = 892 (0x37c), region = 160  ;;  %v996_v22 = vld [vmem:[#allocation22 + $0x28] sm:$0xff] (!%p3989_p0)  ;;  %v998_v25 = vld [vmem:[#allocation22 + $0x38] sm:$0xff] (!%p3989_p0)  ;;  %v995_v27 = vld [vmem:[#allocation22 + $0x20] sm:$0xff] (!%p3989_p0)  ;;  %1141 = vmatprep.mubr.f32.mxu0 (!%p3989_p0), %v5826_v28  ;;  %1290 = vst [vmem:[#allocation5] sm:$0xff] (!%p3989_p0), %v5826_v28  ;;  %1212 = vmatprep.mubr.f32.mxu1 (!%p3989_p0), %v5826_v28 }
 0x279   : > { %v4400_v24 = vpack.c.bf16 (!%p3989_p0), %v996_v22, %v992_v21  ;;  %1291 = vst [vmem:[#allocation5 + $0x8] sm:$0xff] (!%p3989_p0), %v5826_v28  ;;  %1292 = vst [vmem:[#allocation6] sm:$0x1] (!%p3989_p0), %v5826_v28  ;;  %v4432_v29 = vpack.c.bf16 (!%p3989_p0), %v998_v25, %v994_v23  ;;  %v4402_v30 = vpack.c.bf16 (!%p3989_p0), %v995_v27, %v991_v26  ;;  %v993_v31 = vld [vmem:[#allocation22 + $0x10] sm:$0xff] (!%p3989_p0)  ;;  %v1000_v33 = vld [vmem:[#allocation22 + $0x48] sm:$0xff] (!%p3989_p0)  ;;  %5041 = vset.pattern.permute.xlu0 (!%p3989_p0), %v5827_v34 }
 0x27a   : > { %1293 = vst [vmem:[#allocation7] sm:$0x1] (!%p3989_p0), %v5826_v28  ;;  %v997_v32 = vld [vmem:[#allocation22 + $0x30] sm:$0xff] (!%p3989_p0)  ;;  %v1004_v36 = vld [vmem:[#allocation22 + $0x68] sm:$0xff] (!%p3989_p0)  ;;  %v1002_v37 = vld [vmem:[#allocation22 + $0x58] sm:$0xff] (!%p3989_p0)  ;;  %1255 = vperm.xlu0 (!%p3989_p0), %5041, %v6637_v3  }
 0x27b   : > { %4401 = vmatprep.subr.bf16.mxu0 (!%p3989_p0), %v4400_v24  ;;  %v4434_v35 = vpack.c.bf16 (!%p3989_p0), %v997_v32, %v993_v31  ;;  %v1006_v38 = vld [vmem:[#allocation22 + $0x78] sm:$0xff] (!%p3989_p0)  ;;  %4433 = vmatprep.subr.bf16.mxu1 (!%p3989_p0), %v4432_v29  ;;  %v4404_v39 = vpack.c.bf16 (!%p3989_p0), %v1004_v36, %v1000_v33  ;;  %v999_v41 = vld [vmem:[#allocation22 + $0x40] sm:$0xff] (!%p3989_p0)  ;;  %v1001_v43 = vld [vmem:[#allocation22 + $0x50] sm:$0xff] (!%p3989_p0) }
 0x27c   : > { %4403 = vmatpush1.bf16.msra.mxu0 (!%p3989_p0), %v4402_v30  ;;  %v4436_v40 = vpack.c.bf16 (!%p3989_p0), %v1006_v38, %v1002_v37  ;;  %v1003_v42 = vld [vmem:[#allocation22 + $0x60] sm:$0xff] (!%p3989_p0)  ;;  %v1005_v45 = vld [vmem:[#allocation22 + $0x70] sm:$0xff] (!%p3989_p0)  ;;  %v1008_v46 = vld [vmem:[#allocation22 + $0x88] sm:$0xff] (!%p3989_p0) }
 0x27d   : > { %4435 = vmatpush1.bf16.msra.mxu1 (!%p3989_p0), %v4434_v35  ;;  %v4406_v44 = vpack.c.bf16 (!%p3989_p0), %v1003_v42, %v999_v41  ;;  %v1012_v47 = vld [vmem:[#allocation22 + $0xa8] sm:$0xff] (!%p3989_p0)  ;;  %4405 = vmatprep.subr.bf16.mxu0 (!%p3989_p0), %v4404_v39  ;;  %v4438_v48 = vpack.c.bf16 (!%p3989_p0), %v1005_v45, %v1001_v43  ;;  %v1010_v50 = vld [vmem:[#allocation22 + $0x98] sm:$0xff] (!%p3989_p0)  ;;  %v1007_v52 = vld [vmem:[#allocation22 + $0x80] sm:$0xff] (!%p3989_p0) }
 0x27e   : > { %4437 = vmatprep.subr.bf16.mxu1 (!%p3989_p0), %v4436_v40  ;;  %v4408_v49 = vpack.c.bf16 (!%p3989_p0), %v1012_v47, %v1008_v46  ;;  %v1014_v51 = vld [vmem:[#allocation22 + $0xb8] sm:$0xff] (!%p3989_p0)  ;;  %v1011_v54 = vld [vmem:[#allocation22 + $0xa0] sm:$0xff] (!%p3989_p0)  ;;  %v1009_v55 = vld [vmem:[#allocation22 + $0x90] sm:$0xff] (!%p3989_p0)  ;;  %1260 = vperm.xlu0 (!%p3989_p0), %5041, %v6640_v4  }
 0x27f   : > { %v4440_v53 = vpack.c.bf16 %v1014_v51, %v1010_v50  ;;  %v1013_v56 = vld [vmem:[#allocation22 + $0xb0] sm:$0xff]  ;;  %v4410_v57 = vpack.c.bf16 %v1011_v54, %v1007_v52  ;;  %v1016_v58 = vld [vmem:[#allocation22 + $0xc8] sm:$0xff]  ;;  %v1018_v60 = vld [vmem:[#allocation22 + $0xd8] sm:$0xff] }
 0x280   : > { %4407 = vmatpush1.bf16.msra.mxu0 %v4406_v44  ;;  %v1020_v59 = vld [vmem:[#allocation22 + $0xe8] sm:$0xff]  ;;  %v4442_v61 = vpack.c.bf16 %v1013_v56, %v1009_v55  ;;  %v1022_v63 = vld [vmem:[#allocation22 + $0xf8] sm:$0xff]  ;;  %v1015_v21 = vld [vmem:[#allocation22 + $0xc0] sm:$0xff] }
 0x281   : > { %4439 = vmatpush1.bf16.msra.mxu1 %v4438_v48  ;;  %4409 = vmatprep.subr.bf16.mxu0 %v4408_v49  ;;  %v4412_v62 = vpack.c.bf16 %v1020_v59, %v1016_v58  ;;  %v1019_v22 = vld [vmem:[#allocation22 + $0xe0] sm:$0xff]  ;;  %v4444_v23 = vpack.c.bf16 %v1022_v63, %v1018_v60  ;;  %v1017_v24 = vld [vmem:[#allocation22 + $0xd0] sm:$0xff]  ;;  %v1024_v26 = vld [vmem:[#allocation22 + $0x108] sm:$0xff] }
 0x282   : > { %4441 = vmatprep.subr.bf16.mxu1 %v4440_v53  ;;  %v1021_v25 = vld [vmem:[#allocation22 + $0xf0] sm:$0xff]  ;;  %v1028_v27 = vld [vmem:[#allocation22 + $0x128] sm:$0xff]  ;;  %v1026_v28 = vld [vmem:[#allocation22 + $0x118] sm:$0xff]  ;;  %v4414_v30 = vpack.c.bf16 %v1019_v22, %v1015_v21 }
 0x283   : > { %v1030_v29 = vld [vmem:[#allocation22 + $0x138] sm:$0xff]  ;;  %v4446_v31 = vpack.c.bf16 %v1021_v25, %v1017_v24  ;;  %v4416_v32 = vpack.c.bf16 %v1028_v27, %v1024_v26  ;;  %v1023_v33 = vld [vmem:[#allocation22 + $0x100] sm:$0xff]  ;;  %v1025_v35 = vld [vmem:[#allocation22 + $0x110] sm:$0xff] }
 0x284   : > { %4411 = vmatpush1.bf16.msra.mxu0 %v4410_v57  ;;  %v1027_v34 = vld [vmem:[#allocation22 + $0x120] sm:$0xff]  ;;  %v4448_v36 = vpack.c.bf16 %v1030_v29, %v1026_v28  ;;  %v1029_v37 = vld [vmem:[#allocation22 + $0x130] sm:$0xff]  ;;  %v1032_v38 = vld [vmem:[#allocation22 + $0x148] sm:$0xff] }
 0x285   : > { %4443 = vmatpush1.bf16.msra.mxu1 %v4442_v61  ;;  %4413 = vmatprep.subr.bf16.mxu0 %v4412_v62  ;;  %v1036_v39 = vld [vmem:[#allocation22 + $0x168] sm:$0xff]  ;;  %v1034_v40 = vld [vmem:[#allocation22 + $0x158] sm:$0xff]  ;;  %v4418_v42 = vpack.c.bf16 %v1027_v34, %v1023_v33  ;;  %v4450_v43 = vpack.c.bf16 %v1029_v37, %v1025_v35  ;;  %v1031_v45 = vld [vmem:[#allocation22 + $0x140] sm:$0xff]  ;;  %v1267_v33 = vadd.f32 %v6646_v6, %v6643_v5 }
 0x286   : > { %4445 = vmatprep.subr.bf16.mxu1 %v4444_v23  ;;  %v1038_v41 = vld [vmem:[#allocation22 + $0x178] sm:$0xff]  ;;  %v4420_v44 = vpack.c.bf16 %v1036_v39, %v1032_v38  ;;  %v1035_v46 = vld [vmem:[#allocation22 + $0x160] sm:$0xff]  ;;  %v1033_v47 = vld [vmem:[#allocation22 + $0x150] sm:$0xff] }
 0x287   : > { %v4452_v48 = vpack.c.bf16 %v1038_v41, %v1034_v40  ;;  %v1037_v49 = vld [vmem:[#allocation22 + $0x170] sm:$0xff]  ;;  %v1040_v50 = vld [vmem:[#allocation22 + $0x188] sm:$0xff]  ;;  %v1042_v52 = vld [vmem:[#allocation22 + $0x198] sm:$0xff]  ;;  %v4422_v54 = vpack.c.bf16 %v1035_v46, %v1031_v45  ;;  %v1268_v34 = vadd.f32 %v1267_v33, %v6649_v7 }
 0x288   : > { %4415 = vmatpush1.bf16.msra.mxu0 %v4414_v30  ;;  %v1044_v51 = vld [vmem:[#allocation22 + $0x1a8] sm:$0xff]  ;;  %v1046_v53 = vld [vmem:[#allocation22 + $0x1b8] sm:$0xff]  ;;  %v4454_v55 = vpack.c.bf16 %v1037_v49, %v1033_v47  ;;  %v1039_v57 = vld [vmem:[#allocation22 + $0x180] sm:$0xff] }
 0x289   : > { %4447 = vmatpush1.bf16.msra.mxu1 %v4446_v31  ;;  %4417 = vmatprep.subr.bf16.mxu0 %v4416_v32  ;;  %v4424_v56 = vpack.c.bf16 %v1044_v51, %v1040_v50  ;;  %v1043_v58 = vld [vmem:[#allocation22 + $0x1a0] sm:$0xff]  ;;  %v1041_v59 = vld [vmem:[#allocation22 + $0x190] sm:$0xff]  ;;  %v4456_v60 = vpack.c.bf16 %v1046_v53, %v1042_v52  ;;  %v1048_v62 = vld [vmem:[#allocation22 + $0x1c8] sm:$0xff]  ;;  %v1269_v35 = vadd.f32 %v1268_v34, %v6652_v8 }
 0x28a   : > { %4449 = vmatprep.subr.bf16.mxu1 %v4448_v36  ;;  %v1045_v61 = vld [vmem:[#allocation22 + $0x1b0] sm:$0xff]  ;;  %v1052_v63 = vld [vmem:[#allocation22 + $0x1e8] sm:$0xff]  ;;  %v1050_v21 = vld [vmem:[#allocation22 + $0x1d8] sm:$0xff]  ;;  %v4426_v23 = vpack.c.bf16 %v1043_v58, %v1039_v57  ;;  %v5828_v57 = vmov inf   ;;  %v5829_v58 = vmov -inf  }
 0x28b   : > { %v1054_v22 = vld [vmem:[#allocation22 + $0x1f8] sm:$0xff]  ;;  %v4458_v24 = vpack.c.bf16 %v1045_v61, %v1041_v59  ;;  %v4428_v25 = vpack.c.bf16 %v1052_v63, %v1048_v62  ;;  %v1047_v26 = vld [vmem:[#allocation22 + $0x1c0] sm:$0xff]  ;;  %v1049_v29 = vld [vmem:[#allocation22 + $0x1d0] sm:$0xff]  ;;  %v1270_v36 = vadd.f32 %v1269_v35, %v6655_v9  ;;  %1294 = vst [vmem:[#allocation8] sm:$0x1] %v5828_v57  ;;  %v1057_v61 = vlaneseq }
 0x28c   : > { %4419 = vmatpush1.bf16.msra.mxu0 %v4418_v42  ;;  %v1051_v27 = vld [vmem:[#allocation22 + $0x1e0] sm:$0xff]  ;;  %v4460_v28 = vpack.c.bf16 %v1054_v22, %v1050_v21  ;;  %v1053_v30 = vld [vmem:[#allocation22 + $0x1f0] sm:$0xff]  ;;  %1295 = vst [vmem:[#allocation9] sm:$0x1] %v5829_v58 }
 0x28d   : > { %4451 = vmatpush1.bf16.msra.mxu1 %v4450_v43  ;;  %4421 = vmatprep.subr.bf16.mxu0 %v4420_v44  ;;  %v4430_v31 = vpack.c.bf16 %v1051_v27, %v1047_v26  ;;  %v4462_v32 = vpack.c.bf16 %v1053_v30, %v1049_v29  ;;  %v1271_v37 = vadd.f32 %v1270_v36, %v6658_v10  ;;  %v1058_v62 = vshrl.u32 %v1057_v61, 7  ;;  %v1055_v21 = vld [vmem:[#allocation24] sm:$0xf] }
 0x28e   : > { %4453 = vmatprep.subr.bf16.mxu1 %v4452_v48  ;;  %vm1250_vm0 = vcmp.lt.s32.totalorder %v1057_v61, 512 }
 0x28f   : > { %v1272_v38 = vadd.f32 %v1271_v37, %v6661_v11  ;;  %v1059_v63 = vsub.s32 0, %v1058_v62  ;;  %v1067_v22 = vsub.s32 2, %v1058_v62  ;;  %v1071_v26 = vsub.s32 3, %v1058_v62 }
 0x290   : > { %4423 = vmatpush1.bf16.msra.mxu0 %v4422_v54 }
 0x291   : > { %4455 = vmatpush1.bf16.msra.mxu1 %v4454_v55  ;;  %4425 = vmatprep.subr.bf16.mxu0 %v4424_v56  ;;  %v1273_v39 = vadd.f32 %v1272_v38, %v6664_v12  ;;  %v1060_v27 = vrot.slane %v1055_v21, %v1059_v63 }
 0x292   : > { %4457 = vmatprep.subr.bf16.mxu1 %v4456_v60 }
 0x293   : > { %v1274_v40 = vadd.f32 %v1273_v39, %v6667_v13 }
 0x294   : > { %4427 = vmatpush1.bf16.msra.mxu0 %v4426_v23  ;;  %v1063_v23 = vsub.s32 1, %v1058_v62 }
 0x295   : > { %4459 = vmatpush1.bf16.msra.mxu1 %v4458_v24  ;;  %4429 = vmatprep.subr.bf16.mxu0 %v4428_v25  ;;  %v1275_v41 = vadd.f32 %v1274_v40, %v6670_v14  ;;  %v5830_v24 = vmov 1966171168  }
 0x296   : > { %4461 = vmatprep.subr.bf16.mxu1 %v4460_v28  ;;  %v1226_v25 = vunpack.c.l.s4 %v5830_v24  ;;  %v1068_v28 = vrot.slane %v1055_v21, %v1067_v22  ;;  %v1064_v29 = vrot.slane %v1055_v21, %v1063_v23 }
 0x297   : > { %v1276_v42 = vadd.f32 %v1275_v41, %v6673_v15 }
 0x298   : > { %4431 = vmatpush1.bf16.msra.mxu0 %v4430_v31  ;;  %v1227_v30 = vunpack.c.0.s8 %v1226_v25  ;;  %v1072_v31 = vrot.slane %v1055_v21, %v1071_v26 }
 0x299   : > { %4463 = vmatpush1.bf16.msra.mxu1 %v4462_v32  ;;  %v1277_v43 = vadd.f32 %v1276_v42, %v6676_v16 }
 0x29a   : > { %v1230_v38 = vsub.s32 %v1227_v30, %v1058_v62 }
 0x29b   : > { %1142 = vmatmul.mubr.f32.vlgmr.msra.gmra.mrb[0].mxu0 %v6634_v2  ;;  %v1278_v44 = vadd.f32 %v1277_v43, %v6679_v17 }
 0x29c   : > { %1213 = vmatmul.mubr.f32.vlgmr.msra.gmra.mrb[0].mxu1 %v6634_v2 }
 0x29d   : > { %v1279_v45 = vadd.f32 %v1278_v44, %v6682_v18 }
 0x29f   : > { %v1280_v46 = vadd.f32 %v1279_v45, %v6685_v19 }
 0x2a1   : > { %v1281_v47 = vadd.f32 %v1280_v46, %v6688_v20 }
 0x2a3   : > { %v1282_v48 = vrot.slane %v1281_v47, 4 }
 0x2a5   : > { %v1283_v49 = vadd.f32 %v1282_v48, %v1281_v47 }
 0x2a7   : > { %v1284_v50 = vrot.slane %v1283_v49, 2 }
 0x2a9   : > { %v1285_v51 = vadd.f32 %v1284_v50, %v1283_v49 }
 0x2ab   : > { %v1286_v52 = vrot.slane %v1285_v51, 1 }
 0x2ad   : > { %v1287_v53 = vadd.f32 %v1286_v52, %v1285_v51 }
 0x2af   : > { %v1288_v54 = vmul.f32 0.0078125, %v1287_v53 }
 0x2b1   : > { %1289 = vst [vmem:[#allocation4] sm:$0x1] %v1288_v54 }
 0x2f9   : > { %v1256_v55 = vpop.permute.xlu0 %1255 }
 0x2fa   : > { %v1263_v56 = vmul.f32 %v1256_v55, %v6628_v0 }
 0x2fc   : > { %1265 = vst [vmem:[#allocation3] sm:$0xff] %v1263_v56 }
 0x2fd   : > { %v1261_v59 = vpop.permute.xlu0 %1260 }
 0x2fe   : > { %v1264_v60 = vmul.f32 %v1261_v59, %v6632_v1 }
 0x300   : > { %1266 = vst [vmem:[#allocation3 + $0x8] sm:$0xff] %v1264_v60 }
 0x36e   : > { %v1143_v32 = vpop.f32.mrb[0].mxu0 }
 0x36f   : > { %v1144_v33 = vadd.f32 %v1143_v32, %v1060_v27  ;;  %v1214_v34 = vpop.f32.mrb[0].mxu1  ;;  %v1145_v35 = vpop.f32.mrb[1].mxu0 }
 0x370   : > { %v1215_v36 = vadd.f32 %v1214_v34, %v1068_v28  ;;  %v1146_v37 = vadd.f32 %v1145_v35, %v1064_v29  ;;  %v1216_v39 = vpop.f32.mrb[1].mxu1 }
 0x371   : > { %v1217_v40 = vadd.f32 %v1216_v39, %v1072_v31 }
 0x372   : > { %v1223_v41 = vcombine.low %v1144_v33, %v1146_v37 }
 0x373   : > { %v1224_v42 = vcombine.low %v1215_v36, %v1217_v40 }
 0x374   : > { %v1231_v43 = vrot.slane %v1223_v41, %v1230_v38 }
 0x375   : > { %v1238_v44 = vrot.slane %v1224_v42, %v1230_v38 }
 0x377   : > { %v1239_v45 = vcombine.low %v1231_v43, %v1238_v44 }
 0x379   : > { %v1246_v46 = vrot.slane %v1239_v45, %v1230_v38 }
 0x37b   : > { %1252 = vst.msk [vmem:[#allocation2] sm:$0xf] %vm1250_vm0, %v1246_v46 }
 0x37c PF: > { %v6720_v47 = vld [vmem:[#allocation4] ss:$0 sm:$0xff]  ;;  %v1297_v48 = vadd.f32 %v6649_v7, %v6643_v5  ;;  %v1304_v49 = vadd.f32 %v6652_v8, %v6646_v6  ;;  %v1390_v56 = vmin.f32 %v6643_v5, %v6655_v9  ;;  %v1391_v60 = vmin.f32 %v6646_v6, %v6658_v10  ;;  %v1311_v38 = vld [vmem:[#allocation5] sm:$0xff]  ;;  %s7816_s21 = sld [smem:[#allocation58_spill]] }
 0x37d   : > { %v1333_v52 = vsub.f32 %v6643_v5, %v6720_v47  ;;  %v1334_v53 = vsub.f32 %v6646_v6, %v6720_v47  ;;  %v1335_v57 = vsub.f32 %v6649_v7, %v6720_v47  ;;  %v1336_v58 = vsub.f32 %v6652_v8, %v6720_v47  ;;  %v1312_v39 = vld [vmem:[#allocation5 + $0x8] sm:$0xff] }
 0x37e   : > { %v1298_v50 = vadd.f32 %v1297_v48, %v6655_v9  ;;  %v1305_v51 = vadd.f32 %v1304_v49, %v6658_v10  ;;  %v1337_v59 = vsub.f32 %v6655_v9, %v6720_v47  ;;  %v1338_v63 = vsub.f32 %v6658_v10, %v6720_v47 }
 0x37f   : > { %v1339_v21 = vsub.f32 %v6661_v11, %v6720_v47  ;;  %v1340_v22 = vsub.f32 %v6664_v12, %v6720_v47  ;;  %v1341_v23 = vsub.f32 %v6667_v13, %v6720_v47  ;;  %v1350_v24 = vmul.f32 %v1333_v52, %v1333_v52 }
 0x380   : > { %v1299_v54 = vadd.f32 %v1298_v50, %v6661_v11  ;;  %v1306_v55 = vadd.f32 %v1305_v51, %v6664_v12  ;;  %v1351_v25 = vmul.f32 %v1334_v53, %v1334_v53  ;;  %v6758_v28 = vsub.f32 %v6670_v14, %v6720_v47 }
 0x381   : > { %v6762_v29 = vsub.f32 %v6673_v15, %v6720_v47  ;;  %v6766_v30 = vsub.f32 %v6676_v16, %v6720_v47  ;;  %v1352_v31 = vmul.f32 %v1335_v57, %v1335_v57  ;;  %v1353_v32 = vmul.f32 %v1336_v58, %v1336_v58 }
 0x382   : > { %v1300_v61 = vadd.f32 %v1299_v54, %v6667_v13  ;;  %v1307_v62 = vadd.f32 %v1306_v55, %v6670_v14  ;;  %v1354_v33 = vmul.f32 %v1337_v59, %v1337_v59  ;;  %v1355_v36 = vmul.f32 %v1338_v63, %v1338_v63  ;;  %s3991_s5 = sshll.u32 %s7816_s21, 3  ;;  %p3996_p12 = scmp.ne.s32.totalorder %s7816_s21, 1 }
 0x383   : > { %v1356_v37 = vmul.f32 %v1339_v21, %v1339_v21  ;;  %v1357_v40 = vmul.f32 %v1340_v22, %v1340_v22  ;;  %v6770_v41 = vmul.f32 %v1341_v23, %v1341_v23  ;;  %v1366_v42 = vadd.f32 %v1351_v25, %v1350_v24  ;;  %v1658_v22 = vld [vmem:[#allocation19 + $0x8] sm:$0xff]  ;;  %v1660_v23 = vld [vmem:[#allocation19 + $0x18] sm:$0xff]  ;;  %s1438_s18 = scalar_lea.vmem %s6600_s20, %s3991_s5 [#allocation18]  ;;  %s1440_s27 = scalar_lea.vmem [#allocation3], %s3991_s5 }
 0x384   : > { %v1301_v26 = vadd.f32 %v1300_v61, %v6673_v15  ;;  %v1308_v27 = vadd.f32 %v1307_v62, %v6676_v16  ;;  %v1392_v43 = vmin.f32 %v6649_v7, %v6661_v11  ;;  %v1393_v46 = vmin.f32 %v6652_v8, %v6664_v12 }
 0x385   : > { %v1394_v48 = vmin.f32 %v1390_v56, %v6667_v13  ;;  %v1367_v49 = vadd.f32 %v1366_v42, %v1352_v31  ;;  %v1395_v50 = vmin.f32 %v1391_v60, %v6670_v14  ;;  %v1414_v52 = vmax.f32 %v6643_v5, %v6655_v9  ;;  %v1657_v31 = vld [vmem:[#allocation19] sm:$0xff]  ;;  %v1662_v42 = vld [vmem:[#allocation19 + $0x28] sm:$0xff] }
 0x386   : > { %v1302_v34 = vadd.f32 %v1301_v26, %v6679_v17  ;;  %v1309_v35 = vadd.f32 %v1308_v27, %v6682_v18  ;;  %v1396_v51 = vmin.f32 %v1392_v43, %v6673_v15  ;;  %v1397_v57 = vmin.f32 %v1393_v46, %v6676_v16  ;;  %v1664_v43 = vld [vmem:[#allocation19 + $0x38] sm:$0xff] }
 0x387   : > { %v1368_v58 = vadd.f32 %v1367_v49, %v1353_v32  ;;  %v1398_v59 = vmin.f32 %v1394_v48, %v6679_v17  ;;  %v1399_v61 = vmin.f32 %v1395_v50, %v6682_v18  ;;  %v1415_v63 = vmax.f32 %v6646_v6, %v6658_v10 }
 0x388   : > { %v1303_v44 = vadd.f32 %v1302_v34, %v6685_v19  ;;  %v1310_v45 = vadd.f32 %v1309_v35, %v6688_v20  ;;  %v1400_v56 = vmin.f32 %v1396_v51, %v6685_v19  ;;  %v1401_v62 = vmin.f32 %v1397_v57, %v6688_v20 }
 0x389   : > { %v1416_v21 = vmax.f32 %v6649_v7, %v6661_v11  ;;  %v1369_v24 = vadd.f32 %v1368_v58, %v1354_v33  ;;  %v1402_v25 = vmin.f32 %v1398_v59, %v1399_v61  ;;  %v1417_v26 = vmax.f32 %v6652_v8, %v6664_v12  ;;  %v1668_v59 = vld [vmem:[#allocation19 + $0x58] sm:$0xff] }
 0x38a   : > { %v1313_v53 = vadd.f32 %v1311_v38, %v1303_v44  ;;  %v1314_v54 = vadd.f32 %v1312_v39, %v1310_v45  ;;  %v1318_v55 = vadd.f32 %v1310_v45, %v1303_v44  ;;  %v1418_v27 = vmax.f32 %v1414_v52, %v6667_v13  ;;  %v1659_v39 = vld [vmem:[#allocation19 + $0x10] sm:$0xff]  ;;  %v1661_v52 = vld [vmem:[#allocation19 + $0x20] sm:$0xff] }
 0x38b   : > { %v1403_v34 = vmin.f32 %v1400_v56, %v1401_v62  ;;  %v1419_v35 = vmax.f32 %v1415_v63, %v6670_v14  ;;  %v1420_v38 = vmax.f32 %v1416_v21, %v6673_v15  ;;  %v1370_v44 = vadd.f32 %v1369_v24, %v1355_v36  ;;  %v1666_v36 = vld [vmem:[#allocation19 + $0x48] sm:$0xff] }
 0x38c   : > { %1315 = vst [vmem:[#allocation5] sm:$0xff] %v1313_v53  ;;  %1316 = vst [vmem:[#allocation5 + $0x8] sm:$0xff] %v1314_v54  ;;  %v1319_v60 = vrot.slane %v1318_v55, 4  ;;  %v1421_v45 = vmax.f32 %v1417_v26, %v6676_v16  ;;  %v1422_v33 = vmax.f32 %v1418_v27, %v6679_v17  ;;  %v4464_v46 = vpack.c.bf16 %v1660_v23, %v1658_v22  ;;  %v1663_v53 = vld [vmem:[#allocation19 + $0x30] sm:$0xff]  ;;  %v1665_v27 = vld [vmem:[#allocation19 + $0x40] sm:$0xff] }
 0x38d   : > { %v1404_v49 = vmin.f32 %v1402_v25, %v1403_v34  ;;  %v1423_v50 = vmax.f32 %v1419_v35, %v6682_v18  ;;  %v1424_v51 = vmax.f32 %v1420_v38, %v6685_v19  ;;  %v1371_v54 = vadd.f32 %v1370_v44, %v1356_v37  ;;  %v1670_v38 = vld [vmem:[#allocation19 + $0x68] sm:$0xff] }
 0x38e   : > { %v1320_v32 = vadd.f32 %v1319_v60, %v1318_v55  ;;  %v1425_v55 = vmax.f32 %v1421_v45, %v6688_v20  ;;  %4465 = vmatprep.subr.bf16.mxu0 %v4464_v46  ;;  %v4466_v57 = vpack.c.bf16 %v1659_v39, %v1657_v31  ;;  %v4468_v58 = vpack.c.bf16 %v1664_v43, %v1662_v42  ;;  %v1667_v31 = vld [vmem:[#allocation19 + $0x50] sm:$0xff]  ;;  %v1672_v39 = vld [vmem:[#allocation19 + $0x78] sm:$0xff] }
 0x38f   : > { %v1345_v56 = vsub.f32 %v6679_v17, %v6720_v47  ;;  %v1405_v60 = vrot.slane %v1404_v49, 4  ;;  %v1426_v62 = vmax.f32 %v1422_v33, %v1423_v50  ;;  %v1359_v63 = vmul.f32 %v6758_v28, %v6758_v28  ;;  %v1671_v50 = vld [vmem:[#allocation19 + $0x70] sm:$0xff] }
 0x390   : > { %v1321_v48 = vrot.slane %v1320_v32, 2  ;;  %v1372_v21 = vadd.f32 %v1371_v54, %v1357_v40  ;;  %v1427_v22 = vmax.f32 %v1424_v51, %v1425_v55  ;;  %4467 = vmatpush1.bf16.msra.mxu0 %v4466_v57  ;;  %v4470_v37 = vpack.c.bf16 %v1663_v53, %v1661_v52  ;;  %v1674_v54 = vld [vmem:[#allocation19 + $0x88] sm:$0xff]  ;;  %v1676_v55 = vld [vmem:[#allocation19 + $0x98] sm:$0xff] }
 0x391   : > { %v1346_v24 = vsub.f32 %v6682_v18, %v6720_v47  ;;  %v1406_v25 = vmin.f32 %v1404_v49, %v1405_v60  ;;  %4469 = vmatprep.subr.bf16.mxu0 %v4468_v58  ;;  %v4472_v26 = vpack.c.bf16 %v1668_v59, %v1666_v36  ;;  %v1347_v34 = vsub.f32 %v6685_v19, %v6720_v47  ;;  %v2055_v58 = vld [vmem:[#allocation28 + $0x88] sm:$0xff]  ;;  %v2056_v36 = vld [vmem:[#allocation28 + $0x90] sm:$0xff]  ;;  %v2057_v59 = vld [vmem:[#allocation28 + $0x98] sm:$0xff] }
 0x392   : > { %v1322_v61 = vadd.f32 %v1321_v48, %v1320_v32  ;;  %v1317_v32 = vld [vmem:[#allocation6] sm:$0x1]  ;;  %v1360_v28 = vmul.f32 %v6762_v29, %v6762_v29  ;;  %v1373_v40 = vadd.f32 %v1372_v21, %v6770_v41  ;;  %v1428_v35 = vmax.f32 %v1426_v62, %v1427_v22  ;;  %v1669_v29 = vld [vmem:[#allocation19 + $0x60] sm:$0xff]  ;;  %v1389_v22 = vld [vmem:[#allocation8] sm:$0x1] }
 0x393   : > { %v1348_v43 = vsub.f32 %v6688_v20, %v6720_v47  ;;  %v1361_v44 = vmul.f32 %v6766_v30, %v6766_v30  ;;  %v1407_v45 = vrot.slane %v1406_v25, 2  ;;  %v1362_v33 = vmul.f32 %v1345_v56, %v1345_v56  ;;  %v2054_v47 = vld [vmem:[#allocation28 + $0x80] sm:$0xff] }
 0x394   : > { %v1323_v23 = vrot.slane %v1322_v61, 1  ;;  %v1374_v46 = vadd.f32 %v1373_v40, %v1359_v63  ;;  %v1429_v48 = vrot.slane %v1428_v35, 4  ;;  %4471 = vmatpush1.bf16.msra.mxu0 %v4470_v37  ;;  %v4474_v49 = vpack.c.bf16 %v1667_v31, %v1665_v27  ;;  %v1673_v27 = vld [vmem:[#allocation19 + $0x80] sm:$0xff]  ;;  %v1675_v31 = vld [vmem:[#allocation19 + $0x90] sm:$0xff] }
 0x395   : > { %v1363_v51 = vmul.f32 %v1346_v24, %v1346_v24  ;;  %v1408_v52 = vmin.f32 %v1406_v25, %v1407_v45  ;;  %4473 = vmatprep.subr.bf16.mxu0 %v4472_v26  ;;  %v4476_v53 = vpack.c.bf16 %v1672_v39, %v1670_v38  ;;  %v4478_v56 = vpack.c.bf16 %v1671_v50, %v1669_v29  ;;  %v1439_v50 = vld [vmem:[%s1438_s18] sm:$0xff] }
 0x396   : > { %v1324_v42 = vadd.f32 %v1323_v23, %v1322_v61  ;;  %v1375_v57 = vadd.f32 %v1374_v46, %v1360_v28  ;;  %v1430_v30 = vmax.f32 %v1428_v35, %v1429_v48  ;;  %v5831_v60 = vmov 0.0   ;;  %v2058_v46 = vld [vmem:[#allocation28 + $0xa0] sm:$0xff]  ;;  %v2059_v48 = vld [vmem:[#allocation28 + $0xa8] sm:$0xff] }
 0x397   : > { %v1409_v61 = vrot.slane %v1408_v52, 1  ;;  %1765 = vmatprep.mubr.f32.mxu0 %v5831_v60  ;;  %v5832_v62 = vmov 0   ;;  %v1450_v63 = vlaneseq  ;;  %v4480_v23 = vpack.c.bf16 %v1676_v55, %v1674_v54  ;;  %v1677_v54 = vld [vmem:[#allocation19 + $0xa0] sm:$0xff]  ;;  %v1679_v55 = vld [vmem:[#allocation19 + $0xb0] sm:$0xff] }
 0x398   : > { %v1325_v41 = vadd.f32 %v1324_v42, %v1317_v32  ;;  %5042 = vset.pattern.permute.xlu0 %v5832_v62  ;;  %v1376_v21 = vadd.f32 %v1375_v57, %v1361_v44  ;;  %v1431_v37 = vrot.slane %v1430_v30, 2  ;;  %4475 = vmatpush1.bf16.msra.mxu0 %v4474_v49  ;;  %v5833_v24 = vmov 1966171168   ;;  %v1678_v32 = vld [vmem:[#allocation19 + $0xa8] sm:$0xff]  ;;  %v1680_v44 = vld [vmem:[#allocation19 + $0xb8] sm:$0xff] }
 0x399   : > { %v1448_v25 = vunpack.c.l.s4 %v5833_v24  ;;  %5043 = vset.pattern.permute.xlu1 %v5832_v62  ;;  %v1410_v26 = vmin.f32 %v1408_v52, %v1409_v61  ;;  %4477 = vmatprep.subr.bf16.mxu0 %v4476_v53  ;;  %v6822_v28 = vshrl.u32 %v1450_v63, 7  ;;  %v4496_v40 = vpack.c.bf16 %v2055_v58, %v2054_v47  ;;  %v1682_v58 = vld [vmem:[#allocation19 + $0xc8] sm:$0xff]  ;;  %v1681_v24 = vld [vmem:[#allocation19 + $0xc0] sm:$0xff] }
 0x39a   : > { %1326 = vst [vmem:[#allocation6] sm:$0x1] %v1325_v41  ;;  %v4500_v35 = vpack.c.bf16 %v2057_v59, %v2056_v36  ;;  %v1364_v38 = vmul.f32 %v1347_v34, %v1347_v34  ;;  %v1377_v39 = vadd.f32 %v1376_v21, %v1362_v33  ;;  %v1432_v42 = vmax.f32 %v1430_v30, %v1431_v37  ;;  %v1413_v34 = vld [vmem:[#allocation9] sm:$0x1]  ;;  %v2061_v37 = vld [vmem:[#allocation28 + $0xb8] sm:$0xff] }
 0x39b   : > { %7817 = vst [vmem:[#allocation77_spill] sm:$0xff] %v6822_v28  ;;  %v1449_v45 = vunpack.c.0.s8 %v1448_v25  ;;  %v1365_v49 = vmul.f32 %v1348_v43, %v1348_v43  ;;  %v1411_v29 = vmin.f32 %v1389_v22, %v1410_v26  ;;  %4497 = vmatprep.subr.bf16.mxu1 %v4496_v40  ;;  %v4482_v53 = vpack.c.bf16 %v1675_v31, %v1673_v27  ;;  %v1684_v36 = vld [vmem:[#allocation19 + $0xd8] sm:$0xff]  ;;  %v1683_v25 = vld [vmem:[#allocation19 + $0xd0] sm:$0xff]  ;;  %v1686_v31 = vld [vmem:[#allocation19 + $0xe8] sm:$0xff] }
 0x39c   : > { %v1378_v41 = vadd.f32 %v1377_v39, %v1363_v51  ;;  %v1433_v52 = vrot.slane %v1432_v42, 1  ;;  %4479 = vmatpush1.bf16.msra.mxu0 %v4478_v56  ;;  %4499 = vmatpush3.bf16.msra.mxu1 %v4496_v40  ;;  %v4484_v33 = vpack.c.bf16 %v1680_v44, %v1678_v32  ;;  %v4504_v57 = vpack.c.bf16 %v2059_v48, %v2058_v46  ;;  %v2060_v22 = vld [vmem:[#allocation28 + $0xb0] sm:$0xff] }
 0x39d   : > { %v6825_v47 = vsub.s32 %v1449_v45, %v6822_v28  ;;  %1412 = vst [vmem:[#allocation8] sm:$0x1] %v1411_v29  ;;  %4481 = vmatprep.subr.bf16.mxu0 %v4480_v23  ;;  %4501 = vmatprep.subr.bf16.mxu1 %v4500_v35  ;;  %v6828_v51 = vsub.s32 0, %v6822_v28  ;;  %v4486_v61 = vpack.c.bf16 %v1679_v55, %v1677_v54  ;;  %v1688_v32 = vld [vmem:[#allocation19 + $0xf8] sm:$0xff]  ;;  %v1687_v29 = vld [vmem:[#allocation19 + $0xf0] sm:$0xff]  ;;  %vm5837_vm5 = vmmov (!%p3996_p12), 0  }
 0x39e   : > { %v1379_v43 = vadd.f32 %v1378_v41, %v1364_v38  ;;  %v1434_v30 = vmax.f32 %v1432_v42, %v1433_v52  ;;  %v4488_v23 = vpack.c.bf16 %v1684_v36, %v1682_v58  ;;  %v1552_v26 = vcombine.high %v1439_v50, %v1439_v50 }
 0x39f   : > { %7818 = vst [vmem:[#allocation78_spill] sm:$0xff] %v6828_v51  ;;  %v1559_v59 = vrot.slane %v1439_v50, %v6825_v47  ;;  %v4508_v42 = vpack.c.bf16 %v2061_v37, %v2060_v22  ;;  %v4490_v45 = vpack.c.bf16 %v1683_v25, %v1681_v24  ;;  %vm3516_vm6 = vcmask (!%p3996_p12), 1040384  }
 0x3a0   : > { %v1380_v56 = vadd.f32 %v1379_v43, %v1365_v49  ;;  %v1435_v62 = vmax.f32 %v1413_v34, %v1434_v30  ;;  %4483 = vmatpush1.bf16.msra.mxu0 %v4482_v53  ;;  %4503 = vmatpush3.bf16.msra.mxu1 %v4500_v35  ;;  %v4492_v35 = vpack.c.bf16 %v1688_v32, %v1686_v31  ;;  %v1685_v49 = vld [vmem:[#allocation19 + $0xe0] sm:$0xff] }
 0x3a1   : > { %v1575_v63 = vrot.slane %v1559_v59, %v6825_v47  ;;  %v1567_v21 = vcombine.high %v1559_v59, %v1559_v59  ;;  %4485 = vmatprep.subr.bf16.mxu0 %v4484_v33  ;;  %4505 = vmatprep.subr.bf16.mxu1 %v4504_v57  ;;  %v1566_v41 = vrot.slane %v1552_v26, %v6825_v47 }
 0x3a2   : > { %v1381_v27 = vrot.slane %v1380_v56, 4  ;;  %1436 = vst [vmem:[#allocation9] sm:$0x1] %v1435_v62  ;;  %v4494_v33 = vpack.c.bf16 %v1687_v29, %v1685_v49  ;;  %v2064_v29 = vld [vmem:[#allocation28 + $0xd0] sm:$0xff] }
 0x3a3   : > { %v1604_v40 = vrot.slane %v1575_v63, %v6828_v51  ;;  %v1597_v38 = vcombine.high %v1575_v63, %v1575_v63  ;;  %v1589_v39 = vrot.slane %v1567_v21, %v6825_v47  ;;  %v1582_v30 = vrot.slane %v1566_v41, %v6825_v47 }
 0x3a4   : > { %v1382_v44 = vadd.f32 %v1381_v27, %v1380_v56  ;;  %4487 = vmatpush1.bf16.msra.mxu0 %v4486_v61  ;;  %4507 = vmatpush3.bf16.msra.mxu1 %v4504_v57  ;;  %v1568_v61 = vcombine.high %v1566_v41, %v1566_v41  ;;  %v1349_v56 = vld [vmem:[#allocation7] sm:$0x1] }
 0x3a5   : > { %v1641_v46 = vmul.f32 %v1604_v40, %v6637_v3  ;;  %v1608_v48 = vrot.slane %v1589_v39, %v6828_v51  ;;  %4489 = vmatprep.subr.bf16.mxu0 %v4488_v23  ;;  %v1642_v50 = vmul.f32 %v1604_v40, %v6640_v4  ;;  %v1599_v54 = vcombine.high %v1589_v39, %v1589_v39 }
 0x3a6   : > { %v1383_v52 = vrot.slane %v1382_v44, 2  ;;  %v1612_v55 = vrot.slane %v1597_v38, %v6828_v51  ;;  %4509 = vmatprep.subr.bf16.mxu1 %v4508_v42  ;;  %v1620_v22 = vrot.slane %v1582_v30, %v6828_v51  ;;  %v1596_v37 = vrot.slane %v1568_v61, %v6825_v47 }
 0x3a7   : > { %1959 = vperm.xlu0 %5042, %v1641_v46   ;;  %v1643_v53 = vmul.f32 %v1608_v48, %v6637_v3  ;;  %v1644_v43 = vmul.f32 %v1608_v48, %v6640_v4  ;;  %v1616_v59 = vrot.slane %v1599_v54, %v6828_v51  ;;  %v1598_v26 = vcombine.high %v1582_v30, %v1582_v30  ;;  %v2062_v48 = vld [vmem:[#allocation28 + $0xc0] sm:$0xff] }
 0x3a8   : > { %v1384_v34 = vadd.f32 %v1383_v52, %v1382_v44  ;;  %4491 = vmatpush1.bf16.msra.mxu0 %v4490_v45  ;;  %v1645_v36 = vmul.f32 %v1612_v55, %v6637_v3  ;;  %4511 = vmatpush3.bf16.msra.mxu1 %v4508_v42  ;;  %v1646_v62 = vmul.f32 %v1612_v55, %v6640_v4  ;;  %v2066_v52 = vld [vmem:[#allocation28 + $0xe0] sm:$0xff]  ;;  %v2068_v55 = vld [vmem:[#allocation28 + $0xf0] sm:$0xff] }
 0x3a9   : > { %1969 = vperm.xlu1 %5043, %v1643_v53   ;;  %4493 = vmatprep.subr.bf16.mxu0 %v4492_v35  ;;  %v1647_v21 = vmul.f32 %v1616_v59, %v6637_v3  ;;  %v1648_v23 = vmul.f32 %v1616_v59, %v6640_v4  ;;  %v1649_v24 = vmul.f32 %v1620_v22, %v6637_v3  ;;  %v2063_v35 = vld [vmem:[#allocation28 + $0xc8] sm:$0xff]  ;;  %v7691_v59 = vsub.s32 1, %v6822_v28 }
 0x3aa   : > { %v1385_v58 = vrot.slane %v1384_v34, 1  ;;  %v1624_v25 = vrot.slane %v1596_v37, %v6828_v51  ;;  %v1650_v27 = vmul.f32 %v1620_v22, %v6640_v4  ;;  %v1628_v32 = vrot.slane %v1598_v26, %v6828_v51  ;;  %v2067_v53 = vld [vmem:[#allocation28 + $0xe8] sm:$0xff] }
 0x3ab   : > { %1964 = vperm.xlu0 %5042, %v1642_v50   ;;  %v1600_v40 = vcombine.high %v1596_v37, %v1596_v37  ;;  %v4512_v49 = vpack.c.bf16 %v2063_v35, %v2062_v48  ;;  %v2065_v50 = vld [vmem:[#allocation28 + $0xd8] sm:$0xff]  ;;  %v4520_v54 = vpack.c.bf16 %v2067_v53, %v2066_v52 }
 0x3ac   : > { %v1386_v57 = vadd.f32 %v1385_v58, %v1384_v34  ;;  %4495 = vmatpush1.bf16.msra.mxu0 %v4494_v33  ;;  %v1651_v31 = vmul.f32 %v1624_v25, %v6637_v3  ;;  %v1652_v38 = vmul.f32 %v1624_v25, %v6640_v4  ;;  %v1653_v39 = vmul.f32 %v1628_v32, %v6637_v3  ;;  %v1441_v33 = vld [vmem:[%s1440_s27] sm:$0xff]  ;;  %v6911_v25 = vld [vmem:[#allocation3 + $0x8] sm:$0xff] }
 0x3ad   : > { %1974 = vperm.xlu1 %5043, %v1644_v43   ;;  %v1632_v42 = vrot.slane %v1600_v40, %v6828_v51  ;;  %v1654_v44 = vmul.f32 %v1628_v32, %v6640_v4  ;;  %4513 = vmatprep.subr.bf16.mxu1 %v4512_v49  ;;  %v4516_v41 = vpack.c.bf16 %v2065_v50, %v2064_v29  ;;  %v6893_v43 = vmul.f32 0.17677669, %v1441_v33  ;;  %v6922_v50 = vld [vmem:[#allocation2] ss:$0 sm:$0xff] }
 0x3ae   : > { %v1387_v63 = vadd.f32 %v1386_v57, %v1349_v56  ;;  %4515 = vmatpush3.bf16.msra.mxu1 %v4512_v49 }
 0x3af   : > { %1979 = vperm.xlu0 %5042, %v1645_v36   ;;  %1766 = vmatmul.mubr.f32.vlgmr.msra.gmra.mrb[0].mxu0 %v6643_v5  ;;  %v1655_v45 = vmul.f32 %v1632_v42, %v6637_v3  ;;  %v1656_v46 = vmul.f32 %v1632_v42, %v6640_v4  ;;  %v1453_v30 = vrot.slane %v6893_v43, %v6825_v47  ;;  %v1689_v36 = vld [vmem:[#allocation21] sm:$0x3] }
 0x3b0   : > { %1388 = vst [vmem:[#allocation7] sm:$0x1] %v1387_v63  ;;  %1771 = vmatprep.mubr.f32.mxu0 %v5831_v60  ;;  %4517 = vmatprep.subr.bf16.mxu1 %v4516_v41  ;;  %v6901_v56 = vrot.slane %v1689_v36, %v6828_v51  ;;  %v6907_v63 = vld [vmem:[#allocation3] sm:$0xff] }
 0x3b1   : > { %1984 = vperm.xlu1 %5043, %v1646_v62   ;;  %v1469_v58 = vrot.slane %v1453_v30, %v6825_v47  ;;  %v1461_v57 = vcombine.high %v1453_v30, %v1453_v30  ;;  %v6905_v62 = vrot.slane %v1689_v36, %v7691_v59 }
 0x3b2   : > { %4519 = vmatpush3.bf16.msra.mxu1 %v4516_v41 }
 0x3b3   : > { %1989 = vperm.xlu0 %5042, %v1647_v21   ;;  %1772 = vmatmul.mubr.f32.gmra.mrb[2].mxu0 %v6646_v6  ;;  %v1498_v61 = vrot.slane %v1469_v58, %v6828_v51  ;;  %v1911_v21 = vld [vmem:[#allocation2 + $0x1] sm:$0x1]  ;;  %v1491_v41 = vcombine.high %v1469_v58, %v1469_v58 }
 0x3b4   : > { %1777 = vmatprep.mubr.f32.mxu0 %v5831_v60  ;;  %4521 = vmatprep.subr.bf16.mxu1 %v4520_v54  ;;  %v1912_v26 = vadd.f32 1.0, %v1911_v21 }
 0x3b5   : > { %1994 = vperm.xlu1 %5043, %v1648_v23   ;;  %v1535_v37 = vmul.f32 %v1498_v61, %v6907_v63  ;;  %v1536_v40 = vmul.f32 %v1498_v61, %v6911_v25  ;;  %v1506_v58 = vrot.slane %v1491_v41, %v6828_v51 }
 0x3b6   : > { %4523 = vmatpush3.bf16.msra.mxu1 %v4520_v54 }
 0x3b7   : > { %1999 = vperm.xlu0 %5042, %v1649_v24   ;;  %1778 = vmatmul.mubr.f32.gmra.mrb[4].mxu0 %v6649_v7 }
 0x3b8   : > { %1783 = vmatprep.mubr.f32.mxu0 %v5831_v60 }
 0x3b9   : > { %2004 = vperm.xlu1 %5043, %v1650_v27   ;;  %v1483_v27 = vrot.slane %v1461_v57, %v6825_v47 }
 0x3bb   : > { %2009 = vperm.xlu0 %5042, %v1651_v31   ;;  %1784 = vmatmul.mubr.f32.gmra.mrb[6].mxu0 %v6652_v8 }
 0x3bc   : > { %1789 = vmatprep.mubr.f32.mxu0 %v5831_v60 }
 0x3bd   : > { %2014 = vperm.xlu1 %5043, %v1652_v38  }
 0x3bf   : > { %2019 = vperm.xlu0 %5042, %v1653_v39   ;;  %1790 = vmatmul.mubr.f32.gmra.mrb[8].mxu0 %v6655_v9 }
 0x3c0   : > { %1795 = vmatprep.mubr.f32.mxu0 %v5831_v60 }
 0x3c1   : > { %2024 = vperm.xlu1 %5043, %v1654_v44  }
 0x3c3   : > { %2029 = vperm.xlu0 %5042, %v1655_v45   ;;  %1796 = vmatmul.mubr.f32.gmra.mrb[10].mxu0 %v6658_v10  ;;  %v6918_v45 = vrot.slane %v1912_v26, %v6828_v51 }
 0x3c4   : > { %1801 = vmatprep.mubr.f32.mxu0 %v5831_v60 }
 0x3c5   : > { %2034 = vperm.xlu1 %5043, %v1656_v46   ;;  %v1502_v46 = vrot.slane %v1483_v27, %v6828_v51 }
 0x3c7   : > { %1802 = vmatmul.mubr.f32.gmra.mrb[12].mxu0 %v6661_v11  ;;  %v1537_v53 = vmul.f32 %v1502_v46, %v6907_v63  ;;  %v1538_v57 = vmul.f32 %v1502_v46, %v6911_v25  ;;  %v1493_v46 = vcombine.high %v1483_v27, %v1483_v27  ;;  %v1540_v27 = vmul.f32 %v1506_v58, %v6911_v25 }
 0x3c8   : > { %1807 = vmatprep.mubr.f32.mxu0 %v5831_v60 }
 0x3cb   : > { %1808 = vmatmul.mubr.f32.gmra.mrb[14].mxu0 %v6664_v12 }
 0x3cc   : > { %1813 = vmatprep.mubr.f32.mxu0 %v5831_v60 }
 0x3cf   : > { %1814 = vmatmul.mubr.f32.gmra.mrb[16].mxu0 %v6667_v13 }
 0x3d0   : > { %1819 = vmatprep.mubr.f32.mxu0 %v5831_v60 }
 0x3d3   : > { %1820 = vmatmul.mubr.f32.gmra.mrb[18].mxu0 %v6670_v14 }
 0x3d4   : > { %1825 = vmatprep.mubr.f32.mxu0 %v5831_v60 }
 0x3d7   : > { %1826 = vmatmul.mubr.f32.gmra.mrb[20].mxu0 %v6673_v15 }
 0x3d8   : > { %1831 = vmatprep.mubr.f32.mxu0 %v5831_v60 }
 0x3db   : > { %1832 = vmatmul.mubr.f32.gmra.mrb[22].mxu0 %v6676_v16 }
 0x3dc   : > { %1837 = vmatprep.mubr.f32.mxu0 %v5831_v60 }
 0x3df   : > { %1838 = vmatmul.mubr.f32.gmra.mrb[24].mxu0 %v6679_v17 }
 0x3e0   : > { %1843 = vmatprep.mubr.f32.mxu0 %v5831_v60 }
 0x3e3   : > { %1844 = vmatmul.mubr.f32.gmra.mrb[26].mxu0 %v6682_v18 }
 0x3e4   : > { %1849 = vmatprep.mubr.f32.mxu0 %v5831_v60 }
 0x3e7   : > { %1850 = vmatmul.mubr.f32.gmra.mrb[28].mxu0 %v6685_v19 }
 0x3e8   : > { %1855 = vmatprep.mubr.f32.mxu0 %v5831_v60  ;;  %v2069_v60 = vld [vmem:[#allocation28 + $0xf8] sm:$0xff] }
 0x3e9   : > { %v4524_v34 = vpack.c.bf16 %v2069_v60, %v2068_v55 }
 0x3eb   : > { %1856 = vmatmul.mubr.f32.gmra.mrb[30].mxu0 %v6688_v20  ;;  %4525 = vmatprep.subr.bf16.mxu1 %v4524_v34 }
 0x3ec   : > { %4527 = vmatpush3.bf16.msra.mxu1 %v4524_v34 }
 0x426   : > { %v6927_v34 = vpop.permute.xlu0 %1959 }
 0x482   : > { %v1767_v22 = vpop.f32.mrb[0].mxu0 }
 0x483   : > { %v1768_v23 = vadd.f32 %v1767_v22, %v6901_v56  ;;  %v1769_v24 = vpop.f32.mrb[1].mxu0 }
 0x484   : > { %v1770_v31 = vadd.f32 %v1769_v24, %v6905_v62 }
 0x485   : > { %v1862_v32 = vadd.f32 1.0, %v1768_v23 }
 0x486   : > { %v1773_v38 = vpop.f32.mrb[2].mxu0 }
 0x487   : > { %v1878_v39 = vmul.f32 %v1862_v32, %v1535_v37  ;;  %v1774_v42 = vadd.f32 %v1773_v38, %v6901_v56  ;;  %v1775_v44 = vpop.f32.mrb[3].mxu0 }
 0x488   : > { %v1776_v48 = vadd.f32 %v1775_v44, %v6905_v62 }
 0x489   : > { %v1894_v35 = vadd.f32 %v1878_v39, %v1770_v31  ;;  %v1863_v49 = vadd.f32 1.0, %v1774_v42  ;;  %v6938_v39 = vpop.permute.xlu0 %1964  ;;  %v1539_v42 = vmul.f32 %v1506_v58, %v6907_v63 }
 0x48a   : > { %v1779_v29 = vpop.f32.mrb[4].mxu0 }
 0x48b   : > { %v1879_v52 = vmul.f32 %v1863_v49, %v1536_v40  ;;  %v1780_v54 = vadd.f32 %v1779_v29, %v6901_v56  ;;  %v1781_v55 = vpop.f32.mrb[5].mxu0  ;;  %v1919_v60 = vmul.f32 %v6918_v45, %v1894_v35 }
 0x48c   : > { %v1782_v33 = vadd.f32 %v1781_v55, %v6905_v62 }
 0x48d   : > { %v1895_v30 = vadd.f32 %v1879_v52, %v1776_v48  ;;  %v1864_v36 = vadd.f32 1.0, %v1780_v54  ;;  %v1941_v61 = vadd.f32 %v6922_v50, %v1919_v60  ;;  %v1446_v48 = vcombine.high %v6893_v43, %v6893_v43 }
 0x48e   : > { %v1785_v21 = vpop.f32.mrb[6].mxu0 }
 0x48f   : > { %v1920_v22 = vmul.f32 %v6918_v45, %v1895_v30  ;;  %v1880_v37 = vmul.f32 %v1864_v36, %v1537_v53  ;;  %v1786_v23 = vadd.f32 %v1785_v21, %v6901_v56  ;;  %v1787_v24 = vpop.f32.mrb[7].mxu0  ;;  %v2037_v26 = vmul.f32 %v6927_v34, %v1941_v61  ;;  %v6946_v53 = vpop.permute.xlu1 %1969 }
 0x490   : > { %v1788_v31 = vadd.f32 %v1787_v24, %v6905_v62  ;;  %v1510_v30 = vrot.slane %v1493_v46, %v6828_v51  ;;  %v1460_v36 = vrot.slane %v1446_v48, %v6825_v47 }
 0x491   : > { %v1896_v32 = vadd.f32 %v1880_v37, %v1782_v33  ;;  %v1865_v40 = vadd.f32 1.0, %v1786_v23  ;;  %v1942_v38 = vadd.f32 %v6922_v50, %v1920_v22  ;;  %4271 = vmatprep.mubr.f32.mxu1 %v2037_v26 }
 0x492   : > { %v1791_v44 = vpop.f32.mrb[8].mxu0 }
 0x493   : > { %v1921_v35 = vmul.f32 %v6918_v45, %v1896_v32  ;;  %v1881_v49 = vmul.f32 %v1865_v40, %v1538_v57  ;;  %v2038_v29 = vmul.f32 %v6938_v39, %v1942_v38  ;;  %v1792_v41 = vadd.f32 %v1791_v44, %v6901_v56  ;;  %v1793_v52 = vpop.f32.mrb[9].mxu0  ;;  %v6958_v58 = vpop.permute.xlu1 %1974 }
 0x494   : > { %v1794_v54 = vadd.f32 %v1793_v52, %v6905_v62  ;;  %v1541_v32 = vmul.f32 %v1510_v30, %v6907_v63  ;;  %v6962_v38 = vrot.slane %v1460_v36, %v6825_v47 }
 0x495   : > { %v1897_v55 = vadd.f32 %v1881_v49, %v1788_v31  ;;  %v1943_v60 = vadd.f32 %v6922_v50, %v1921_v35  ;;  %v1866_v33 = vadd.f32 1.0, %v1792_v41  ;;  %4272 = vmatmul.mubr.f32.vlgmr.msra.gmra.mrb[0].mxu1 %v2038_v29 }
 0x496   : > { %v1797_v43 = vpop.f32.mrb[10].mxu0 }
 0x497   : > { %v1922_v61 = vmul.f32 %v6918_v45, %v1897_v55  ;;  %v2039_v57 = vmul.f32 %v6946_v53, %v1943_v60  ;;  %v1882_v21 = vmul.f32 %v1866_v33, %v1539_v42  ;;  %v1798_v22 = vadd.f32 %v1797_v43, %v6901_v56  ;;  %v1799_v37 = vpop.f32.mrb[11].mxu0 }
 0x498   : > { %v1800_v23 = vadd.f32 %v1799_v37, %v6905_v62  ;;  %v1542_v55 = vmul.f32 %v1510_v30, %v6911_v25  ;;  %v1514_v33 = vrot.slane %v6962_v38, %v6828_v51  ;;  %v1462_v43 = vcombine.high %v1460_v36, %v1460_v36  ;;  %v6979_v30 = vpop.permute.xlu1 %1984 }
 0x499   : > { %v1898_v24 = vadd.f32 %v1882_v21, %v1794_v54  ;;  %v1944_v26 = vadd.f32 %v6922_v50, %v1922_v61  ;;  %v1867_v31 = vadd.f32 1.0, %v1798_v22  ;;  %4274 = vmatprep.mubr.f32.mxu1 %v2039_v57  ;;  %v6969_v54 = vpop.permute.xlu0 %1979 }
 0x49a   : > { %v1803_v40 = vpop.f32.mrb[12].mxu0 }
 0x49b   : > { %v1923_v42 = vmul.f32 %v6918_v45, %v1898_v24  ;;  %v2040_v44 = vmul.f32 %v6958_v58, %v1944_v26  ;;  %v1883_v46 = vmul.f32 %v1867_v31, %v1540_v27  ;;  %v1804_v48 = vadd.f32 %v1803_v40, %v6901_v56  ;;  %v1805_v35 = vpop.f32.mrb[13].mxu0 }
 0x49c   : > { %v1806_v49 = vadd.f32 %v1805_v35, %v6905_v62  ;;  %v1543_v31 = vmul.f32 %v1514_v33, %v6907_v63  ;;  %v6983_v40 = vrot.slane %v1462_v43, %v6825_v47  ;;  %v1544_v47 = vmul.f32 %v1514_v33, %v6911_v25  ;;  %v7000_v33 = vpop.permute.xlu1 %1994 }
 0x49d   : > { %v1899_v29 = vadd.f32 %v1883_v46, %v1800_v23  ;;  %v1868_v41 = vadd.f32 1.0, %v1804_v48  ;;  %4275 = vmatmul.mubr.f32.gmra.mrb[2].mxu1 %v2040_v44  ;;  %v1945_v52 = vadd.f32 %v6922_v50, %v1923_v42 }
 0x49e   : > { %v1809_v60 = vpop.f32.mrb[14].mxu0  ;;  %v1518_v43 = vrot.slane %v6983_v40, %v6828_v51 }
 0x49f   : > { %v1924_v27 = vmul.f32 %v6918_v45, %v1899_v29  ;;  %v1884_v61 = vmul.f32 %v1868_v41, %v1541_v32  ;;  %v1810_v57 = vadd.f32 %v1809_v60, %v6901_v56  ;;  %v1811_v21 = vpop.f32.mrb[15].mxu0  ;;  %v2041_v22 = vmul.f32 %v6969_v54, %v1945_v52  ;;  %v6990_v52 = vpop.permute.xlu0 %1989 }
 0x4a0   : > { %v1812_v37 = vadd.f32 %v1811_v21, %v6905_v62 }
 0x4a1   : > { %v1946_v23 = vadd.f32 %v6922_v50, %v1924_v27  ;;  %v1900_v24 = vadd.f32 %v1884_v61, %v1806_v49  ;;  %v1869_v26 = vadd.f32 1.0, %v1810_v57  ;;  %4277 = vmatprep.mubr.f32.mxu1 %v2041_v22 }
 0x4a2   : > { %v1815_v36 = vpop.f32.mrb[16].mxu0 }
 0x4a3   : > { %v2042_v32 = vmul.f32 %v6979_v30, %v1946_v23  ;;  %v1925_v42 = vmul.f32 %v6918_v45, %v1900_v24  ;;  %v1885_v44 = vmul.f32 %v1869_v26, %v1542_v55  ;;  %v1816_v46 = vadd.f32 %v1815_v36, %v6901_v56  ;;  %v1817_v48 = vpop.f32.mrb[17].mxu0 }
 0x4a4   : > { %v1818_v35 = vadd.f32 %v1817_v48, %v6905_v62  ;;  %v1545_v26 = vmul.f32 %v1518_v43, %v6907_v63 }
 0x4a5   : > { %v1901_v49 = vadd.f32 %v1885_v44, %v1812_v37  ;;  %v1870_v29 = vadd.f32 1.0, %v1816_v46  ;;  %4278 = vmatmul.mubr.f32.gmra.mrb[4].mxu1 %v2042_v32  ;;  %v1947_v41 = vadd.f32 %v6922_v50, %v1925_v42 }
 0x4a6   : > { %v1821_v60 = vpop.f32.mrb[18].mxu0 }
 0x4a7   : > { %v1926_v55 = vmul.f32 %v6918_v45, %v1901_v49  ;;  %v1886_v27 = vmul.f32 %v1870_v29, %v1543_v31  ;;  %v1822_v61 = vadd.f32 %v1821_v60, %v6901_v56  ;;  %v1823_v57 = vpop.f32.mrb[19].mxu0  ;;  %v2043_v21 = vmul.f32 %v6990_v52, %v1947_v41  ;;  %v7010_v60 = vpop.permute.xlu0 %1999 }
 0x4a8   : > { %v1824_v22 = vadd.f32 %v1823_v57, %v6905_v62  ;;  %v1492_v31 = vcombine.high %v6962_v38, %v6962_v38 }
 0x4a9   : > { %v1902_v37 = vadd.f32 %v1886_v27, %v1818_v35  ;;  %v1871_v23 = vadd.f32 1.0, %v1822_v61  ;;  %4280 = vmatprep.mubr.f32.mxu1 %v2043_v21  ;;  %v1948_v24 = vadd.f32 %v6922_v50, %v1926_v55  ;;  %v1546_v55 = vmul.f32 %v1518_v43, %v6911_v25 }
 0x4aa   : > { %v1827_v36 = vpop.f32.mrb[20].mxu0  ;;  %v1522_v27 = vrot.slane %v1492_v31, %v6828_v51 }
 0x4ab   : > { %v1927_v32 = vmul.f32 %v6918_v45, %v1902_v37  ;;  %v1887_v42 = vmul.f32 %v1871_v23, %v1544_v47  ;;  %v1828_v44 = vadd.f32 %v1827_v36, %v6901_v56  ;;  %v1829_v46 = vpop.f32.mrb[21].mxu0  ;;  %v2044_v48 = vmul.f32 %v7000_v33, %v1948_v24 }
 0x4ac   : > { %v1830_v35 = vadd.f32 %v1829_v46, %v6905_v62  ;;  %v1547_v43 = vmul.f32 %v1522_v27, %v6907_v63 }
 0x4ad   : > { %v1903_v49 = vadd.f32 %v1887_v42, %v1824_v22  ;;  %v1872_v29 = vadd.f32 1.0, %v1828_v44  ;;  %4281 = vmatmul.mubr.f32.gmra.mrb[6].mxu1 %v2044_v48  ;;  %v1949_v41 = vadd.f32 %v6922_v50, %v1927_v32  ;;  %v7019_v32 = vpop.permute.xlu1 %2004 }
 0x4ae   : > { %v1833_v38 = vpop.f32.mrb[22].mxu0 }
 0x4af   : > { %v1928_v47 = vmul.f32 %v6918_v45, %v1903_v49  ;;  %v1888_v61 = vmul.f32 %v1872_v29, %v1545_v26  ;;  %v1834_v57 = vadd.f32 %v1833_v38, %v6901_v56  ;;  %v1835_v21 = vpop.f32.mrb[23].mxu0  ;;  %v2045_v37 = vmul.f32 %v7010_v60, %v1949_v41 }
 0x4b0   : > { %v1836_v22 = vadd.f32 %v1835_v21, %v6905_v62  ;;  %v1494_v26 = vcombine.high %v6983_v40, %v6983_v40 }
 0x4b1   : > { %v1904_v23 = vadd.f32 %v1888_v61, %v1830_v35  ;;  %v1873_v24 = vadd.f32 1.0, %v1834_v57  ;;  %4283 = vmatprep.mubr.f32.mxu1 %v2045_v37  ;;  %v1950_v36 = vadd.f32 %v6922_v50, %v1928_v47  ;;  %v7029_v47 = vpop.permute.xlu0 %2009  ;;  %v1548_v61 = vmul.f32 %v1522_v27, %v6911_v25 }
 0x4b2   : > { %v1839_v31 = vpop.f32.mrb[24].mxu0  ;;  %v1526_v57 = vrot.slane %v1494_v26, %v6828_v51 }
 0x4b3   : > { %v1929_v42 = vmul.f32 %v6918_v45, %v1904_v23  ;;  %v1889_v44 = vmul.f32 %v1873_v24, %v1546_v55  ;;  %v1840_v46 = vadd.f32 %v1839_v31, %v6901_v56  ;;  %v1841_v48 = vpop.f32.mrb[25].mxu0  ;;  %v2046_v35 = vmul.f32 %v7019_v32, %v1950_v36 }
 0x4b4   : > { %v1842_v49 = vadd.f32 %v1841_v48, %v6905_v62  ;;  %v1549_v27 = vmul.f32 %v1526_v57, %v6907_v63  ;;  %v1550_v63 = vmul.f32 %v1526_v57, %v6911_v25 }
 0x4b5   : > { %v1905_v29 = vadd.f32 %v1889_v44, %v1836_v22  ;;  %v1874_v41 = vadd.f32 1.0, %v1840_v46  ;;  %4284 = vmatmul.mubr.f32.gmra.mrb[8].mxu1 %v2046_v35  ;;  %v1951_v38 = vadd.f32 %v6922_v50, %v1929_v42  ;;  %v7038_v44 = vpop.permute.xlu1 %2014 }
 0x4b6   : > { %v1845_v40 = vpop.f32.mrb[26].mxu0 }
 0x4b7   : > { %v1930_v55 = vmul.f32 %v6918_v45, %v1905_v29  ;;  %v1890_v21 = vmul.f32 %v1874_v41, %v1547_v43  ;;  %v1846_v37 = vadd.f32 %v1845_v40, %v6901_v56  ;;  %v1847_v23 = vpop.f32.mrb[27].mxu0  ;;  %v2047_v24 = vmul.f32 %v7029_v47, %v1951_v38 }
 0x4b8   : > { %v1848_v22 = vadd.f32 %v1847_v23, %v6905_v62 }
 0x4b9   : > { %v1906_v36 = vadd.f32 %v1890_v21, %v1842_v49  ;;  %v1875_v31 = vadd.f32 1.0, %v1846_v37  ;;  %4286 = vmatprep.mubr.f32.mxu1 %v2047_v24  ;;  %v1952_v42 = vadd.f32 %v6922_v50, %v1930_v55  ;;  %v7046_v55 = vpop.permute.xlu0 %2019 }
 0x4ba   : > { %v1851_v26 = vpop.f32.mrb[28].mxu0 }
 0x4bb   : > { %v1931_v46 = vmul.f32 %v6918_v45, %v1906_v36  ;;  %v1891_v43 = vmul.f32 %v1875_v31, %v1548_v61  ;;  %v1852_v48 = vadd.f32 %v1851_v26, %v6901_v56  ;;  %v1853_v35 = vpop.f32.mrb[29].mxu0  ;;  %v2048_v29 = vmul.f32 %v7038_v44, %v1952_v42 }
 0x4bc   : > { %v1854_v41 = vadd.f32 %v1853_v35, %v6905_v62 }
 0x4bd   : > { %v1907_v49 = vadd.f32 %v1891_v43, %v1848_v22  ;;  %v1876_v38 = vadd.f32 1.0, %v1852_v48  ;;  %4287 = vmatmul.mubr.f32.gmra.mrb[10].mxu1 %v2048_v29  ;;  %v1953_v40 = vadd.f32 %v6922_v50, %v1931_v46  ;;  %v7054_v46 = vpop.permute.xlu1 %2024  ;;  %v7059_v48 = vpop.permute.xlu0 %2029 }
 0x4be   : > { %v1857_v21 = vpop.f32.mrb[30].mxu0 }
 0x4bf   : > { %v1932_v37 = vmul.f32 %v6918_v45, %v1907_v49  ;;  %v1892_v61 = vmul.f32 %v1876_v38, %v1549_v27  ;;  %v1858_v23 = vadd.f32 %v1857_v21, %v6901_v56  ;;  %v1859_v24 = vpop.f32.mrb[31].mxu0  ;;  %v2049_v36 = vmul.f32 %v7046_v55, %v1953_v40  ;;  %v3993_v38 = vld [vmem:[#allocation30 + $0x1] ss:$0 sm:$0xff] }
 0x4c0   : > { %v1860_v31 = vadd.f32 %v1859_v24, %v6905_v62 }
 0x4c1   : > { %v1908_v22 = vadd.f32 %v1892_v61, %v1854_v41  ;;  %v1877_v42 = vadd.f32 1.0, %v1858_v23  ;;  %4289 = vmatprep.mubr.f32.mxu1 %v2049_v36  ;;  %v1954_v26 = vadd.f32 %v6922_v50, %v1932_v37  ;;  %v7064_v41 = vpop.permute.xlu1 %2034 }
 0x4c3   : > { %v1933_v25 = vmul.f32 %v6918_v45, %v1908_v22  ;;  %v1893_v57 = vmul.f32 %v1877_v42, %v1550_v63  ;;  %v2050_v43 = vmul.f32 %v7054_v46, %v1954_v26 }
 0x4c5   : > { %v1909_v27 = vadd.f32 %v1893_v57, %v1860_v31  ;;  %4290 = vmatmul.mubr.f32.gmra.mrb[12].mxu1 %v2050_v43  ;;  %v1955_v56 = vadd.f32 %v6922_v50, %v1933_v25 }
 0x4c7   : > { %v1934_v62 = vmul.f32 %v6918_v45, %v1909_v27  ;;  %v2051_v35 = vmul.f32 %v7059_v48, %v1955_v56 }
 0x4c9   : > { %4292 = vmatprep.mubr.f32.mxu1 %v2051_v35  ;;  %v1956_v29 = vadd.f32 %v6922_v50, %v1934_v62 }
 0x4cb   : > { %v2052_v49 = vmul.f32 %v7064_v41, %v1956_v29 }
 0x4cd   : > { %4293 = vmatmul.mubr.f32.gmra.mrb[14].mxu1 %v2052_v49 }
 0x568   : > { %v4273_v40 = vpop.f32.mrb[0].mxu1 }
 0x569   : > { %v2147_v63 = vadd.f32 %v4273_v40, %v3993_v38  ;;  %v2141_v21 = vpop.f32.mrb[1].mxu1 }
 0x56a   : > { %v2142_v37 = vadd.f32 %v3993_v38, %v2141_v21 }
 0x56b   : > { %v7068_v61 = vadd.f32 %v2147_v63, %v6646_v6 }
 0x56c   : > { %v7071_v45 = vadd.f32 %v2142_v37, %v6643_v5 }
 0x56d   : > { %2238 = vadd.xlane.f32.xlu1 %v7068_v61 }
 0x56e   : > { %2236 = vadd.xlane.f32.xlu0 %v7071_v45 }
 0x570   : > { %v4276_v50 = vpop.f32.mrb[2].mxu1 }
 0x571   : > { %v2157_v23 = vadd.f32 %v4276_v50, %v3993_v38  ;;  %v2151_v24 = vpop.f32.mrb[3].mxu1 }
 0x572   : > { %v2152_v31 = vadd.f32 %v3993_v38, %v2151_v24 }
 0x573   : > { %v7076_v36 = vadd.f32 %v2157_v23, %v6652_v8 }
 0x574   : > { %v7080_v22 = vadd.f32 %v2152_v31, %v6649_v7 }
 0x575   : > { %2242 = vadd.xlane.f32.xlu0 %v7076_v36 }
 0x578   : > { %v4279_v6 = vpop.f32.mrb[4].mxu1 }
 0x579   : > { %v2167_v42 = vadd.f32 %v4279_v6, %v3993_v38  ;;  %v2161_v5 = vpop.f32.mrb[5].mxu1  ;;  %2240 = vadd.xlane.f32.xlu0 %v7080_v22 }
 0x57a   : > { %v2162_v26 = vadd.f32 %v3993_v38, %v2161_v5 }
 0x57b   : > { %v7084_v25 = vadd.f32 %v2167_v42, %v6658_v10 }
 0x57c   : > { %v7087_v57 = vadd.f32 %v2162_v26, %v6655_v9 }
 0x57d   : > { %2246 = vadd.xlane.f32.xlu0 %v7084_v25 }
 0x57e   : > { %2244 = vadd.xlane.f32.xlu1 %v7087_v57 }
 0x580   : > { %v4282_v8 = vpop.f32.mrb[6].mxu1 }
 0x581   : > { %v2177_v43 = vadd.f32 %v4282_v8, %v3993_v38  ;;  %v2171_v7 = vpop.f32.mrb[7].mxu1 }
 0x582   : > { %v2172_v27 = vadd.f32 %v3993_v38, %v2171_v7 }
 0x583   : > { %v7092_v56 = vadd.f32 %v2177_v43, %v6664_v12 }
 0x584   : > { %v7095_v62 = vadd.f32 %v2172_v27, %v6661_v11 }
 0x585   : > { %2250 = vadd.xlane.f32.xlu0 %v7092_v56 }
 0x586   : > { %2248 = vadd.xlane.f32.xlu1 %v7095_v62 }
 0x588   : > { %v4285_v9 = vpop.f32.mrb[8].mxu1 }
 0x589   : > { %v2187_v10 = vadd.f32 %v4285_v9, %v3993_v38  ;;  %v2181_v35 = vpop.f32.mrb[9].mxu1 }
 0x58a   : > { %v2182_v29 = vadd.f32 %v3993_v38, %v2181_v35 }
 0x58b   : > { %v7100_v49 = vadd.f32 %v2187_v10, %v6670_v14 }
 0x58c   : > { %v7103_v40 = vadd.f32 %v2182_v29, %v6667_v13 }
 0x58d   : > { %2254 = vadd.xlane.f32.xlu0 %v7100_v49 }
 0x58e   : > { %2252 = vadd.xlane.f32.xlu1 %v7103_v40 }
 0x590   : > { %v4288_v11 = vpop.f32.mrb[10].mxu1 }
 0x591   : > { %v2197_v12 = vadd.f32 %v4288_v11, %v3993_v38  ;;  %v2191_v63 = vpop.f32.mrb[11].mxu1 }
 0x592   : > { %v2192_v21 = vadd.f32 %v3993_v38, %v2191_v63 }
 0x593   : > { %v7108_v37 = vadd.f32 %v2197_v12, %v6676_v16 }
 0x594   : > { %v7111_v50 = vadd.f32 %v2192_v21, %v6673_v15 }
 0x595   : > { %2258 = vadd.xlane.f32.xlu0 %v7108_v37 }
 0x596   : > { %2256 = vadd.xlane.f32.xlu1 %v7111_v50 }
 0x598   : > { %v4291_v13 = vpop.f32.mrb[12].mxu1 }
 0x599   : > { %v2207_v14 = vadd.f32 %v4291_v13, %v3993_v38  ;;  %v2201_v23 = vpop.f32.mrb[13].mxu1 }
 0x59a   : > { %v2202_v24 = vadd.f32 %v3993_v38, %v2201_v23 }
 0x59b   : > { %v7116_v31 = vadd.f32 %v2207_v14, %v6682_v18 }
 0x59c   : > { %v7119_v6 = vadd.f32 %v2202_v24, %v6679_v17 }
 0x59d   : > { %2262 = vadd.xlane.f32.xlu0 %v7116_v31 }
 0x59e   : > { %2260 = vadd.xlane.f32.xlu1 %v7119_v6 }
 0x5a0   : > { %v4294_v15 = vpop.f32.mrb[14].mxu1 }
 0x5a1   : > { %v2217_v16 = vadd.f32 %v4294_v15, %v3993_v38  ;;  %v2211_v42 = vpop.f32.mrb[15].mxu1 }
 0x5a2   : > { %v2212_v5 = vadd.f32 %v3993_v38, %v2211_v42 }
 0x5a3   : > { %v7124_v26 = vadd.f32 %v2217_v16, %v6688_v20 }
 0x5a4   : > { %v7127_v8 = vadd.f32 %v2212_v5, %v6685_v19 }
 0x5a5   : > { %2266 = vadd.xlane.f32.xlu0 %v7124_v26 }
 0x5a6   : > { %2264 = vadd.xlane.f32.xlu1 %v7127_v8 }
 0x5fa   : > { %v2239_v17 = vpop.xlane.xlu1 %2238 }
 0x5fb   : > { %v7131_v18 = vmul.f32 0.03125, %v2239_v17  ;;  %v2237_v43 = vpop.xlane.xlu0 %2236 }
 0x5fc   : > { %v7133_v7 = vmul.f32 0.03125, %v2237_v43 }
 0x5fd   : > { %v7137_v27 = vsub.f32 %v7068_v61, %v7131_v18 }
 0x5fe   : > { %v7141_v20 = vsub.f32 %v7071_v45, %v7133_v7 }
 0x5ff   : > { %v2301_v19 = vmul.f32 %v7137_v27, %v7137_v27 }
 0x600   : > { %v2300_v38 = vmul.f32 %v7141_v20, %v7141_v20 }
 0x601   : > { %2318 = vadd.xlane.f32.xlu0 %v2301_v19 }
 0x602   : > { %2316 = vadd.xlane.f32.xlu1 %v2300_v38  ;;  %v2243_v9 = vpop.xlane.xlu0 %2242 }
 0x603   : > { %v7147_v10 = vmul.f32 0.03125, %v2243_v9 }
 0x605   : > { %v7151_v35 = vsub.f32 %v7076_v36, %v7147_v10  ;;  %v2351_v28 = vmul.f32 96.0, %v7147_v10 }
 0x606   : > { %v2241_v61 = vpop.xlane.xlu0 %2240 }
 0x607   : > { %v7153_v29 = vmul.f32 0.03125, %v2241_v61  ;;  %v2303_v45 = vmul.f32 %v7151_v35, %v7151_v35 }
 0x609   : > { %2322 = vadd.xlane.f32.xlu0 %v2303_v45  ;;  %v7159_v11 = vsub.f32 %v7080_v22, %v7153_v29 }
 0x60a   : > { %v2247_v12 = vpop.xlane.xlu0 %2246 }
 0x60b   : > { %v7161_v63 = vmul.f32 0.03125, %v2247_v12  ;;  %v2245_v21 = vpop.xlane.xlu1 %2244  ;;  %v2302_v13 = vmul.f32 %v7159_v11, %v7159_v11 }
 0x60c   : > { %v7165_v36 = vmul.f32 0.03125, %v2245_v21 }
 0x60d   : > { %2320 = vadd.xlane.f32.xlu1 %v2302_v13  ;;  %v7169_v14 = vsub.f32 %v7084_v25, %v7161_v63 }
 0x60e   : > { %v7173_v23 = vsub.f32 %v7087_v57, %v7165_v36 }
 0x60f   : > { %v2305_v22 = vmul.f32 %v7169_v14, %v7169_v14 }
 0x610   : > { %v2304_v24 = vmul.f32 %v7173_v23, %v7173_v23 }
 0x611   : > { %2326 = vadd.xlane.f32.xlu0 %v2305_v22 }
 0x612   : > { %2324 = vadd.xlane.f32.xlu1 %v2304_v24  ;;  %v2251_v15 = vpop.xlane.xlu0 %2250 }
 0x613   : > { %v7179_v16 = vmul.f32 0.03125, %v2251_v15  ;;  %v2249_v42 = vpop.xlane.xlu1 %2248 }
 0x614   : > { %v7181_v5 = vmul.f32 0.03125, %v2249_v42 }
 0x615   : > { %v7185_v25 = vsub.f32 %v7092_v56, %v7179_v16 }
 0x616   : > { %v7189_v57 = vsub.f32 %v7095_v62, %v7181_v5 }
 0x617   : > { %v2307_v17 = vmul.f32 %v7185_v25, %v7185_v25 }
 0x618   : > { %v2306_v43 = vmul.f32 %v7189_v57, %v7189_v57 }
 0x619   : > { %2330 = vadd.xlane.f32.xlu0 %v2307_v17 }
 0x61a   : > { %2328 = vadd.xlane.f32.xlu1 %v2306_v43  ;;  %v2255_v19 = vpop.xlane.xlu0 %2254 }
 0x61b   : > { %v7195_v38 = vmul.f32 0.03125, %v2255_v19  ;;  %v2253_v9 = vpop.xlane.xlu1 %2252 }
 0x61c   : > { %v7197_v61 = vmul.f32 0.03125, %v2253_v9 }
 0x61d   : > { %v7201_v56 = vsub.f32 %v7100_v49, %v7195_v38 }
 0x61e   : > { %v7205_v62 = vsub.f32 %v7103_v40, %v7197_v61 }
 0x61f   : > { %v2309_v45 = vmul.f32 %v7201_v56, %v7201_v56 }
 0x620   : > { %v2308_v12 = vmul.f32 %v7205_v62, %v7205_v62 }
 0x621   : > { %2334 = vadd.xlane.f32.xlu0 %v2309_v45 }
 0x622   : > { %2332 = vadd.xlane.f32.xlu1 %v2308_v12  ;;  %v2259_v21 = vpop.xlane.xlu0 %2258 }
 0x623   : > { %v7211_v13 = vmul.f32 0.03125, %v2259_v21  ;;  %v2257_v22 = vpop.xlane.xlu1 %2256 }
 0x624   : > { %v7213_v24 = vmul.f32 0.03125, %v2257_v22 }
 0x625   : > { %v7217_v49 = vsub.f32 %v7108_v37, %v7211_v13 }
 0x626   : > { %v7221_v40 = vsub.f32 %v7111_v50, %v7213_v24 }
 0x627   : > { %v2311_v15 = vmul.f32 %v7217_v49, %v7217_v49 }
 0x628   : > { %v2310_v42 = vmul.f32 %v7221_v40, %v7221_v40 }
 0x629   : > { %2338 = vadd.xlane.f32.xlu0 %v2311_v15 }
 0x62a   : > { %2336 = vadd.xlane.f32.xlu1 %v2310_v42  ;;  %v2263_v17 = vpop.xlane.xlu0 %2262 }
 0x62b   : > { %v7227_v43 = vmul.f32 0.03125, %v2263_v17  ;;  %v2261_v19 = vpop.xlane.xlu1 %2260 }
 0x62c   : > { %v7229_v9 = vmul.f32 0.03125, %v2261_v19 }
 0x62d   : > { %v7233_v37 = vsub.f32 %v7116_v31, %v7227_v43 }
 0x62e   : > { %v7237_v50 = vsub.f32 %v7119_v6, %v7229_v9 }
 0x62f   : > { %v2313_v45 = vmul.f32 %v7233_v37, %v7233_v37 }
 0x630   : > { %v2312_v12 = vmul.f32 %v7237_v50, %v7237_v50 }
 0x631   : > { %2342 = vadd.xlane.f32.xlu0 %v2313_v45  ;;  %v2349_v45 = vmul.f32 96.0, %v7131_v18 }
 0x632   : > { %2340 = vadd.xlane.f32.xlu1 %v2312_v12  ;;  %v2267_v21 = vpop.xlane.xlu0 %2266  ;;  %v2348_v12 = vmul.f32 96.0, %v7133_v7 }
 0x633   : > { %v7243_v22 = vmul.f32 0.03125, %v2267_v21  ;;  %v2265_v15 = vpop.xlane.xlu1 %2264  ;;  %v2365_v21 = vmul.f32 %v2349_v45, %v7131_v18 }
 0x634   : > { %v7245_v42 = vmul.f32 0.03125, %v2265_v15  ;;  %v2364_v15 = vmul.f32 %v2348_v12, %v7133_v7  ;;  %v2353_v12 = vmul.f32 96.0, %v7161_v63 }
 0x635   : > { %v7249_v31 = vsub.f32 %v7124_v26, %v7243_v22 }
 0x636   : > { %v7253_v6 = vsub.f32 %v7127_v8, %v7245_v42 }
 0x637   : > { %v2315_v17 = vmul.f32 %v7249_v31, %v7249_v31 }
 0x638   : > { %v2314_v19 = vmul.f32 %v7253_v6, %v7253_v6 }
 0x639   : > { %2346 = vadd.xlane.f32.xlu0 %v2315_v17  ;;  %v2367_v17 = vmul.f32 %v2351_v28, %v7147_v10  ;;  %v7271_v10 = vld [vmem:[#allocation34 + $0x1] ss:$0 sm:$0xff] }
 0x63a   : > { %2344 = vadd.xlane.f32.xlu1 %v2314_v19  ;;  %v2350_v19 = vmul.f32 96.0, %v7153_v29 }
 0x63c   : > { %v2366_v7 = vmul.f32 %v2350_v19, %v7153_v29 }
 0x68e   : > { %v2319_v26 = vpop.xlane.xlu0 %2318 }
 0x68f   : > { %v2381_v59 = vsub.f32 %v2319_v26, %v2365_v21  ;;  %v2317_v8 = vpop.xlane.xlu1 %2316 }
 0x690   : > { %v2380_v2 = vsub.f32 %v2317_v8, %v2364_v15 }
 0x691   : > { %v2397_v51 = vmul.f32 0.03125, %v2381_v59  ;;  %v2352_v59 = vmul.f32 96.0, %v7165_v36 }
 0x692   : > { %v2396_v1 = vmul.f32 0.03125, %v2380_v2 }
 0x693   : > { %v2413_v0 = vadd.f32 1e-05, %v2397_v51  ;;  %v2368_v51 = vmul.f32 %v2352_v59, %v7165_v36 }
 0x694   : > { %v2412_v4 = vadd.f32 1e-05, %v2396_v1 }
 0x695   : > { %5045 = vrsqrt.f32 %v2413_v0  ;;  %v2369_v0 = vmul.f32 %v2353_v12, %v7161_v63  ;;  %v2355_v63 = vmul.f32 96.0, %v7179_v16 }
 0x696   : > { %5047 = vrsqrt.f32 %v2412_v4  ;;  %v2323_v3 = vpop.xlane.xlu0 %2322 }
 0x697   : > { %v2383_v18 = vsub.f32 %v2323_v3, %v2367_v17 }
 0x699   : > { %v2399_v45 = vmul.f32 0.03125, %v2383_v18  ;;  %v7274_v18 = vld [vmem:[#allocation36 + $0x1] ss:$0 sm:$0xff] }
 0x69a   : > { %v2321_v21 = vpop.xlane.xlu1 %2320 }
 0x69b   : > { %v2415_v26 = vadd.f32 1e-05, %v2399_v45  ;;  %v2382_v2 = vsub.f32 %v2321_v21, %v2366_v7  ;;  %v2354_v21 = vmul.f32 96.0, %v7181_v5 }
 0x69d   : > { %5049 = vrsqrt.f32 %v2415_v26  ;;  %v2398_v1 = vmul.f32 0.03125, %v2382_v2 }
 0x69e   : > { %v2327_v28 = vpop.xlane.xlu0 %2326 }
 0x69f   : > { %v5046_v4 = vpop.eup %5045  ;;  %v2414_v3 = vadd.f32 1e-05, %v2398_v1  ;;  %v2385_v15 = vsub.f32 %v2327_v28, %v2369_v0  ;;  %v2325_v29 = vpop.xlane.xlu1 %2324 }
 0x6a0   : > { %v5048_v8 = vpop.eup %5047  ;;  %v2445_v17 = vmul.f32 %v5046_v4, %v7137_v27  ;;  %v2384_v19 = vsub.f32 %v2325_v29, %v2368_v51  ;;  %v2370_v51 = vmul.f32 %v2354_v21, %v7181_v5 }
 0x6a1   : > { %v2444_v45 = vmul.f32 %v5048_v8, %v7141_v20  ;;  %5051 = vrsqrt.f32 %v2414_v3  ;;  %v2401_v7 = vmul.f32 0.03125, %v2385_v15  ;;  %v2371_v20 = vmul.f32 %v2355_v63, %v7179_v16 }
 0x6a2   : > { %v2466_v36 = vmul.f32 %v7271_v10, %v2445_v17  ;;  %v2400_v12 = vmul.f32 0.03125, %v2384_v19 }
 0x6a3   : > { %v2465_v59 = vmul.f32 %v7271_v10, %v2444_v45  ;;  %v2417_v26 = vadd.f32 1e-05, %v2401_v7  ;;  %v2357_v45 = vmul.f32 96.0, %v7195_v38  ;;  %v2356_v7 = vmul.f32 96.0, %v7197_v61 }
 0x6a4   : > { %v2487_v27 = vadd.f32 %v7274_v18, %v2466_v36  ;;  %v2416_v2 = vadd.f32 1e-05, %v2400_v12 }
 0x6a5   : > { %v2486_v1 = vadd.f32 %v7274_v18, %v2465_v59  ;;  %5053 = vrsqrt.f32 %v2417_v26 }
 0x6a6   : > { %v2503_v0 = vmul.f32 %v2487_v27, %v6938_v39  ;;  %5055 = vrsqrt.f32 %v2416_v2  ;;  %v2331_v28 = vpop.xlane.xlu0 %2330  ;;  %v2372_v27 = vmul.f32 %v2356_v7, %v7197_v61 }
 0x6a7   : > { %v5050_v4 = vpop.eup %5049  ;;  %v2502_v3 = vmul.f32 %v2486_v1, %v6927_v34  ;;  %v2387_v15 = vsub.f32 %v2331_v28, %v2371_v20  ;;  %v2329_v29 = vpop.xlane.xlu1 %2328 }
 0x6a8   : > { %2519 = vst [vmem:[%s6694_s2 + $0x8] sm:$0xff] %v2503_v0  ;;  %v2447_v8 = vmul.f32 %v5050_v4, %v7151_v35  ;;  %v2386_v17 = vsub.f32 %v2329_v29, %v2370_v51  ;;  %v2373_v35 = vmul.f32 %v2357_v45, %v7195_v38  ;;  %v2359_v4 = vmul.f32 96.0, %v7211_v13 }
 0x6a9   : > { %2518 = vst [vmem:[%s6694_s2] sm:$0xff] %v2502_v3  ;;  %v2403_v19 = vmul.f32 0.03125, %v2387_v15  ;;  %v2358_v29 = vmul.f32 96.0, %v7213_v24 }
 0x6aa   : > { %v2468_v16 = vmul.f32 %v7271_v10, %v2447_v8  ;;  %v2402_v39 = vmul.f32 0.03125, %v2386_v17  ;;  %v2375_v45 = vmul.f32 %v2359_v4, %v7211_v13 }
 0x6ab   : > { %v5052_v63 = vpop.eup %5051  ;;  %v2419_v5 = vadd.f32 1e-05, %v2403_v19 }
 0x6ac   : > { %v2489_v34 = vadd.f32 %v7274_v18, %v2468_v16  ;;  %v2446_v36 = vmul.f32 %v5052_v63, %v7159_v11  ;;  %v2418_v12 = vadd.f32 1e-05, %v2402_v39  ;;  %v2374_v39 = vmul.f32 %v2358_v29, %v7213_v24 }
 0x6ad   : > { %5057 = vrsqrt.f32 %v2419_v5  ;;  %v2360_v24 = vmul.f32 96.0, %v7229_v9 }
 0x6ae   : > { %v2505_v21 = vmul.f32 %v2489_v34, %v6958_v58  ;;  %v2467_v59 = vmul.f32 %v7271_v10, %v2446_v36  ;;  %5059 = vrsqrt.f32 %v2418_v12  ;;  %v2335_v26 = vpop.xlane.xlu0 %2334 }
 0x6af   : > { %v5054_v2 = vpop.eup %5053  ;;  %v2389_v1 = vsub.f32 %v2335_v26, %v2373_v35  ;;  %v2333_v20 = vpop.xlane.xlu1 %2332 }
 0x6b0   : > { %v5056_v0 = vpop.eup %5055  ;;  %2521 = vst [vmem:[%s6694_s2 + $0x18] sm:$0xff] %v2505_v21  ;;  %v2488_v11 = vadd.f32 %v7274_v18, %v2467_v59  ;;  %v2449_v28 = vmul.f32 %v5054_v2, %v7169_v14  ;;  %v2388_v51 = vsub.f32 %v2333_v20, %v2372_v27 }
 0x6b1   : > { %v2448_v38 = vmul.f32 %v5056_v0, %v7173_v23  ;;  %v2405_v58 = vmul.f32 0.03125, %v2389_v1 }
 0x6b2   : > { %v2504_v3 = vmul.f32 %v2488_v11, %v6946_v53  ;;  %v2470_v61 = vmul.f32 %v7271_v10, %v2449_v28  ;;  %v2404_v15 = vmul.f32 0.03125, %v2388_v51  ;;  %v2376_v11 = vmul.f32 %v2360_v24, %v7229_v9 }
 0x6b3   : > { %v2469_v8 = vmul.f32 %v7271_v10, %v2448_v38  ;;  %v2421_v17 = vadd.f32 1e-05, %v2405_v58  ;;  %v2362_v9 = vmul.f32 96.0, %v7245_v42 }
 0x6b4   : > { %2520 = vst [vmem:[%s6694_s2 + $0x10] sm:$0xff] %v2504_v3  ;;  %v2491_v14 = vadd.f32 %v7274_v18, %v2470_v61  ;;  %v2420_v19 = vadd.f32 1e-05, %v2404_v15 }
 0x6b5   : > { %v2490_v23 = vadd.f32 %v7274_v18, %v2469_v8  ;;  %5061 = vrsqrt.f32 %v2421_v17 }
 0x6b6   : > { %v2507_v53 = vmul.f32 %v2491_v14, %v6979_v30  ;;  %5063 = vrsqrt.f32 %v2420_v19  ;;  %v2339_v16 = vpop.xlane.xlu0 %2338  ;;  %v2361_v30 = vmul.f32 96.0, %v7227_v43 }
 0x6b7   : > { %v5058_v7 = vpop.eup %5057  ;;  %v2506_v63 = vmul.f32 %v2490_v23, %v6969_v54  ;;  %v2391_v5 = vsub.f32 %v2339_v16, %v2375_v45  ;;  %v2337_v34 = vpop.xlane.xlu1 %2336 }
 0x6b8   : > { %v5060_v36 = vpop.eup %5059  ;;  %2523 = vst [vmem:[%s6694_s2 + $0x28] sm:$0xff] %v2507_v53  ;;  %v2451_v12 = vmul.f32 %v5058_v7, %v7185_v25  ;;  %v2390_v35 = vsub.f32 %v2337_v34, %v2374_v39  ;;  %v2378_v53 = vmul.f32 %v2362_v9, %v7245_v42  ;;  %v2567_v9 = vld [vmem:[#allocation25 + $0x58] sm:$0xff] (!%p3996_p12) }
 0x6b9   : > { %2522 = vst [vmem:[%s6694_s2 + $0x20] sm:$0xff] %v2506_v63  ;;  %v2450_v21 = vmul.f32 %v5060_v36, %v7189_v57  ;;  %v2407_v13 = vmul.f32 0.03125, %v2391_v5  ;;  %v2377_v57 = vmul.f32 %v2361_v30, %v7227_v43 }
 0x6ba   : > { %v2472_v59 = vmul.f32 %v7271_v10, %v2451_v12  ;;  %v2406_v26 = vmul.f32 0.03125, %v2390_v35 }
 0x6bb   : > { %v2471_v54 = vmul.f32 %v7271_v10, %v2450_v21  ;;  %v2423_v27 = vadd.f32 1e-05, %v2407_v13 }
 0x6bc   : > { %v2493_v2 = vadd.f32 %v7274_v18, %v2472_v59  ;;  %v2422_v1 = vadd.f32 1e-05, %v2406_v26 }
 0x6bd   : > { %v2492_v25 = vadd.f32 %v7274_v18, %v2471_v54  ;;  %5065 = vrsqrt.f32 %v2423_v27 }
 0x6be   : > { %v2509_v20 = vmul.f32 %v2493_v2, %v7000_v33  ;;  %5067 = vrsqrt.f32 %v2422_v1  ;;  %v2343_v0 = vpop.xlane.xlu0 %2342  ;;  %v2363_v33 = vmul.f32 96.0, %v7243_v22 }
 0x6bf   : > { %v5062_v28 = vpop.eup %5061  ;;  %v2508_v51 = vmul.f32 %v2492_v25, %v6990_v52  ;;  %v2393_v38 = vsub.f32 %v2343_v0, %v2377_v57  ;;  %v2341_v58 = vpop.xlane.xlu1 %2340 }
 0x6c0   : > { %v5064_v4 = vpop.eup %5063  ;;  %2525 = vst [vmem:[%s6694_s2 + $0x38] sm:$0xff] %v2509_v20  ;;  %v2453_v3 = vmul.f32 %v5062_v28, %v7201_v56  ;;  %v2392_v61 = vsub.f32 %v2341_v58, %v2376_v11  ;;  %v2559_v58 = vld [vmem:[#allocation25 + $0x18] sm:$0xff] (!%p3996_p12) }
 0x6c1   : > { %2524 = vst [vmem:[%s6694_s2 + $0x30] sm:$0xff] %v2508_v51  ;;  %v2452_v15 = vmul.f32 %v5064_v4, %v7205_v62  ;;  %v2409_v43 = vmul.f32 0.03125, %v2393_v38  ;;  %v2379_v62 = vmul.f32 %v2363_v33, %v7243_v22  ;;  %v2558_v4 = vld [vmem:[#allocation25 + $0x10] sm:$0xff] (!%p3996_p12) }
 0x6c2   : > { %v2474_v29 = vmul.f32 %v7271_v10, %v2453_v3  ;;  %v2408_v8 = vmul.f32 0.03125, %v2392_v61  ;;  %v2561_v3 = vld [vmem:[#allocation25 + $0x28] sm:$0xff] (!%p3996_p12)  ;;  %v2563_v61 = vld [vmem:[#allocation25 + $0x38] sm:$0xff] (!%p3996_p12) }
 0x6c3   : > { %v2473_v52 = vmul.f32 %v7271_v10, %v2452_v15  ;;  %v2425_v17 = vadd.f32 1e-05, %v2409_v43  ;;  %v2560_v15 = vld [vmem:[#allocation25 + $0x20] sm:$0xff] (!%p3996_p12)  ;;  %v7819_v43 = vld [vmem:[#allocation75_spill] sm:$0xff] (!%p3996_p12)  ;;  %v4532_v33 = vpack.c.bf16 (!%p3996_p12), %v2563_v61, %v2561_v3 }
 0x6c4   : > { %v2495_v14 = vadd.f32 %v7274_v18, %v2474_v29  ;;  %v2424_v19 = vadd.f32 1e-05, %v2408_v8  ;;  %v2562_v29 = vld [vmem:[#allocation25 + $0x30] sm:$0xff] (!%p3996_p12)  ;;  %v2565_v8 = vld [vmem:[#allocation25 + $0x48] sm:$0xff] (!%p3996_p12) }
 0x6c5   : > { %v2494_v56 = vadd.f32 %v7274_v18, %v2473_v52  ;;  %5069 = vrsqrt.f32 %v2425_v17  ;;  %v4534_v52 = vpack.c.bf16 (!%p3996_p12), %v2562_v29, %v2560_v15  ;;  %v4536_v17 = vpack.c.bf16 (!%p3996_p12), %v2567_v9, %v2565_v8  ;;  %v2724_v61 = vld [vmem:[#allocation28 + $0x40] sm:$0xff] (!%p3996_p12)  ;;  %v2725_v15 = vld [vmem:[#allocation28 + $0x48] sm:$0xff] (!%p3996_p12)  ;;  %v2727_v29 = vld [vmem:[#allocation28 + $0x58] sm:$0xff] (!%p3996_p12) }
 0x6c6   : > { %v2511_v23 = vmul.f32 %v2495_v14, %v7019_v32  ;;  %5071 = vrsqrt.f32 %v2424_v19  ;;  %v2347_v45 = vpop.xlane.xlu0 %2346  ;;  %v2564_v14 = vld [vmem:[#allocation25 + $0x40] sm:$0xff] (!%p3996_p12)  ;;  %v2566_v19 = vld [vmem:[#allocation25 + $0x50] sm:$0xff] (!%p3996_p12) }
 0x6c7   : > { %v5066_v16 = vpop.eup %5065  ;;  %v2510_v39 = vmul.f32 %v2494_v56, %v7010_v60  ;;  %v2395_v7 = vsub.f32 %v2347_v45, %v2379_v62  ;;  %v2345_v63 = vpop.xlane.xlu1 %2344  ;;  %v2569_v56 = vld [vmem:[#allocation25 + $0x68] sm:$0xff] (!%p3996_p12)  ;;  %v2571_v62 = vld [vmem:[#allocation25 + $0x78] sm:$0xff] (!%p3996_p12) }
 0x6c8   : > { %v5068_v5 = vpop.eup %5067  ;;  %2527 = vst [vmem:[%s6694_s2 + $0x48] sm:$0xff] %v2511_v23  ;;  %v2455_v34 = vmul.f32 %v5066_v16, %v7217_v49  ;;  %v2394_v36 = vsub.f32 %v2345_v63, %v2378_v53  ;;  %v5835_v23 = vmov (!%p3996_p12), 0.0   ;;  %v7820_v45 = vld [vmem:[#allocation76_spill] sm:$0xff] (!%p3996_p12)  ;;  %v4538_v53 = vpack.c.bf16 (!%p3996_p12), %v2566_v19, %v2564_v14  ;;  %v2573_v63 = vld [vmem:[#allocation25 + $0x88] sm:$0xff] (!%p3996_p12)  ;;  %v2731_v19 = vld [vmem:[#allocation28 + $0x78] sm:$0xff] (!%p3996_p12) }
 0x6c9   : > { %2526 = vst [vmem:[%s6694_s2 + $0x40] sm:$0xff] %v2510_v39  ;;  %v2454_v22 = vmul.f32 %v5068_v5, %v7221_v40  ;;  %v2411_v12 = vmul.f32 0.03125, %v2395_v7  ;;  %2664 = vmatprep.mubr.f32.mxu0 (!%p3996_p12), %v5835_v23  ;;  %v4540_v16 = vpack.c.bf16 (!%p3996_p12), %v2571_v62, %v2569_v56  ;;  %v2568_v39 = vld [vmem:[#allocation25 + $0x60] sm:$0xff] (!%p3996_p12)  ;;  %v2570_v7 = vld [vmem:[#allocation25 + $0x70] sm:$0xff] (!%p3996_p12)  ;;  %v2575_v5 = vld [vmem:[#allocation25 + $0x98] sm:$0xff] (!%p3996_p12) }
 0x6ca   : > { %v2476_v32 = vmul.f32 %v7271_v10, %v2455_v34  ;;  %v2410_v35 = vmul.f32 0.03125, %v2394_v36  ;;  %v4542_v34 = vpack.c.bf16 (!%p3996_p12), %v2570_v7, %v2568_v39  ;;  %v4544_v36 = vpack.c.bf16 (!%p3996_p12), %v2575_v5, %v2573_v63  ;;  %v2728_v9 = vld [vmem:[#allocation28 + $0x60] sm:$0xff] (!%p3996_p12)  ;;  %v2730_v14 = vld [vmem:[#allocation28 + $0x70] sm:$0xff] (!%p3996_p12) }
 0x6cb   : > { %v2475_v42 = vmul.f32 %v7271_v10, %v2454_v22  ;;  %v2427_v21 = vadd.f32 1e-05, %v2411_v12  ;;  %v2572_v22 = vld [vmem:[#allocation25 + $0x80] sm:$0xff] (!%p3996_p12)  ;;  %v2574_v12 = vld [vmem:[#allocation25 + $0x90] sm:$0xff] (!%p3996_p12)  ;;  %v4588_v56 = vpack.c.bf16 (!%p3996_p12), %v2731_v19, %v2730_v14 }
 0x6cc   : > { %v2497_v60 = vadd.f32 %v7274_v18, %v2476_v32  ;;  %v2426_v13 = vadd.f32 1e-05, %v2410_v35  ;;  %v2577_v32 = vld [vmem:[#allocation25 + $0xa8] sm:$0xff] (!%p3996_p12)  ;;  %v2579_v35 = vld [vmem:[#allocation25 + $0xb8] sm:$0xff] (!%p3996_p12) }
 0x6cd   : > { %v2496_v30 = vadd.f32 %v7274_v18, %v2475_v42  ;;  %5073 = vrsqrt.f32 %v2427_v21  ;;  %v4546_v42 = vpack.c.bf16 (!%p3996_p12), %v2574_v12, %v2572_v22  ;;  %v2576_v21 = vld [vmem:[#allocation25 + $0xa0] sm:$0xff] (!%p3996_p12)  ;;  %v2924_v39 = vld [vmem:[#allocation31 + $0x8] sm:$0xff] (!%p3996_p12)  ;;  %v2937_v14 = vld [vmem:[#allocation31 + $0x70] sm:$0xff] (!%p3996_p12) }
 0x6ce   : > { %v2513_v49 = vmul.f32 %v2497_v60, %v7038_v44  ;;  %5075 = vrsqrt.f32 %v2426_v13  ;;  %v4548_v60 = vpack.c.bf16 (!%p3996_p12), %v2579_v35, %v2577_v32  ;;  %v2578_v13 = vld [vmem:[#allocation25 + $0xb0] sm:$0xff] (!%p3996_p12)  ;;  %v2939_v62 = vld [vmem:[#allocation31 + $0x80] sm:$0xff] (!%p3996_p12)  ;;  %v2942_v22 = vld [vmem:[#allocation31 + $0x98] sm:$0xff] (!%p3996_p12) }
 0x6cf   : > { %v5070_v59 = vpop.eup %5069  ;;  %v2512_v40 = vmul.f32 %v2496_v30, %v7029_v47  ;;  %v2581_v30 = vld [vmem:[#allocation25 + $0xc8] sm:$0xff] (!%p3996_p12)  ;;  %v2925_v32 = vld [vmem:[#allocation31 + $0x10] sm:$0xff] (!%p3996_p12)  ;;  %v2926_v35 = vld [vmem:[#allocation31 + $0x18] sm:$0xff] (!%p3996_p12) }
 0x6d0   : > { %v5072_v26 = vpop.eup %5071  ;;  %2529 = vst [vmem:[%s6694_s2 + $0x58] sm:$0xff] %v2513_v49  ;;  %v2457_v24 = vmul.f32 %v5070_v59, %v7233_v37  ;;  %v2583_v49 = vld [vmem:[#allocation25 + $0xd8] sm:$0xff] (!%p3996_p12)  ;;  %v2716_v59 = vld [vmem:[#allocation28] sm:$0xff] (!%p3996_p12)  ;;  %v2972_v5 = vld [vmem:[#allocation31 + $0x188] sm:$0xff] (!%p3996_p12) }
 0x6d1   : > { %2528 = vst [vmem:[%s6694_s2 + $0x50] sm:$0xff] %v2512_v40  ;;  %v2456_v54 = vmul.f32 %v5072_v26, %v7237_v50  ;;  %v2717_v40 = vld [vmem:[#allocation28 + $0x8] sm:$0xff] (!%p3996_p12)  ;;  %v2718_v26 = vld [vmem:[#allocation28 + $0x10] sm:$0xff] (!%p3996_p12)  ;;  %v2938_v19 = vld [vmem:[#allocation31 + $0x78] sm:$0xff] (!%p3996_p12) }
 0x6d2   : > { %v2478_v27 = vmul.f32 %v7271_v10, %v2457_v24  ;;  %v4560_v24 = vpack.c.bf16 (!%p3996_p12), %v2717_v40, %v2716_v59  ;;  %v2971_v7 = vld [vmem:[#allocation31 + $0x180] sm:$0xff] (!%p3996_p12) }
 0x6d3   : > { %v2477_v2 = vmul.f32 %v7271_v10, %v2456_v54  ;;  %v2719_v54 = vld [vmem:[#allocation28 + $0x18] sm:$0xff] (!%p3996_p12)  ;;  %v2927_v40 = vld [vmem:[#allocation31 + $0x20] sm:$0xff] (!%p3996_p12) }
 0x6d4   : > { %v2499_v1 = vadd.f32 %v7274_v18, %v2478_v27  ;;  %v4550_v27 = vpack.c.bf16 (!%p3996_p12), %v2578_v13, %v2576_v21  ;;  %4561 = vmatprep.subr.bf16.mxu1 (!%p3996_p12), %v4560_v24  ;;  %v7821_v21 = vld [vmem:[#allocation72_spill] sm:$0xff] (!%p3996_p12) }
 0x6d5   : > { %v2498_v44 = vadd.f32 %v7274_v18, %v2477_v2  ;;  %v4564_v2 = vpack.c.bf16 (!%p3996_p12), %v2719_v54, %v2718_v26  ;;  %4563 = vmatpush3.bf16.msra.mxu1 (!%p3996_p12), %v4560_v24  ;;  %v2928_v26 = vld [vmem:[#allocation31 + $0x28] sm:$0xff] (!%p3996_p12) }
 0x6d6   : > { %v2515_v47 = vmul.f32 %v2499_v1, %v7054_v46  ;;  %v2720_v1 = vld [vmem:[#allocation28 + $0x20] sm:$0xff] (!%p3996_p12)  ;;  %v4602_v24 = vpack.c.bf16 (!%p3996_p12), %v2928_v26, %v2927_v40 }
 0x6d7   : > { %v5074_v25 = vpop.eup %5073  ;;  %v2514_v57 = vmul.f32 %v2498_v44, %v7046_v55  ;;  %v2538_v55 = vld [vmem:[%s824_s24] sm:$0xff] (!%p3996_p12)  ;;  %4565 = vmatprep.subr.bf16.mxu1 (!%p3996_p12), %v4564_v2 }
 0x6d8   : > { %v5076_v20 = vpop.eup %5075  ;;  %2531 = vst [vmem:[%s6694_s2 + $0x68] sm:$0xff] %v2515_v47  ;;  %v2459_v37 = vmul.f32 %v5074_v25, %v7249_v31  ;;  %v2557_v31 = vld [vmem:[#allocation25 + $0x8] sm:$0xff] (!%p3996_p12)  ;;  %v4552_v47 = vpack.c.bf16 (!%p3996_p12), %v2583_v49, %v2581_v30  ;;  %v2580_v25 = vld [vmem:[#allocation25 + $0xc0] sm:$0xff] (!%p3996_p12) }
 0x6d9   : > { %2530 = vst [vmem:[%s6694_s2 + $0x60] sm:$0xff] %v2514_v57  ;;  %v2458_v50 = vmul.f32 %v5076_v20, %v7253_v6  ;;  %v5834_v6 = vmov (!%p3996_p12), 0   ;;  %v2721_v44 = vld [vmem:[#allocation28 + $0x28] sm:$0xff] (!%p3996_p12)  ;;  %4567 = vmatpush3.bf16.msra.mxu1 (!%p3996_p12), %v4564_v2  ;;  %v2946_v2 = vld [vmem:[#allocation31 + $0xb8] sm:$0xff] (!%p3996_p12) }
 0x6da   : > { %v2480_v0 = vmul.f32 %v7271_v10, %v2459_v37  ;;  %5077 = vset.pattern.permute.xlu0 (!%p3996_p12), %v5834_v6  ;;  %5078 = vset.pattern.permute.xlu1 (!%p3996_p12), %v5834_v6  ;;  %v2582_v57 = vld [vmem:[#allocation25 + $0xd0] sm:$0xff] (!%p3996_p12)  ;;  %v2585_v20 = vld [vmem:[#allocation25 + $0xe8] sm:$0xff] (!%p3996_p12)  ;;  %v2587_v37 = vld [vmem:[#allocation25 + $0xf8] sm:$0xff] (!%p3996_p12) }
 0x6db   : > { %v2479_v11 = vmul.f32 %v7271_v10, %v2458_v50  ;;  %2537 = sbr.rel (%p3996_p12) target bundleno = 3162 (0xc5a), region = 164  ;;  %v2539_v10 = vld [vmem:[%s824_s24 + $0x8] sm:$0xff] (!%p3996_p12)  ;;  %2544 = vperm.xlu0 (!%p3996_p12), %5077, %v2538_v55   ;;  %2687 = vperm.xlu1 (!%p3996_p12), %5078, %v7819_v43   ;;  %v4568_v50 = vpack.c.bf16 (!%p3996_p12), %v2721_v44, %v2720_v1  ;;  %v4576_v43 = vpack.c.bf16 (!%p3996_p12), %v2725_v15, %v2724_v61 }
 0x6dc   : > { %v2501_v28 = vadd.f32 %v7274_v18, %v2480_v0  ;;  %v4554_v0 = vpack.c.bf16 (!%p3996_p12), %v2582_v57, %v2580_v25  ;;  %v2943_v30 = vld [vmem:[#allocation31 + $0xa0] sm:$0xff] (!%p3996_p12)  ;;  %v2944_v49 = vld [vmem:[#allocation31 + $0xa8] sm:$0xff] (!%p3996_p12)  ;;  %v2929_v44 = vld [vmem:[#allocation31 + $0x30] sm:$0xff] (!%p3996_p12) }
 0x6dd   : > { %v2500_v51 = vadd.f32 %v7274_v18, %v2479_v11  ;;  %v2556_v18 = vld [vmem:[#allocation25] sm:$0xff] (!%p3996_p12)  ;;  %v4556_v11 = vpack.c.bf16 (!%p3996_p12), %v2587_v37, %v2585_v20  ;;  %4569 = vmatprep.subr.bf16.mxu1 (!%p3996_p12), %v4568_v50  ;;  %v4600_v59 = vpack.c.bf16 (!%p3996_p12), %v2944_v49, %v2943_v30  ;;  %v2948_v37 = vld [vmem:[#allocation31 + $0xc8] sm:$0xff] (!%p3996_p12) }
 0x6de   : > { %v2517_v46 = vmul.f32 %v2501_v28, %v7064_v41  ;;  %v4530_v41 = vpack.c.bf16 (!%p3996_p12), %v2558_v4, %v2556_v18  ;;  %v2584_v28 = vld [vmem:[#allocation25 + $0xe0] sm:$0xff] (!%p3996_p12)  ;;  %4571 = vmatpush3.bf16.msra.mxu1 (!%p3996_p12), %v4568_v50  ;;  %v2936_v15 = vld [vmem:[#allocation31 + $0x68] sm:$0xff] (!%p3996_p12) }
 0x6df   : > { %v2516_v38 = vmul.f32 %v2500_v51, %v7059_v48  ;;  %v4528_v48 = vpack.c.bf16 (!%p3996_p12), %v2559_v58, %v2557_v31  ;;  %2549 = vperm.xlu0 (!%p3996_p12), %5077, %v2539_v10   ;;  %2692 = vperm.xlu1 (!%p3996_p12), %5078, %v7820_v45   ;;  %v2586_v51 = vld [vmem:[#allocation25 + $0xf0] sm:$0xff] (!%p3996_p12)  ;;  %v2540_v31 = vld [vmem:[#allocation5] sm:$0xff] (!%p3996_p12) }
 0x6e0   : > { %2533 = vst [vmem:[%s6694_s2 + $0x78] sm:$0xff] %v2517_v46  ;;  %v4558_v46 = vpack.c.bf16 (!%p3996_p12), %v2586_v51, %v2584_v28  ;;  %v2541_v58 = vld [vmem:[#allocation5 + $0x8] sm:$0xff] (!%p3996_p12) }
 0x6e1   : > { %2532 = vst [vmem:[%s6694_s2 + $0x70] sm:$0xff] %v2516_v38  ;;  %4529 = vmatprep.subr.bf16.mxu0 (!%p3996_p12), %v4528_v48  ;;  %v2722_v48 = vld [vmem:[#allocation28 + $0x30] sm:$0xff] (!%p3996_p12)  ;;  %v2947_v20 = vld [vmem:[#allocation31 + $0xc0] sm:$0xff] (!%p3996_p12) }
 0x6e2   : > { %4531 = vmatpush1.bf16.msra.mxu0 %v4530_v41  ;;  %v2723_v41 = vld [vmem:[#allocation28 + $0x38] sm:$0xff]  ;;  %v2940_v45 = vld [vmem:[#allocation31 + $0x88] sm:$0xff]  ;;  %v4608_v50 = vpack.c.bf16 %v2948_v37, %v2947_v20  ;;  %v2935_v61 = vld [vmem:[#allocation31 + $0x60] sm:$0xff] }
 0x6e3   : > { %4533 = vmatprep.subr.bf16.mxu0 %v4532_v33  ;;  %v4572_v3 = vpack.c.bf16 %v2723_v41, %v2722_v48  ;;  %v2726_v33 = vld [vmem:[#allocation28 + $0x50] sm:$0xff]  ;;  %v2951_v48 = vld [vmem:[#allocation31 + $0xe0] sm:$0xff] }
 0x6e4   : > { %v4580_v8 = vpack.c.bf16 %v2727_v29, %v2726_v33  ;;  %v2952_v41 = vld [vmem:[#allocation31 + $0xe8] sm:$0xff]  ;;  %v4618_v33 = vpack.c.bf16 %v2936_v15, %v2935_v61  ;;  %v3151_v49 = vld [vmem:[#allocation31 + $0x2a0] sm:$0xff]  ;;  %v3145_v15 = vld [vmem:[#allocation31 + $0x270] sm:$0xff] }
 0x6e5   : > { %4573 = vmatprep.subr.bf16.mxu1 %v4572_v3  ;;  %v3135_v26 = vld [vmem:[#allocation31 + $0x220] sm:$0xff]  ;;  %v3156_v20 = vld [vmem:[#allocation31 + $0x2c8] sm:$0xff] }
 0x6e6   : > { %4535 = vmatpush1.bf16.msra.mxu0 %v4534_v52  ;;  %4575 = vmatpush3.bf16.msra.mxu1 %v4572_v3  ;;  %v2729_v52 = vld [vmem:[#allocation28 + $0x68] sm:$0xff]  ;;  %v4616_v3 = vpack.c.bf16 %v2952_v41, %v2951_v48  ;;  %v3161_v41 = vld [vmem:[#allocation31 + $0x2f0] sm:$0xff] }
 0x6e7   : > { %4537 = vmatprep.subr.bf16.mxu0 %v4536_v17  ;;  %4577 = vmatprep.subr.bf16.mxu1 %v4576_v43  ;;  %v4584_v17 = vpack.c.bf16 %v2729_v52, %v2728_v9  ;;  %v2953_v9 = vld [vmem:[#allocation31 + $0xf0] sm:$0xff]  ;;  %v2954_v52 = vld [vmem:[#allocation31 + $0xf8] sm:$0xff] }
 0x6ea   : > { %4539 = vmatpush1.bf16.msra.mxu0 %v4538_v53  ;;  %4579 = vmatpush3.bf16.msra.mxu1 %v4576_v43  ;;  %v4592_v53 = vpack.c.bf16 %v2940_v45, %v2939_v62  ;;  %v4622_v62 = vpack.c.bf16 %v2938_v19, %v2937_v14 }
 0x6eb   : > { %4541 = vmatprep.subr.bf16.mxu0 %v4540_v16  ;;  %4581 = vmatprep.subr.bf16.mxu1 %v4580_v8  ;;  %v2923_v16 = vld [vmem:[#allocation31] sm:$0xff] }
 0x6ec   : > { %v4594_v63 = vpack.c.bf16 %v2924_v39, %v2923_v16  ;;  %v3147_v16 = vld [vmem:[#allocation31 + $0x280] sm:$0xff]  ;;  %v3148_v39 = vld [vmem:[#allocation31 + $0x288] sm:$0xff] }
 0x6ee   : > { %4543 = vmatpush1.bf16.msra.mxu0 %v4542_v34  ;;  %4583 = vmatpush3.bf16.msra.mxu1 %v4580_v8  ;;  %v4624_v34 = vpack.c.bf16 %v2972_v5, %v2971_v7  ;;  %v3131_v5 = vld [vmem:[#allocation31 + $0x200] sm:$0xff] }
 0x6ef   : > { %4545 = vmatprep.subr.bf16.mxu0 %v4544_v36  ;;  %4585 = vmatprep.subr.bf16.mxu1 %v4584_v17  ;;  %v2941_v36 = vld [vmem:[#allocation31 + $0x90] sm:$0xff] }
 0x6f0   : > { %v4596_v12 = vpack.c.bf16 %v2942_v22, %v2941_v36 }
 0x6f2   : > { %4547 = vmatpush1.bf16.msra.mxu0 %v4546_v42  ;;  %4587 = vmatpush3.bf16.msra.mxu1 %v4584_v17  ;;  %v4598_v42 = vpack.c.bf16 %v2926_v35, %v2925_v32  ;;  %v4620_v17 = vpack.c.bf16 %v2954_v52, %v2953_v9  ;;  %v3150_v32 = vld [vmem:[#allocation31 + $0x298] sm:$0xff] }
 0x6f3   : > { %4549 = vmatprep.subr.bf16.mxu0 %v4548_v60  ;;  %4589 = vmatprep.subr.bf16.mxu1 %v4588_v56  ;;  %v7822_v60 = vld [vmem:[#allocation73_spill] sm:$0xff] }
 0x6f4   : > { %v2860_v13 = vadd.f32 %v7822_v60, %v7821_v21 }
 0x6f6   : > { %4551 = vmatpush1.bf16.msra.mxu0 %v4550_v27  ;;  %4591 = vmatpush3.bf16.msra.mxu1 %v4588_v56  ;;  %v2861_v54 = vrot.slane %v2860_v13, 4  ;;  %v2945_v27 = vld [vmem:[#allocation31 + $0xb0] sm:$0xff] }
 0x6f7   : > { %4553 = vmatprep.subr.bf16.mxu0 %v4552_v47  ;;  %4625 = vmatprep.subr.bf16.mxu1 %v4624_v34  ;;  %v4604_v1 = vpack.c.bf16 %v2946_v2, %v2945_v27  ;;  %v2930_v47 = vld [vmem:[#allocation31 + $0x38] sm:$0xff]  ;;  %v3132_v34 = vld [vmem:[#allocation31 + $0x208] sm:$0xff]  ;;  %v3153_v27 = vld [vmem:[#allocation31 + $0x2b0] sm:$0xff] }
 0x6f8   : > { %v4606_v25 = vpack.c.bf16 %v2930_v47, %v2929_v44  ;;  %v2862_v57 = vadd.f32 %v2861_v54, %v2860_v13  ;;  %v4658_v22 = vpack.c.bf16 %v3132_v34, %v3131_v5  ;;  %v3134_v13 = vld [vmem:[#allocation31 + $0x218] sm:$0xff]  ;;  %v3137_v44 = vld [vmem:[#allocation31 + $0x230] sm:$0xff] }
 0x6f9   : > { %v3154_v2 = vld [vmem:[#allocation31 + $0x2b8] sm:$0xff] }
 0x6fa   : > { %4555 = vmatpush1.bf16.msra.mxu0 %v4554_v0  ;;  %v2931_v0 = vld [vmem:[#allocation31 + $0x40] sm:$0xff]  ;;  %v2863_v51 = vrot.slane %v2862_v57, 2  ;;  %v3138_v47 = vld [vmem:[#allocation31 + $0x238] sm:$0xff] }
 0x6fb   : > { %4557 = vmatprep.subr.bf16.mxu0 %v4556_v11  ;;  %v2932_v11 = vld [vmem:[#allocation31 + $0x48] sm:$0xff]  ;;  %v7823_v34 = vld [vmem:[#allocation77_spill] sm:$0xff] }
 0x6fc   : > { %v4610_v28 = vpack.c.bf16 %v2932_v11, %v2931_v0  ;;  %v3140_v0 = vld [vmem:[#allocation31 + $0x248] sm:$0xff] }
 0x6fe   : > { %4559 = vmatpush1.bf16.msra.mxu0 %v4558_v46  ;;  %v2949_v46 = vld [vmem:[#allocation31 + $0xd0] sm:$0xff] }
 0x6ff   : > { %4593 = vmatprep.subr.bf16.mxu0 %v4592_v53 }
 0x75a   : > { %v2545_v38 = vpop.permute.xlu0 %2544 }
 0x75b   : > { %5079 = vrcp.f32 %v2545_v38  ;;  %v2950_v38 = vld [vmem:[#allocation31 + $0xd8] sm:$0xff] }
 0x75e   : > { %v2550_v55 = vpop.permute.xlu0 %2549 }
 0x75f   : > { %5081 = vrcp.f32 %v2550_v55  ;;  %v4612_v55 = vpack.c.bf16 %v2950_v38, %v2949_v46  ;;  %v3141_v38 = vld [vmem:[#allocation31 + $0x250] sm:$0xff] }
 0x765   : > { %v5080_v6 = vpop.eup %5079 }
 0x766   : > { %v2553_v10 = vmul.f32 %v5080_v6, %v2540_v31  ;;  %v2933_v31 = vld [vmem:[#allocation31 + $0x50] sm:$0xff]  ;;  %v2934_v6 = vld [vmem:[#allocation31 + $0x58] sm:$0xff] }
 0x768   : > { %2665 = vmatmul.mubr.f32.vlgmr.msra.gmra.mrb[0].mxu0 %v2553_v10  ;;  %v2869_v10 = vmin.f32 %v7821_v21, %v7822_v60 }
 0x769   : > { %v5082_v18 = vpop.eup %5081  ;;  %2670 = vmatprep.mubr.f32.mxu0 %v5835_v23  ;;  %4595 = vmatpush3.bf16.msra.mxu0 %v4594_v63  ;;  %v4656_v63 = vpack.c.bf16 %v3148_v39, %v3147_v16 }
 0x76a   : > { %v2555_v4 = vmul.f32 %v5082_v18, %v2541_v58  ;;  %4597 = vmatprep.subr.bf16.mxu0 %v4596_v12  ;;  %v4614_v58 = vpack.c.bf16 %v2934_v6, %v2933_v31  ;;  %v2864_v18 = vadd.f32 %v2863_v51, %v2862_v57  ;;  %v3149_v12 = vld [vmem:[#allocation31 + $0x290] sm:$0xff]  ;;  %v3155_v57 = vld [vmem:[#allocation31 + $0x2c0] sm:$0xff]  ;;  %v3158_v51 = vld [vmem:[#allocation31 + $0x2d8] sm:$0xff] }
 0x76b   : > { %v4660_v35 = vpack.c.bf16 %v3150_v32, %v3149_v12  ;;  %v4672_v37 = vpack.c.bf16 %v3156_v20, %v3155_v57  ;;  %v3159_v6 = vld [vmem:[#allocation31 + $0x2e0] sm:$0xff] }
 0x76c   : > { %2671 = vmatmul.mubr.f32.gmra.mrb[2].mxu0 %v2555_v4  ;;  %v2870_v4 = vrot.slane %v2869_v10, 4  ;;  %v2865_v29 = vrot.slane %v2864_v18, 1 }
 0x76d   : > { %4599 = vmatpush3.bf16.msra.mxu0 %v4598_v42  ;;  %v3133_v42 = vld [vmem:[#allocation31 + $0x210] sm:$0xff] }
 0x76e   : > { %4601 = vmatprep.subr.bf16.mxu0 %v4600_v59  ;;  %v2871_v43 = vmin.f32 %v2869_v10, %v2870_v4  ;;  %v2866_v45 = vadd.f32 %v2865_v29, %v2864_v18  ;;  %v4662_v30 = vpack.c.bf16 %v3134_v13, %v3133_v42  ;;  %v3152_v59 = vld [vmem:[#allocation31 + $0x2a8] sm:$0xff]  ;;  %v3143_v18 = vld [vmem:[#allocation31 + $0x260] sm:$0xff] }
 0x76f   : > { %v4664_v40 = vpack.c.bf16 %v3152_v59, %v3151_v49  ;;  %v3160_v10 = vld [vmem:[#allocation31 + $0x2e8] sm:$0xff]  ;;  %v7825_v13 = vld [vmem:[#allocation78_spill] sm:$0xff] }
 0x770   : > { %v2872_v8 = vrot.slane %v2871_v43, 2  ;;  %v7388_v36 = vmul.f32 0.0625, %v2866_v45  ;;  %v3144_v4 = vld [vmem:[#allocation31 + $0x268] sm:$0xff] }
 0x771   : > { %4603 = vmatpush3.bf16.msra.mxu0 %v4602_v24  ;;  %v3136_v24 = vld [vmem:[#allocation31 + $0x228] sm:$0xff]  ;;  %v4682_v48 = vpack.c.bf16 %v3144_v4, %v3143_v18  ;;  %v2955_v18 = vld [vmem:[#allocation31 + $0x100] sm:$0xff] }
 0x772   : > { %4605 = vmatprep.subr.bf16.mxu0 %v4604_v1  ;;  %v2873_v56 = vmin.f32 %v2871_v43, %v2872_v8  ;;  %v4666_v54 = vpack.c.bf16 %v3136_v24, %v3135_v26  ;;  %v4668_v1 = vpack.c.bf16 %v3154_v2, %v3153_v27  ;;  %v3146_v43 = vld [vmem:[#allocation31 + $0x278] sm:$0xff]  ;;  %v2903_v29 = vld [vmem:[#allocation6] sm:$0x1]  ;;  %v2921_v8 = vld [vmem:[#allocation8] sm:$0x1]  ;;  %v2883_v52 = vsub.f32 %v7821_v21, %v7388_v36 }
 0x773   : > { %v2904_v9 = vmul.f32 0.00390625, %v2903_v29  ;;  %v2678_v42 = vld [vmem:[#allocation2 + $0x3] sm:$0x1]  ;;  %v2905_v24 = vld [vmem:[#allocation4] sm:$0x1] }
 0x774   : > { %v2874_v53 = vrot.slane %v2873_v56, 1  ;;  %v2885_v14 = vmul.f32 %v2883_v52, %v2883_v52  ;;  %v2956_v4 = vld [vmem:[#allocation31 + $0x108] sm:$0xff]  ;;  %v2957_v52 = vld [vmem:[#allocation31 + $0x110] sm:$0xff] }
 0x775   : > { %4607 = vmatpush3.bf16.msra.mxu0 %v4606_v25  ;;  %v4670_v25 = vpack.c.bf16 %v3138_v47, %v3137_v44  ;;  %v2906_v57 = vsub.f32 %v2904_v9, %v2905_v24  ;;  %v4626_v29 = vpack.c.bf16 %v2956_v4, %v2955_v18  ;;  %v2981_v24 = vld [vmem:[#allocation31 + $0x1d0] sm:$0xff]  ;;  %v2970_v18 = vld [vmem:[#allocation31 + $0x178] sm:$0xff]  ;;  %v3179_v4 = vld [vmem:[#allocation31 + $0x380] sm:$0xff] }
 0x776   : > { %4609 = vmatprep.subr.bf16.mxu0 %v4608_v50  ;;  %v2875_v7 = vmin.f32 %v2873_v56, %v2874_v53  ;;  %v3139_v50 = vld [vmem:[#allocation31 + $0x240] sm:$0xff] }
 0x777   : > { %v4674_v11 = vpack.c.bf16 %v3140_v0, %v3139_v50 }
 0x778   : > { %3051 = vmatprep.mubr.f32.mxu0 %v2875_v7 }
 0x779   : > { %4611 = vmatpush3.bf16.msra.mxu0 %v4610_v28  ;;  %v3157_v28 = vld [vmem:[#allocation31 + $0x2d0] sm:$0xff] }
 0x77a   : > { %4613 = vmatprep.subr.bf16.mxu0 %v4612_v55  ;;  %v4676_v46 = vpack.c.bf16 %v3158_v51, %v3157_v28  ;;  %v3142_v55 = vld [vmem:[#allocation31 + $0x258] sm:$0xff] }
 0x77b   : > { %v4678_v31 = vpack.c.bf16 %v3142_v55, %v3141_v38 }
 0x77d   : > { %4615 = vmatpush3.bf16.msra.mxu0 %v4614_v58  ;;  %v4680_v58 = vpack.c.bf16 %v3160_v10, %v3159_v6 }
 0x77e   : > { %4617 = vmatprep.subr.bf16.mxu0 %v4616_v3  ;;  %v3162_v3 = vld [vmem:[#allocation31 + $0x2f8] sm:$0xff] }
 0x77f   : > { %v4684_v61 = vpack.c.bf16 %v3162_v3, %v3161_v41  ;;  %v2973_v3 = vld [vmem:[#allocation31 + $0x190] sm:$0xff] }
 0x781   : > { %4619 = vmatpush3.bf16.msra.mxu0 %v4618_v33  ;;  %v4686_v33 = vpack.c.bf16 %v3146_v43, %v3145_v15  ;;  %v2907_v43 = vld [vmem:[#allocation7] sm:$0x1] }
 0x782   : > { %4621 = vmatprep.subr.bf16.mxu0 %v4620_v17  ;;  %v2884_v17 = vsub.f32 %v7822_v60, %v7388_v36 }
 0x784   : > { %v2886_v19 = vmul.f32 %v2884_v17, %v2884_v17  ;;  %v2958_v17 = vld [vmem:[#allocation31 + $0x118] sm:$0xff] }
 0x785   : > { %4623 = vmatpush3.bf16.msra.mxu0 %v4622_v62 }
 0x786   : > { %4657 = vmatprep.subr.bf16.mxu0 %v4656_v63  ;;  %v2887_v56 = vadd.f32 %v2886_v19, %v2885_v14  ;;  %v2588_v63 = vld [vmem:[#allocation27] sm:$0x3] }
 0x788   : > { %3052 = vmatmul.mubr.f32.vlgmr.msra.gmra.mrb[4].mxu0 %v7388_v36  ;;  %v2888_v62 = vrot.slane %v2887_v56, 4  ;;  %v2593_v36 = vrot.slane %v2588_v63, %v7825_v13 }
 0x789   : > { %4659 = vmatpush3.bf16.msra.mxu0 %v4658_v22  ;;  %3259 = vmatprep.mubr.f32.mxu0 %v2921_v8  ;;  %v7824_v22 = vsub.s32 1, %v7823_v34  ;;  %v2876_v34 = vmax.f32 %v7821_v21, %v7822_v60 }
 0x78a   : > { %4661 = vmatprep.subr.bf16.mxu0 %v4660_v35  ;;  %v2889_v45 = vadd.f32 %v2888_v62, %v2887_v56  ;;  %v2975_v56 = vld [vmem:[#allocation31 + $0x1a0] sm:$0xff]  ;;  %v2976_v62 = vld [vmem:[#allocation31 + $0x1a8] sm:$0xff] }
 0x78b   : > { %v2597_v12 = vrot.slane %v2588_v63, %v7824_v22  ;;  %v2977_v63 = vld [vmem:[#allocation31 + $0x1b0] sm:$0xff] }
 0x78c   : > { %v2890_v53 = vrot.slane %v2889_v45, 2 }
 0x78d   : > { %4663 = vmatpush3.bf16.msra.mxu0 %v4662_v30 }
 0x78e   : > { %4665 = vmatprep.subr.bf16.mxu0 %v4664_v40  ;;  %v2891_v16 = vadd.f32 %v2890_v53, %v2889_v45  ;;  %v2697_v40 = vadd.f32 1.0, %v2678_v42  ;;  %v4630_v45 = vpack.c.bf16 %v2958_v17, %v2957_v52  ;;  %v4632_v53 = vpack.c.bf16 %v2976_v62, %v2975_v56  ;;  %v3165_v56 = vld [vmem:[#allocation31 + $0x310] sm:$0xff]  ;;  %v3166_v62 = vld [vmem:[#allocation31 + $0x318] sm:$0xff] }
 0x790   : > { %v2892_v39 = vrot.slane %v2891_v16, 1 }
 0x791   : > { %4667 = vmatpush3.bf16.msra.mxu0 %v4666_v54 }
 0x792   : > { %4669 = vmatprep.subr.bf16.mxu0 %v4668_v1  ;;  %v2893_v7 = vadd.f32 %v2892_v39, %v2891_v16  ;;  %v7399_v1 = vpop.permute.xlu1 %2687  ;;  %v2959_v16 = vld [vmem:[#allocation31 + $0x120] sm:$0xff]  ;;  %v2960_v39 = vld [vmem:[#allocation31 + $0x128] sm:$0xff] }
 0x793   : > { %v4634_v22 = vpack.c.bf16 %v2960_v39, %v2959_v16  ;;  %v3184_v16 = vld [vmem:[#allocation31 + $0x3a8] sm:$0xff]  ;;  %v4694_v39 = vpack.c.bf16 %v3166_v62, %v3165_v56 }
 0x794   : > { %v2895_v5 = vmul.f32 0.06666667, %v2893_v7  ;;  %v3349_v62 = vld [vmem:[#allocation28 + $0x150] sm:$0xff] }
 0x795   : > { %4671 = vmatpush3.bf16.msra.mxu0 %v4670_v25  ;;  %v2702_v25 = vrot.slane %v2697_v40, %v7825_v13  ;;  %v2979_v13 = vld [vmem:[#allocation31 + $0x1c0] sm:$0xff] }
 0x796   : > { %4673 = vmatprep.subr.bf16.mxu0 %v4672_v37  ;;  %5083 = vrsqrt.f32 %v2895_v5  ;;  %v7404_v38 = vpop.permute.xlu1 %2692  ;;  %vm2898_vm1 = vcmp.eq.f32.partialorder %v2895_v5, inf  ;;  %vm2900_vm2 = vcmp.eq.f32.partialorder %v2895_v5, 0.0  ;;  %v2963_v40 = vld [vmem:[#allocation31 + $0x140] sm:$0xff] }
 0x799   : > { %4675 = vmatpush3.bf16.msra.mxu0 %v4674_v11  ;;  %v3997_v11 = vld [vmem:[#allocation2 + $0x2] ss:$0 sm:$0xff] }
 0x79a   : > { %4677 = vmatprep.subr.bf16.mxu0 %v4676_v46  ;;  %v2908_v46 = vmul.f32 256.0, %v2906_v57 }
 0x79c   : > { %v2909_v41 = vmul.f32 %v2908_v46, %v2906_v57  ;;  %v2983_v57 = vld [vmem:[#allocation31 + $0x1e0] sm:$0xff]  ;;  %v2986_v46 = vld [vmem:[#allocation31 + $0x1f8] sm:$0xff] }
 0x79d   : > { %4679 = vmatpush3.bf16.msra.mxu0 %v4678_v31 }
 0x79e   : > { %4681 = vmatprep.subr.bf16.mxu0 %v4680_v58  ;;  %v2910_v19 = vsub.f32 %v2907_v43, %v2909_v41  ;;  %v3163_v43 = vld [vmem:[#allocation31 + $0x300] sm:$0xff] }
 0x7a0   : > { %v5084_v20 = vpop.eup %5083  ;;  %v2912_v7 = vmul.f32 0.003921569, %v2910_v19 }
 0x7a1   : > { %4683 = vmatpush3.bf16.msra.mxu0 %v4682_v48  ;;  %v2897_v55 = vmul.f32 %v5084_v20, %v2895_v5  ;;  %v2901_v48 = vand.u32 2147483648, %v2895_v5  ;;  %v2984_v20 = vld [vmem:[#allocation31 + $0x1e8] sm:$0xff] }
 0x7a2   : > { %4685 = vmatprep.subr.bf16.mxu0 %v4684_v61  ;;  %v2974_v61 = vld [vmem:[#allocation31 + $0x198] sm:$0xff]  ;;  %v7411_v42 = vmax.f32 %v2912_v7, 0.0 }
 0x7a3   : > { %v2899_v15 = vsel %vm2898_vm1, %v2895_v5, %v2897_v55  ;;  %v2978_v5 = vld [vmem:[#allocation31 + $0x1b8] sm:$0xff] }
 0x7a4   : > { %v2902_v14 = vsel %vm2900_vm2, %v2901_v48, %v2899_v15  ;;  %5085 = vrsqrt.f32 %v7411_v42  ;;  %v3180_v48 = vld [vmem:[#allocation31 + $0x388] sm:$0xff]  ;;  %vm2916_vm3 = vcmp.eq.f32.partialorder %v7411_v42, inf  ;;  %vm2918_vm4 = vcmp.eq.f32.partialorder %v7411_v42, 0.0 }
 0x7a5   : > { %4687 = vmatpush3.bf16.msra.mxu0 %v4686_v33  ;;  %v4688_v15 = vpack.c.bf16 %v3180_v48, %v3179_v4  ;;  %v3339_v4 = vld [vmem:[#allocation28 + $0x100] sm:$0xff]  ;;  %v3340_v48 = vld [vmem:[#allocation28 + $0x108] sm:$0xff] }
 0x7a8   : > { %3260 = vmatmul.mubr.f32.vlgmr.msra.gmra.mrb[6].mxu0 %v2904_v9  ;;  %v4628_v9 = vpack.c.bf16 %v2974_v61, %v2973_v3 }
 0x7a9   : > { %4362 = vmatprep.mubr.msk.f32.mxu0 %vm5837_vm5, %v5835_v23 }
 0x7ae   : > { %v5086_v55 = vpop.eup %5085 }
 0x7af   : > { %v2915_v41 = vmul.f32 %v5086_v55, %v7411_v42  ;;  %v3178_v55 = vld [vmem:[#allocation31 + $0x378] sm:$0xff] }
 0x7b1   : > { %v2917_v52 = vsel %vm2916_vm3, %v7411_v42, %v2915_v41  ;;  %v3341_v41 = vld [vmem:[#allocation28 + $0x110] sm:$0xff] }
 0x83b   : > { %v2666_v32 = vpop.f32.mrb[0].mxu0 }
 0x83c   : > { %v2668_v35 = vpop.f32.mrb[1].mxu0  ;;  %v2667_v54 = vadd.f32 %v2666_v32, %v2593_v36  ;;  %v2961_v32 = vld [vmem:[#allocation31 + $0x130] sm:$0xff] }
 0x83d   : > { %v2669_v30 = vadd.f32 %v2668_v35, %v2597_v12  ;;  %v2962_v35 = vld [vmem:[#allocation31 + $0x138] sm:$0xff] }
 0x83f   : > { %v2679_v49 = vadd.f32 1.0, %v2669_v30  ;;  %v2672_v59 = vpop.f32.mrb[2].mxu0  ;;  %v2877_v30 = vrot.slane %v2876_v34, 4 }
 0x840   : > { %v2674_v26 = vpop.f32.mrb[3].mxu0  ;;  %v2673_v37 = vadd.f32 %v2672_v59, %v2593_v36  ;;  %v2980_v36 = vld [vmem:[#allocation31 + $0x1c8] sm:$0xff] }
 0x841   : > { %v2681_v27 = vmul.f32 %v2679_v49, %v7821_v21  ;;  %v2675_v2 = vadd.f32 %v2674_v26, %v2597_v12  ;;  %v4636_v12 = vpack.c.bf16 %v2978_v5, %v2977_v63  ;;  %v4638_v49 = vpack.c.bf16 %v2962_v35, %v2961_v32  ;;  %v2964_v26 = vld [vmem:[#allocation31 + $0x148] sm:$0xff]  ;;  %v3167_v63 = vld [vmem:[#allocation31 + $0x320] sm:$0xff]  ;;  %v3169_v35 = vld [vmem:[#allocation31 + $0x330] sm:$0xff] }
 0x842   : > { %v4640_v59 = vpack.c.bf16 %v2980_v36, %v2979_v13  ;;  %v3168_v5 = vld [vmem:[#allocation31 + $0x328] sm:$0xff]  ;;  %v3187_v13 = vld [vmem:[#allocation31 + $0x3c0] sm:$0xff] }
 0x843   : > { %v2683_v44 = vadd.f32 %v2681_v27, %v2667_v54  ;;  %v2680_v47 = vadd.f32 1.0, %v2675_v2  ;;  %v2982_v54 = vld [vmem:[#allocation31 + $0x1d8] sm:$0xff]  ;;  %v2878_v27 = vmax.f32 %v2876_v34, %v2877_v30  ;;  %v4642_v2 = vpack.c.bf16 %v2964_v26, %v2963_v40  ;;  %v3185_v34 = vld [vmem:[#allocation31 + $0x3b0] sm:$0xff]  ;;  %v3188_v36 = vld [vmem:[#allocation31 + $0x3c8] sm:$0xff] }
 0x844   : > { %v3172_v40 = vld [vmem:[#allocation31 + $0x348] sm:$0xff]  ;;  %v3189_v26 = vld [vmem:[#allocation31 + $0x3d0] sm:$0xff] }
 0x845   : > { %v2695_v50 = vmul.f32 %v7399_v1, %v2683_v44  ;;  %v2682_v0 = vmul.f32 %v2680_v47, %v7822_v60  ;;  %v4644_v44 = vpack.c.bf16 %v2982_v54, %v2981_v24  ;;  %v2965_v47 = vld [vmem:[#allocation31 + $0x150] sm:$0xff]  ;;  %v3190_v24 = vld [vmem:[#allocation31 + $0x3d8] sm:$0xff] }
 0x847   : > { %v2684_v28 = vadd.f32 %v2682_v0, %v2673_v37  ;;  %v2704_v51 = vmul.f32 %v2702_v25, %v2695_v50  ;;  %v2879_v37 = vrot.slane %v2878_v27, 2  ;;  %v4648_v0 = vpack.c.bf16 %v2984_v20, %v2983_v57 }
 0x849   : > { %v2696_v31 = vmul.f32 %v7404_v38, %v2684_v28  ;;  %v2712_v6 = vadd.f32 %v3997_v11, %v2704_v51  ;;  %v2968_v28 = vld [vmem:[#allocation31 + $0x168] sm:$0xff]  ;;  %v2985_v51 = vld [vmem:[#allocation31 + $0x1f0] sm:$0xff] }
 0x84b   : > { %v2705_v10 = vmul.f32 %v2702_v25, %v2696_v31  ;;  %v2714_v58 = vmul.f32 %v2712_v6, %v7399_v1  ;;  %v2966_v25 = vld [vmem:[#allocation31 + $0x158] sm:$0xff]  ;;  %v2880_v31 = vmax.f32 %v2878_v27, %v2879_v37  ;;  %v4708_v27 = vpack.c.bf16 %v3190_v24, %v3189_v26  ;;  %v3175_v37 = vld [vmem:[#allocation31 + $0x360] sm:$0xff]  ;;  %v3430_v24 = vld [vmem:[#allocation28 + $0x190] sm:$0xff] }
 0x84c   : > { %v4646_v50 = vpack.c.bf16 %v2966_v25, %v2965_v47  ;;  %v3191_v47 = vld [vmem:[#allocation31 + $0x3e0] sm:$0xff]  ;;  %v3192_v25 = vld [vmem:[#allocation31 + $0x3e8] sm:$0xff] }
 0x84d   : > { %v2713_v33 = vadd.f32 %v3997_v11, %v2705_v10  ;;  %4327 = vmatprep.mubr.f32.mxu1 %v2714_v58  ;;  %v2967_v11 = vld [vmem:[#allocation31 + $0x160] sm:$0xff]  ;;  %v4652_v10 = vpack.c.bf16 %v2986_v46, %v2985_v51  ;;  %v2969_v58 = vld [vmem:[#allocation31 + $0x170] sm:$0xff]  ;;  %v2881_v3 = vrot.slane %v2880_v31, 1  ;;  %v4712_v20 = vpack.c.bf16 %v3192_v25, %v3191_v47 }
 0x84e   : > { %v4650_v6 = vpack.c.bf16 %v2968_v28, %v2967_v11  ;;  %v4654_v61 = vpack.c.bf16 %v2970_v18, %v2969_v58  ;;  %v3194_v11 = vld [vmem:[#allocation31 + $0x3f8] sm:$0xff]  ;;  %v3177_v46 = vld [vmem:[#allocation31 + $0x370] sm:$0xff]  ;;  %v3429_v26 = vld [vmem:[#allocation28 + $0x188] sm:$0xff] }
 0x84f   : > { %v2715_v8 = vmul.f32 %v2713_v33, %v7404_v38  ;;  %v3164_v33 = vld [vmem:[#allocation31 + $0x308] sm:$0xff]  ;;  %v2882_v17 = vmax.f32 %v2880_v31, %v2881_v3  ;;  %v4718_v31 = vpack.c.bf16 %v3178_v55, %v3177_v46  ;;  %v5836_v3 = vmov 0.0|0.0   ;;  %v3439_v46 = vld [vmem:[#allocation28 + $0x1d8] sm:$0xff] }
 0x850   : > { %4720 = vmatprep.subr.bf16.mxu0 %v5836_v3 }
 0x851   : > { %4328 = vmatmul.mubr.f32.vlgmr.msra.gmra.mrb[0].mxu1 %v2715_v8  ;;  %v3181_v8 = vld [vmem:[#allocation31 + $0x390] sm:$0xff] }
 0x852   : > { %4627 = vmatpush3.bf16.msra.mxu1 %v4626_v29  ;;  %3121 = vmatprep.mubr.f32.mxu1 %v2902_v14  ;;  %v2919_v29 = vand.u32 2147483648, %v7411_v42  ;;  %v4690_v14 = vpack.c.bf16 %v3164_v33, %v3163_v43  ;;  %v3170_v42 = vld [vmem:[#allocation31 + $0x338] sm:$0xff] }
 0x853   : > { %4629 = vmatprep.subr.bf16.mxu1 %v4628_v9  ;;  %v3182_v9 = vld [vmem:[#allocation31 + $0x398] sm:$0xff]  ;;  %v4702_v30 = vpack.c.bf16 %v3170_v42, %v3169_v35 }
 0x854   : > { %v4692_v19 = vpack.c.bf16 %v3182_v9, %v3181_v8  ;;  %v3343_v33 = vld [vmem:[#allocation28 + $0x120] sm:$0xff]  ;;  %v3345_v9 = vld [vmem:[#allocation28 + $0x130] sm:$0xff] }
 0x855   : > { %v3998_v35 = vld [vmem:[#allocation30] ss:$0 sm:$0xff] }
 0x856   : > { %4631 = vmatpush3.bf16.msra.mxu1 %v4630_v45  ;;  %v2920_v45 = vsel %vm2918_vm4, %v2919_v29, %v2917_v52  ;;  %v3344_v29 = vld [vmem:[#allocation28 + $0x128] sm:$0xff]  ;;  %v3346_v52 = vld [vmem:[#allocation28 + $0x138] sm:$0xff] }
 0x857   : > { %4633 = vmatprep.subr.bf16.mxu1 %v4632_v53  ;;  %v3183_v53 = vld [vmem:[#allocation31 + $0x3a0] sm:$0xff]  ;;  %v4727_v8 = vpack.c.bf16 %v3344_v29, %v3343_v33 }
 0x858   : > { %v4696_v7 = vpack.c.bf16 %v3184_v16, %v3183_v53  ;;  %v3336_v33 = vld [vmem:[#allocation33 + $0x1] sm:$0x1] }
 0x85a   : > { %4635 = vmatpush3.bf16.msra.mxu1 %v4634_v22  ;;  %v3186_v22 = vld [vmem:[#allocation31 + $0x3b8] sm:$0xff] }
 0x85b   : > { %4637 = vmatprep.subr.bf16.mxu1 %v4636_v12  ;;  %v4698_v12 = vpack.c.bf16 %v3168_v5, %v3167_v63  ;;  %v4700_v32 = vpack.c.bf16 %v3186_v22, %v3185_v34  ;;  %v3353_v22 = vld [vmem:[#allocation28 + $0x170] sm:$0xff] }
 0x85e   : > { %4639 = vmatpush3.bf16.msra.mxu1 %v4638_v49  ;;  %v4704_v49 = vpack.c.bf16 %v3188_v36, %v3187_v13 }
 0x85f   : > { %4641 = vmatprep.subr.bf16.mxu1 %v4640_v59  ;;  %v3171_v59 = vld [vmem:[#allocation31 + $0x340] sm:$0xff] }
 0x860   : > { %v4706_v54 = vpack.c.bf16 %v3172_v40, %v3171_v59  ;;  %v3428_v40 = vld [vmem:[#allocation28 + $0x180] sm:$0xff] }
 0x862   : > { %4643 = vmatpush3.bf16.msra.mxu1 %v4642_v2  ;;  %v3173_v2 = vld [vmem:[#allocation31 + $0x350] sm:$0xff] }
 0x863   : > { %4645 = vmatprep.subr.bf16.mxu1 %v4644_v44  ;;  %v3174_v44 = vld [vmem:[#allocation31 + $0x358] sm:$0xff] }
 0x864   : > { %v4710_v57 = vpack.c.bf16 %v3174_v44, %v3173_v2  ;;  %v3432_v2 = vld [vmem:[#allocation28 + $0x1a0] sm:$0xff]  ;;  %v3433_v44 = vld [vmem:[#allocation28 + $0x1a8] sm:$0xff] }
 0x866   : > { %4647 = vmatpush3.bf16.msra.mxu1 %v4646_v50  ;;  %v3176_v50 = vld [vmem:[#allocation31 + $0x368] sm:$0xff] }
 0x867   : > { %4649 = vmatprep.subr.bf16.mxu1 %v4648_v0  ;;  %v3193_v0 = vld [vmem:[#allocation31 + $0x3f0] sm:$0xff]  ;;  %v4714_v28 = vpack.c.bf16 %v3176_v50, %v3175_v37 }
 0x868   : > { %v4716_v51 = vpack.c.bf16 %v3194_v11, %v3193_v0  ;;  %v3436_v0 = vld [vmem:[#allocation28 + $0x1c0] sm:$0xff]  ;;  %v3437_v11 = vld [vmem:[#allocation28 + $0x1c8] sm:$0xff] }
 0x86a   : > { %4651 = vmatpush3.bf16.msra.mxu1 %v4650_v6  ;;  %v2922_v6 = vld [vmem:[#allocation9] sm:$0x1] }
 0x86b   : > { %4653 = vmatprep.subr.bf16.mxu1 %v4652_v10  ;;  %v4097_v10 = vpop.f32.mrb[4].mxu0 }
 0x86c   : > { %v4098_v58 = vpop.f32.mrb[5].mxu0 }
 0x86d   : > { %v7419_v18 = vadd.f32 %v4098_v58, %v4097_v10  ;;  %v7826_v58 = vld [vmem:[#allocation74_spill] sm:$0xff] }
 0x86e   : > { %4655 = vmatpush3.bf16.msra.mxu1 %v4654_v61  ;;  %v4721_v61 = vpack.c.bf16 %v3340_v48, %v3339_v4  ;;  %v3128_v48 = vld [vmem:[#allocation33] sm:$0x1] }
 0x86f   : > { %4689 = vmatprep.subr.bf16.mxu1 %v4688_v15  ;;  %v3342_v15 = vld [vmem:[#allocation28 + $0x118] sm:$0xff] }
 0x870   : > { %4722 = vmatpush3.bf16.msra.mxu0 %v4721_v61  ;;  %v4724_v43 = vpack.c.bf16 %v3342_v15, %v3341_v41 }
 0x871   : > { %3122 = vmatmul.mubr.f32.vlgmr.msra.gmra.mrb[2].mxu1 %v2882_v17  ;;  %4723 = vmatprep.subr.bf16.mxu0 %v5836_v3  ;;  %v4730_v17 = vpack.c.bf16 %v3346_v52, %v3345_v9 }
 0x872   : > { %4691 = vmatpush3.bf16.msra.mxu1 %v4690_v14  ;;  %3329 = vmatprep.mubr.f32.mxu1 %v2920_v45  ;;  %v3347_v14 = vld [vmem:[#allocation28 + $0x140] sm:$0xff]  ;;  %v3350_v45 = vld [vmem:[#allocation28 + $0x158] sm:$0xff] }
 0x873   : > { %4693 = vmatprep.subr.bf16.mxu1 %v4692_v19  ;;  %v3348_v19 = vld [vmem:[#allocation28 + $0x148] sm:$0xff]  ;;  %v4736_v53 = vpack.c.bf16 %v3350_v45, %v3349_v62  ;;  %v3355_v62 = vld [vmem:[#allocation30 + $0x2] sm:$0x1] }
 0x874   : > { %4725 = vmatpush3.bf16.msra.mxu0 %v4724_v43  ;;  %v4733_v56 = vpack.c.bf16 %v3348_v19, %v3347_v14  ;;  %v3442_v19 = vld [vmem:[#allocation28 + $0x1f0] sm:$0xff] }
 0x875   : > { %4726 = vmatprep.subr.bf16.mxu0 %v5836_v3 }
 0x876   : > { %4695 = vmatpush3.bf16.msra.mxu1 %v4694_v39  ;;  %v3351_v39 = vld [vmem:[#allocation28 + $0x160] sm:$0xff] }
 0x877   : > { %4697 = vmatprep.subr.bf16.mxu1 %v4696_v7  ;;  %v3352_v7 = vld [vmem:[#allocation28 + $0x168] sm:$0xff] }
 0x878   : > { %4728 = vmatpush3.bf16.msra.mxu0 %v4727_v8  ;;  %v4739_v5 = vpack.c.bf16 %v3352_v7, %v3351_v39 }
 0x879   : > { %4729 = vmatprep.subr.bf16.mxu0 %v5836_v3 }
 0x87a   : > { %4699 = vmatpush3.bf16.msra.mxu1 %v4698_v12  ;;  %v3354_v12 = vld [vmem:[#allocation28 + $0x178] sm:$0xff] }
 0x87b   : > { %4701 = vmatprep.subr.bf16.mxu1 %v4700_v32  ;;  %v4167_v16 = vpop.f32.mrb[6].mxu0  ;;  %v4742_v32 = vpack.c.bf16 %v3354_v12, %v3353_v22 }
 0x87c   : > { %4731 = vmatpush3.bf16.msra.mxu0 %v4730_v17  ;;  %v4168_v63 = vpop.f32.mrb[7].mxu0 }
 0x87d   : > { %4732 = vmatprep.subr.bf16.mxu0 %v5836_v3  ;;  %v7429_v34 = vadd.f32 %v4168_v63, %v4167_v16 }
 0x87e   : > { %4703 = vmatpush3.bf16.msra.mxu1 %v4702_v30 }
 0x87f   : > { %4705 = vmatprep.subr.bf16.mxu1 %v4704_v49 }
 0x880   : > { %4734 = vmatpush3.bf16.msra.mxu0 %v4733_v56 }
 0x881   : > { %4735 = vmatprep.subr.bf16.mxu0 %v5836_v3 }
 0x882   : > { %4707 = vmatpush3.bf16.msra.mxu1 %v4706_v54  ;;  %v4745_v54 = vpack.c.bf16 %v3429_v26, %v3428_v40  ;;  %v3444_v26 = vld [vmem:[#allocation30 + $0x3] sm:$0x1] }
 0x883   : > { %4709 = vmatprep.subr.bf16.mxu1 %v4708_v27  ;;  %v3431_v27 = vld [vmem:[#allocation28 + $0x198] sm:$0xff] }
 0x884   : > { %4737 = vmatpush3.bf16.msra.mxu0 %v4736_v53 }
 0x885   : > { %4738 = vmatprep.subr.bf16.mxu0 %v5836_v3 }
 0x886   : > { %4711 = vmatpush3.bf16.msra.mxu1 %v4710_v57  ;;  %v3435_v57 = vld [vmem:[#allocation28 + $0x1b8] sm:$0xff] }
 0x887   : > { %4713 = vmatprep.subr.bf16.mxu1 %v4712_v20 }
 0x888   : > { %4740 = vmatpush3.bf16.msra.mxu0 %v4739_v5 }
 0x889   : > { %4741 = vmatprep.subr.bf16.mxu0 %v5836_v3 }
 0x88a   : > { %4715 = vmatpush3.bf16.msra.mxu1 %v4714_v28  ;;  %v4757_v28 = vpack.c.bf16 %v3437_v11, %v3436_v0 }
 0x88b   : > { %4717 = vmatprep.subr.bf16.mxu1 %v4716_v51  ;;  %v3438_v51 = vld [vmem:[#allocation28 + $0x1d0] sm:$0xff] }
 0x88c   : > { %4743 = vmatpush3.bf16.msra.mxu0 %v4742_v32  ;;  %v4760_v55 = vpack.c.bf16 %v3439_v46, %v3438_v51 }
 0x88e   : > { %4719 = vmatpush3.bf16.msra.mxu1 %v4718_v31  ;;  %v3440_v31 = vld [vmem:[#allocation28 + $0x1e0] sm:$0xff] }
 0x88f   : > { %4744 = vmatprep.subr.bf16.mxu1 %v5836_v3 }
 0x891   : > { %3330 = vmatmul.mubr.f32.vlgmr.msra.gmra.mrb[4].mxu1 %v2922_v6  ;;  %v3441_v6 = vld [vmem:[#allocation28 + $0x1e8] sm:$0xff] }
 0x892   : > { %4397 = vmatprep.mubr.msk.f32.mxu1 %vm5837_vm5, %v5835_v23  ;;  %4746 = vmatpush3.bf16.msra.mxu1 %v4745_v54  ;;  %v4748_v23 = vpack.c.bf16 %v3431_v27, %v3430_v24  ;;  %v4763_v10 = vpack.c.bf16 %v3441_v6, %v3440_v31 }
 0x893   : > { %4747 = vmatprep.subr.bf16.mxu1 %v5836_v3 }
 0x896   : > { %4749 = vmatpush3.bf16.msra.mxu1 %v4748_v23 }
 0x897   : > { %4750 = vmatprep.subr.bf16.mxu1 %v5836_v3 }
 0x924   : > { %v4329_v42 = vpop.f32.mrb[0].mxu1 }
 0x925   : > { %v2809_v13 = vadd.f32 %v4329_v42, %v3998_v35  ;;  %v2803_v36 = vpop.f32.mrb[1].mxu1 }
 0x926   : > { %v2804_v30 = vadd.f32 %v3998_v35, %v2803_v36  ;;  %v3999_v35 = vld [vmem:[#allocation34] ss:$0 sm:$0xff] }
 0x927   : > { %v2813_v49 = vadd.f32 %v2809_v13, %v7822_v60  ;;  %v4751_v60 = vpack.c.bf16 %v3433_v44, %v3432_v2  ;;  %v4000_v13 = vld [vmem:[#allocation36] ss:$0 sm:$0xff] }
 0x928   : > { %v7436_v59 = vadd.f32 %v2804_v30, %v7821_v21  ;;  %v3434_v21 = vld [vmem:[#allocation28 + $0x1b0] sm:$0xff] }
 0x929   : > { %2816 = vadd.xlane.f32.xlu1 %v2813_v49  ;;  %4752 = vmatpush3.bf16.msra.mxu1 %v4751_v60  ;;  %v4754_v50 = vpack.c.bf16 %v3435_v57, %v3434_v21 }
 0x92a   : > { %2814 = vadd.xlane.f32.xlu0 %v7436_v59  ;;  %4753 = vmatprep.subr.bf16.mxu1 %v5836_v3 }
 0x92d   : > { %4755 = vmatpush3.bf16.msra.mxu1 %v4754_v50 }
 0x92e   : > { %4756 = vmatprep.subr.bf16.mxu1 %v5836_v3 }
 0x931   : > { %4758 = vmatpush3.bf16.msra.mxu1 %v4757_v28 }
 0x932   : > { %4759 = vmatprep.subr.bf16.mxu1 %v5836_v3 }
 0x935   : > { %4761 = vmatpush3.bf16.msra.mxu1 %v4760_v55 }
 0x936   : > { %4762 = vmatprep.subr.bf16.mxu1 %v5836_v3 }
 0x939   : > { %4764 = vmatpush3.bf16.msra.mxu1 %v4763_v10 }
 0x93a   : > { %4765 = vmatprep.subr.bf16.mxu1 %v5836_v3  ;;  %v3443_v3 = vld [vmem:[#allocation28 + $0x1f8] sm:$0xff] }
 0x93b   : > { %v4766_v56 = vpack.c.bf16 %v3443_v3, %v3442_v19 }
 0x93d   : > { %4767 = vmatpush3.bf16.msra.mxu1 %v4766_v56 }
 0x944   : > { %v4132_v47 = vpop.f32.mrb[2].mxu1 }
 0x945   : > { %v4133_v25 = vpop.f32.mrb[3].mxu1 }
 0x946   : > { %v4134_v20 = vadd.f32 %v4133_v25, %v4132_v47 }
 0x948   : > { %v3124_v37 = vadd.f32 %v4134_v20, %v7419_v18 }
 0x94a   : > { %v3127_v18 = vadd.f32 %v3124_v37, %v7826_v58 }
 0x94c   : > { %v3129_v15 = vadd.f32 %v3128_v48, %v3127_v18 }
 0x964   : > { %v4202_v4 = vpop.f32.mrb[4].mxu1 }
 0x965   : > { %v4203_v41 = vpop.f32.mrb[5].mxu1 }
 0x966   : > { %v4204_v61 = vadd.f32 %v4203_v41, %v4202_v4 }
 0x968   : > { %v3332_v43 = vadd.f32 %v4204_v61, %v7429_v34 }
 0x96a   : > { %v3335_v29 = vadd.f32 %v3332_v43, %v3129_v15  ;;  %v3533_v15 = vld [vmem:[#allocation34 + $0x2] sm:$0x1] }
 0x96c   : > { %v3337_v8 = vadd.f32 %v3336_v33, %v3335_v29  ;;  %v3535_v33 = vld [vmem:[#allocation36 + $0x2] sm:$0x1] }
 0x96e   : > { %4363 = vmatmul.mubr.f32.vlgmr.msra.gmra.mrb[8].mxu0 %v3337_v8 }
 0x9b6   : > { %v2817_v9 = vpop.xlane.xlu1 %2816 }
 0x9b7   : > { %v2819_v52 = vmul.f32 0.03125, %v2817_v9  ;;  %v2815_v40 = vpop.xlane.xlu0 %2814 }
 0x9b8   : > { %v2818_v24 = vmul.f32 0.03125, %v2815_v40 }
 0x9b9   : > { %v2821_v17 = vsub.f32 %v2813_v49, %v2819_v52  ;;  %v2829_v7 = vmul.f32 96.0, %v2819_v52 }
 0x9ba   : > { %v2820_v44 = vsub.f32 %v7436_v59, %v2818_v24  ;;  %v2828_v25 = vmul.f32 96.0, %v2818_v24 }
 0x9bb   : > { %v2823_v14 = vmul.f32 %v2821_v17, %v2821_v17  ;;  %v2831_v63 = vmul.f32 %v2829_v7, %v2819_v52 }
 0x9bc   : > { %v2822_v60 = vmul.f32 %v2820_v44, %v2820_v44  ;;  %v2830_v57 = vmul.f32 %v2828_v25, %v2818_v24 }
 0x9bd   : > { %2826 = vadd.xlane.f32.xlu1 %v2823_v14 }
 0xa41   : > { %v3422_v45 = vpop.f32.mrb[8].mxu0 }
 0xa42   : > { %v3423_v53 = vadd.f32 %v3422_v45, %v3355_v62  ;;  %v4364_v16 = vpop.f32.mrb[9].mxu0 }
 0xa44   : > { %v3426_v39 = vmax.f32 %v3423_v53, 0.0 }
 0xa46   : > { %4398 = vmatmul.mubr.f32.vlgmr.msra.gmra.mrb[6].mxu1 %v3426_v39 }
 0xa4a   : > { %v2827_v5 = vpop.xlane.xlu1 %2826 }
 0xa4b   : > { %v2833_v34 = vsub.f32 %v2827_v5, %v2831_v63 }
 0xa4d   : > { %v2835_v22 = vmul.f32 0.03125, %v2833_v34 }
 0xa4f   : > { %v2837_v12 = vadd.f32 1e-05, %v2835_v22 }
 0xa51   : > { %5087 = vrsqrt.f32 %v2837_v12 }
 0xa5b   : > { %v5088_v32 = vpop.eup %5087 }
 0xa5c   : > { %v2841_v42 = vmul.f32 %v5088_v32, %v2821_v17 }
 0xa5e   : > { %v2848_v36 = vmul.f32 %v3999_v35, %v2841_v42 }
 0xa60   : > { %v2855_v30 = vadd.f32 %v4000_v13, %v2848_v36 }
 0xa62   : > { %v2857_v49 = vmul.f32 %v2855_v30, %v7404_v38 }
 0xa64   : > { %2859 = vst [vmem:[%s6691_s26 + $0x8] sm:$0xff] %v2857_v49 }
 0xb19   : > { %v3511_v54 = vpop.f32.mrb[6].mxu1 }
 0xb1a   : > { %v3512_v27 = vadd.f32 %v3511_v54, %v3444_v26  ;;  %v4399_v23 = vpop.f32.mrb[7].mxu1 }
 0xb1c   : > { %v3515_v2 = vadd.f32 %v3512_v27, %v7826_v58 }
 0xb1e   : > { %v3517_v47 = vsel %vm3516_vm6, %v3515_v2, 0.0 }
 0xb1f   : > { %3518 = vadd.xlane.f32.xlu0 %v3517_v47 }
 0xb23   : > { %2824 = vadd.xlane.f32.xlu0 %v2822_v60 }
 0xbac   : > { %v3519_v21 = vpop.xlane.xlu0 %3518 }
 0xbad   : > { %v3520_v38 = vmul.f32 0.03125, %v3519_v21 }
 0xbaf   : > { %v3521_v20 = vsub.f32 %v3515_v2, %v3520_v38  ;;  %v3526_v10 = vmul.f32 96.0, %v3520_v38 }
 0xbb0   : > { %v2825_v37 = vpop.xlane.xlu0 %2824 }
 0xbb1   : > { %v2832_v50 = vsub.f32 %v2825_v37, %v2830_v57  ;;  %v3522_v0 = vmul.f32 %v3521_v20, %v3521_v20  ;;  %v3527_v58 = vmul.f32 %v3526_v10, %v3520_v38 }
 0xbb3   : > { %v2834_v11 = vmul.f32 0.03125, %v2832_v50  ;;  %v3523_v28 = vsel %vm3516_vm6, %v3522_v0, 0.0 }
 0xbb4   : > { %3524 = vadd.xlane.f32.xlu0 %v3523_v28 }
 0xbb5   : > { %v2836_v51 = vadd.f32 1e-05, %v2834_v11 }
 0xbb7   : > { %5089 = vrsqrt.f32 %v2836_v51 }
 0xbc1   : > { %v5090_v59 = vpop.eup %5089 }
 0xbc2   : > { %v2840_v46 = vmul.f32 %v5090_v59, %v2820_v44 }
 0xbc4   : > { %v2847_v55 = vmul.f32 %v3999_v35, %v2840_v46 }
 0xbc6   : > { %v2854_v31 = vadd.f32 %v4000_v13, %v2847_v55 }
 0xbc8   : > { %v2856_v6 = vmul.f32 %v2854_v31, %v7399_v1 }
 0xbca   : > { %2858 = vst [vmem:[%s6691_s26] sm:$0xff] %v2856_v6 }
 0xc41   : > { %v3525_v18 = vpop.xlane.xlu0 %3524 }
 0xc42   : > { %v3528_v4 = vsub.f32 %v3525_v18, %v3527_v58 }
 0xc44   : > { %v3529_v48 = vmul.f32 0.03125, %v3528_v4 }
 0xc46   : > { %v3530_v41 = vadd.f32 1e-05, %v3529_v48 }
 0xc48   : > { %5091 = vrsqrt.f32 %v3530_v41 }
 0xc52   : > { %v5092_v61 = vpop.eup %5091 }
 0xc53   : > { %v3532_v43 = vmul.f32 %v5092_v61, %v3521_v20 }
 0xc55   : > { %v3534_v29 = vmul.f32 %v3533_v15, %v3532_v43 }
 0xc57   : > { %v3536_v8 = vadd.f32 %v3535_v33, %v3534_v29 }
 0xc59   : > { %3537 = vst [vmem:[%s963_s7] sm:$0x1] %v3536_v8 }
 0xc5a PF: > { %s7827_s12 = sld [smem:[#allocation58_spill]]  ;;  %s7828_s17 = sld [smem:[#allocation59_spill]] }
 0xc5b   : > { %s7829_s8 = sld [smem:[#allocation66_spill]]  ;;  %s3579_s23 = sshll.u32 %s6694_s2, 4  ;;  %s7462_s23 = int_to_ptr.vmem [resolvable:$true] %s3579_s23 }
 0xc5c   : > { %s7830_s10 = sld [smem:[#allocation97_spill]]  ;;  %s3544_s0 = scalar_lea.sflag [#allocation39], %s6575_s11 }
 0xc5d   : > { %s5579_s24 = scalar_lea.vmem %s7462_s23, 2048  ;;  %s5838_s20 = smov [#allocation38]  }
 0xc5e   : > { %p5580_p13 = scmp.ne.s32.totalorder %s7462_s23, %s5579_s24  ;;  %s5583_s2 = sshll.u32 %s5838_s20, 4  ;;  %s5584_s2 = int_to_ptr.vmem [resolvable:$false] %s5583_s2 }
 0xc5f   : > { %s5585_s3 = scalar_lea.vmem %s5584_s2, 4096  ;;  %p5586_p4 = scmp.lt.s32.totalorder %s7462_s23, %s5584_s2 }
 0xc60   : > { %s4005_s30 = sshll.u32 %s7827_s12, 4  ;;  %s4006_s29 = sshll.u32 %s7828_s17, 5 }
 0xc61   : > { %s3576_s22 = sadd.s32 %s4006_s29, %s4005_s30  ;;  %s4014_s16 = sshll.u32 %s7828_s17, 8 }
 0xc62   : > { %s4007_s9 = sshll.u32 %s3576_s22, 7  ;;  %p7831_p11 = scmp.ne.s32.totalorder %s7829_s8, 0 }
 0xc63   : > { %s7467_s6 = scalar_lea.hbm %s7830_s10, %s4007_s9  ;;  %p5587_p2 = scmp.lt.s32.totalorder %s5585_s3, %s5579_s24 }
 0xc64   : > { %p5581_p9 = pnand %p5580_p13, %p7831_p11 }
 0xc65   : > { %p5588_p6 = por %p5587_p2, %p5586_p4 }
 0xc66   : > { %p5582_p1 = pneg %p5581_p9 }
 0xc68   : > { %p5589_p7 = pnand %p5588_p6, %p5582_p1 }
 0xc6a   : > { %5592 = shalt.err (!%p5589_p7)
}
 0xc6b   : > { %s5593_s21 = scalar_lea.hbm %s7467_s6, 2048  ;;  %s5597_s27 = scalar_lea.hbm %s7830_s10, 8192 }
 0xc6c   : > { %p5594_p8 = scmp.ne.s32.totalorder %s7467_s6, %s5593_s21  ;;  %p5598_p10 = scmp.lt.u32.totalorder %s7467_s6, %s7830_s10 }
 0xc6d   : > { %p5599_p0 = scmp.lt.u32.totalorder %s5597_s27, %s5593_s21  ;;  %p5601_p13 = scmp.lt.u32.totalorder %s5593_s21, %s7467_s6 }
 0xc6e   : > { %p5595_p5 = pnand %p5594_p8, %p7831_p11 }
 0xc6f   : > { %p5600_p12 = por %p5599_p0, %p5598_p10 }
 0xc70   : > { %p5596_p3 = pneg %p5595_p5 }
 0xc71   : > { %p5602_p9 = por %p5601_p13, %p5600_p12 }
 0xc73   : > { %p5603_p1 = pnand %p5602_p9, %p5596_p3 }
 0xc75   : > { %5606 = shalt.err (!%p5603_p1)
}
 0xc76   : > { %s5839_s29 = smov 128   ;;  %s7832_s22 = sld [smem:[#allocation70_spill]] }
 0xc77   : > { %s5840_s9 = smov 8   ;;  %s7833_s24 = sld [smem:[#allocation96_spill]] }
 0xc78   : > { %4827 = dma.vmem_to_hbm [thread:$0]  (%p7831_p11), %s7462_s23, 2048, %s7467_s6, %s3544_s0, %s5839_s29, %s5839_s29, %s5840_s9  }
 0xc79   : > { %s3561_s2 = sshll.u32 %s6691_s26, 4  ;;  %s4008_s3 = sshll.u32 %s7828_s17, 4  ;;  %s7505_s2 = int_to_ptr.vmem [resolvable:$true] %s3561_s2 }
 0xc7a   : > { %s3539_s21 = scalar_lea.sflag [#allocation12], %s6563_s15  ;;  %s5607_s8 = scalar_lea.vmem %s7505_s2, 256 }
 0xc7b   : > { %p5608_p4 = scmp.ne.s32.totalorder %s7505_s2, %s5607_s8  ;;  %s5841_s23 = smov [#allocation37]  }
 0xc7c   : > { %p7835_p2 = scmp.ne.s32.totalorder %s7832_s22, 0  ;;  %s5611_s6 = sshll.u32 %s5841_s23, 4  ;;  %s5612_s6 = int_to_ptr.vmem [resolvable:$false] %s5611_s6 }
 0xc7d   : > { %s7834_s5 = smov %s7833_s24  ;;  %s7502_s20 = scalar_lea.hbm %s7833_s24, %s4014_s16 }
 0xc7e   : > { %p5609_p6 = pnand %p5608_p4, %p7835_p2  ;;  %s5613_s18 = scalar_lea.vmem %s5612_s6, 512 }
 0xc7f   : > { %p5614_p11 = scmp.lt.s32.totalorder %s7505_s2, %s5612_s6  ;;  %p5615_p8 = scmp.lt.s32.totalorder %s5613_s18, %s5607_s8 }
 0xc80   : > { %p5610_p7 = pneg %p5609_p6 }
 0xc81   : > { %p5616_p5 = por %p5615_p8, %p5614_p11 }
 0xc83   : > { %p5617_p3 = pnand %p5616_p5, %p5610_p7 }
 0xc85   : > { %5620 = shalt.err (!%p5617_p3)
}
 0xc86   : > { %s5621_s26 = scalar_lea.hbm %s7502_s20, 256  ;;  %s5625_s12 = scalar_lea.hbm %s7834_s5, 512 }
 0xc87   : > { %p5622_p10 = scmp.ne.s32.totalorder %s7502_s20, %s5621_s26  ;;  %p5626_p13 = scmp.lt.u32.totalorder %s7502_s20, %s7834_s5 }
 0xc88   : > { %p5627_p9 = scmp.lt.u32.totalorder %s5625_s12, %s5621_s26  ;;  %p5629_p4 = scmp.lt.u32.totalorder %s5621_s26, %s7502_s20 }
 0xc89   : > { %p5623_p0 = pnand %p5622_p10, %p7835_p2 }
 0xc8a   : > { %p5628_p1 = por %p5627_p9, %p5626_p13 }
 0xc8b   : > { %p5624_p12 = pneg %p5623_p0 }
 0xc8c   : > { %p5630_p6 = por %p5629_p4, %p5628_p1 }
 0xc8e   : > { %p5631_p7 = pnand %p5630_p6, %p5624_p12 }
 0xc90   : > { %5634 = shalt.err (!%p5631_p7)
}
 0xc91   : > { %4826 = dma.vmem_to_hbm [thread:$0]  (%p7835_p2), %s7505_s2, 256, %s7502_s20, %s3539_s21, %s5839_s29, %s5839_s29, %s5840_s9  }
 0xc92   : > { %s7836_s8 = sld [smem:[#allocation98_spill]]  ;;  %s3595_s6 = sshll.u32 %s963_s7, 4  ;;  %s3596_s6 = int_to_ptr.vmem [resolvable:$true] %s3595_s6 }
 0xc93   : > { %s5635_s18 = scalar_lea.vmem %s3596_s6, 16  ;;  %s5842_s26 = smov [#allocation40]  }
 0xc94   : > { %p5636_p11 = scmp.ne.s32.totalorder %s3596_s6, %s5635_s18  ;;  %s5639_s16 = sshll.u32 %s5842_s26, 4  ;;  %s5640_s16 = int_to_ptr.vmem [resolvable:$false] %s5639_s16 }
 0xc95   : > { %s5641_s27 = scalar_lea.vmem %s5640_s16, 32  ;;  %p5642_p3 = scmp.lt.s32.totalorder %s3596_s6, %s5640_s16 }
 0xc96   : > { %p5637_p8 = pnand %p5636_p11, %p7835_p2  ;;  %p5643_p10 = scmp.lt.s32.totalorder %s5641_s27, %s5635_s18 }
 0xc98   : > { %s7540_s23 = scalar_lea.hbm %s7836_s8, %s4008_s3  ;;  %p5638_p5 = pneg %p5637_p8 }
 0xc99   : > { %p5644_p0 = por %p5643_p10, %p5642_p3 }
 0xc9b   : > { %p5645_p12 = pnand %p5644_p0, %p5638_p5 }
 0xc9d   : > { %5648 = shalt.err (!%p5645_p12)
}
 0xc9e   : > { %s5649_s15 = scalar_lea.hbm %s7540_s23, 16  ;;  %s5653_s29 = scalar_lea.hbm %s7836_s8, 32 }
 0xc9f   : > { %p5650_p13 = scmp.ne.s32.totalorder %s7540_s23, %s5649_s15  ;;  %p5654_p4 = scmp.lt.u32.totalorder %s7540_s23, %s7836_s8 }
 0xca0   : > { %p5655_p6 = scmp.lt.u32.totalorder %s5653_s29, %s5649_s15  ;;  %p5657_p11 = scmp.lt.u32.totalorder %s5649_s15, %s7540_s23 }
 0xca1   : > { %p5651_p9 = pnand %p5650_p13, %p7835_p2 }
 0xca2   : > { %p5656_p7 = por %p5655_p6, %p5654_p4 }
 0xca3   : > { %p5652_p1 = pneg %p5651_p9 }
 0xca4   : > { %p5658_p8 = por %p5657_p11, %p5656_p7 }
 0xca6   : > { %p5659_p5 = pnand %p5658_p8, %p5652_p1 }
 0xca8   : > { %5662 = shalt.err (!%p5659_p5)
}
 0xca9   : > { %4828 = dma.vmem_to_hbm [thread:$0]  (%p7835_p2), %s3596_s6, 16, %s7540_s23, %s3544_s0  }
 0xcaa PF: > { %s7837_s2 = sld [smem:[#allocation61_spill]]  ;;  %s7838_s3 = sld [smem:[#allocation56_spill]] }
 0xcab   : > { %s7839_s21 = sld [smem:[#allocation71_spill]] }
 0xcb0   : > { %p4920_p3 = scmp.ge.s32.totalorder %s7837_s2, 2  ;;  %s3607_s12 = sand.u32 1, %s7838_s3  }
 0xcb1   : > { %p7840_p10 = scmp.ne.s32.totalorder %s7839_s21, 0  ;;  %s3608_s30 = scalar_lea.sflag [#allocation12], %s3607_s12 }
 0xcb3   : > { %p4886_p0 = pnand %p4920_p3, %p7840_p10 }
 0xcb5   : > { %5748 = dma.done.wait (!%p4886_p0), %s3608_s30, 256  }
 0xcb6   : > { %5750 = vsyncadd (!%p4886_p0), %s3608_s30, 4294967040  ;;  %s7841_s19 = sadd.s32 4294967294, %s7837_s2   ;;  %s7842_s14 = sld [smem:[#allocation67_spill]] }
 0xcb7   : > { %s3616_s24 = sand.u32 1, %s7841_s19  }
 0xcb8   : > { %s3617_s11 = scalar_lea.sflag [#allocation39], %s3616_s24 }
 0xcbc   : > { %p7843_p12 = scmp.ne.s32.totalorder %s7842_s14, 0 }
 0xcbe   : > { %p4889_p13 = pnand %p4920_p3, %p7843_p12 }
 0xcc0   : > { %5752 = dma.done.wait (!%p4889_p13), %s3617_s11, 2048  }
 0xcc1   : > { %5754 = vsyncadd (!%p4889_p13), %s3617_s11, 4294965248 }
 0xcc2   : > { %5756 = dma.done.wait (!%p4886_p0), %s3617_s11, 16  }
 0xcc3   : > { %5758 = vsyncadd (!%p4886_p0), %s3617_s11, 4294967280  ;;  %s51_s3 = sadd.s32 1, %s7837_s2   ;;  %s7844_s0 = sld [smem:[#allocation54_spill]] }
 0xcc4   : > { %p48_p2 = scmp.ge.s32.totalorder %s51_s3, 6   ;;  %s7845_s30 = sld [smem:[#allocation55_spill]] }
 0xcc5   : > { %s7846_s20 = sld [smem:[#allocation68_spill]]  ;;  %s7847_s22 = sld [smem:[#allocation57_spill]] }
 0xcc6   : > { %s7848_s23 = sld [smem:[#allocation69_spill]]  ;;  %s7849_s2 = sld [smem:[#allocation60_spill]] }
 0xcc7   : > { %s7850_s24 = sld [smem:[#allocation63_spill]]  ;;  %s7851_s6 = sld [smem:[#allocation64_spill]] }
 0xcc8   : > { %s7852_s21 = smov %s5777_s1  ;;  %50 = sbr.rel (!%p48_p2) target bundleno = 42 (0x2a), region = 275 }
 0xccb   : > { %s7853_s1 = smov %s7847_s22 }
 0xccc   : > { %s7854_s22 = smov %s7848_s23  ;;  %s7855_s23 = smov %s5797_s25 }
 0xccd   : > { %s7856_s25 = smov %s7851_s6 }
 0xccf   :  { %3630 = vsyncpa [#allocation11], 1 }
 0xcd0   :  { %3632 = vsyncpa [#allocation11 + $0x1], 1 }
 0xcd1   :  { %3633 = vsyncpa [#allocation14], 1 }
 0xcd2   :  { %3635 = vsyncpa [#allocation14 + $0x1], 1 }
 0xcd3   :  { %3636 = vsyncpa [#allocation17], 1 }
 0xcd4   :  { %3638 = vsyncpa [#allocation17 + $0x1], 1 }
 0xcd5   :  { %3639 = vsyncpa [#allocation20], 1 }
 0xcd6   :  { %3640 = vsyncpa [#allocation23], 1 }
 0xcd7   :  { %3641 = vsyncpa [#allocation26], 1 }
 0xcd8   :  { %3642 = vsyncpa [#allocation29], 1 }
 0xcd9   :  { %3643 = vsyncpa [#allocation32], 1 }
 0xcda   :  { %3644 = vsyncpa [#allocation35], 1 }
 0xcdb   :  { %3645 = vsyncpa [#allocation12], 1 }
 0xcdc   :  { %3647 = vsyncpa [#allocation12 + $0x1], 1 }
 0xcdd   :  { %3648 = vsyncpa [#allocation39], 1 }
 0xcde   :  { %3650 = vsyncpa [#allocation39 + $0x1], 1 }

</bundles_post_ra>
